<compile_context>
chip_gen: v5e
topology: v5e:2x2
jax: 0.10.0
libtpu: 0.0.40
codegen_flags: <defaults>
</compile_context>

<pallas_src>
import jax
import jax.numpy as jnp
import numpy as np
from jax import lax
from jax.experimental import pallas as pl
from jax.experimental.pallas import tpu as pltpu

EPS = 1e-5  # nn.BatchNorm2d default eps


# --------------------------------------------------------------------------- #
# Kernel helpers
# --------------------------------------------------------------------------- #
def _conv3x3_im2col(y_hwc, w_ref, pad_ref):
    """3x3 same-padding conv of one image as a single im2col matmul.

    y_hwc  : (H, W, C) f32 value for the current grid step.
    w_ref  : (9*C, Cout) bf16 ref, tap-major ((dy, dx) row-major, then C).
    pad_ref: (H+2, W+2, C) f32 VMEM scratch.
    Returns an (H*W, Cout) f32 accumulator.
    """
    H, W, C = y_hwc.shape
    # Zero only the 1-pixel halo; the interior is fully overwritten below, so
    # every scratch element is written exactly once per grid step (no full
    # zero-fill followed by an interior rewrite).
    pad_ref[0:1, :, :] = jnp.zeros((1, W + 2, C), jnp.float32)
    pad_ref[H + 1:H + 2, :, :] = jnp.zeros((1, W + 2, C), jnp.float32)
    pad_ref[1:H + 1, 0:1, :] = jnp.zeros((H, 1, C), jnp.float32)
    pad_ref[1:H + 1, W + 1:W + 2, :] = jnp.zeros((H, 1, C), jnp.float32)
    pad_ref[1:H + 1, 1:W + 1, :] = y_hwc

    # im2col: nine shifted windows concatenated along the channel axis.
    taps = [pad_ref[dy:dy + H, dx:dx + W, :].reshape(H * W, C)
            for dy in range(3) for dx in range(3)]
    patch = jnp.concatenate(taps, axis=-1).astype(jnp.bfloat16)    # (H*W, 9*C)
    # Single MXU contraction with K = 9*C, bf16 operands, f32 accumulation.
    return jnp.dot(patch, w_ref[...], preferred_element_type=jnp.float32)


def _channel_stats(acc):
    """Per-channel (sum, sum-of-squares) partials of an (P, C) f32 block."""
    s = jnp.sum(acc, axis=0, keepdims=True)
    sq = jnp.sum(acc * acc, axis=0, keepdims=True)
    return jnp.concatenate([s, sq], axis=0)                        # (2, C)


# --------------------------------------------------------------------------- #
# Pass 1: conv1 (3x3, no bias: it cancels under training-mode BN)
#         -> pre-BN activations + per-step BN1 partial stats
# --------------------------------------------------------------------------- #
def _conv1_kernel(x_ref, w1_ref, z1_ref, st1_ref, pad_ref):
    _, H, W, _ = x_ref.shape
    acc = _conv3x3_im2col(x_ref[0], w1_ref, pad_ref)               # (H*W, Cout)
    z1_ref[0] = acc.reshape(H, W, acc.shape[-1])
    st1_ref[0] = _channel_stats(acc)


# --------------------------------------------------------------------------- #
# Pass 2: folded BN1 (scale/shift) + ReLU -> conv2 (3x3) + BN2 partial stats
# --------------------------------------------------------------------------- #
def _conv2_kernel(z1_ref, sc1_ref, sh1_ref, w2_ref, z2_ref, st2_ref, pad_ref):
    _, H, W, _ = z1_ref.shape
    y1 = jnp.maximum(z1_ref[0] * sc1_ref[...] + sh1_ref[...], 0.0)
    acc = _conv3x3_im2col(y1, w2_ref, pad_ref)                     # (H*W, Cout)
    z2_ref[0] = acc.reshape(H, W, acc.shape[-1])
    st2_ref[0] = _channel_stats(acc)


# --------------------------------------------------------------------------- #
# Pass 3: folded BN2 + 1x1 residual mapping (with bias) + final ReLU
# --------------------------------------------------------------------------- #
def _finalize_kernel(z2_ref, x_ref, sc2_ref, sh2_ref, wm_ref, bm_ref, out_ref):
    _, H, W, Cin = x_ref.shape
    Cout = out_ref.shape[-1]
    y2 = z2_ref[0] * sc2_ref[...] + sh2_ref[...]
    xin = x_ref[0].reshape(H * W, Cin).astype(jnp.bfloat16)
    res = jnp.dot(xin, wm_ref[...], preferred_element_type=jnp.float32) + bm_ref[...]
    out_ref[0] = jnp.maximum(y2 + res.reshape(H, W, Cout), 0.0)


# --------------------------------------------------------------------------- #
# Host-side wrapper
# --------------------------------------------------------------------------- #
def _fold_bn(stats, gamma, beta, count):
    """Combine per-step (sum, sumsq) partials into a BN scale/shift pair."""
    tot = jnp.sum(stats, axis=0)                   # (2, C)
    mean = tot[0] / count
    var = tot[1] / count - mean * mean             # biased var, as BatchNorm2d
    scale = gamma * lax.rsqrt(var + EPS)
    shift = beta - mean * scale
    return scale.reshape(1, -1), shift.reshape(1, -1)


@jax.jit
def double_conv_resid_block(x_nchw, params):
    """x_nchw: (N, Cin, H, W) float32 -> (N, Cout, H, W) float32."""
    N, Cin, H, W = x_nchw.shape
    Cout = params["w1"].shape[0]
    count = jnp.float32(N * H * W)

    x = jnp.transpose(x_nchw, (0, 2, 3, 1))        # NHWC (channels on lanes)
    # TODO(synk): for large shapes fold this NCHW->NHWC transpose into the
    # kernel DMA path instead of a separate XLA op.

    # OIHW -> tap-major (9*Cin, Cout) weights, pre-cast to bf16 for the MXU.
    w1 = jnp.transpose(params["w1"], (2, 3, 1, 0)).reshape(9 * Cin, Cout).astype(jnp.bfloat16)
    w2 = jnp.transpose(params["w2"], (2, 3, 1, 0)).reshape(9 * Cout, Cout).astype(jnp.bfloat16)
    wm = jnp.transpose(params["wm"].reshape(Cout, Cin), (1, 0)).astype(jnp.bfloat16)
    bm = params["bm"].reshape(1, Cout).astype(jnp.float32)
    # NOTE: b1/b2 are intentionally unused: with training-mode (per-batch) BN
    # the conv bias cancels exactly in the mean subtraction.

    cp = pltpu.CompilerParams(
        dimension_semantics=("parallel",),          # shard batch across TCs (v7x)
        vmem_limit_bytes=32 * 1024 * 1024)

    f32 = jnp.float32
    img_spec = lambda C: pl.BlockSpec((1, H, W, C), lambda n: (n, 0, 0, 0))
    row_spec = lambda r, c: pl.BlockSpec((r, c), lambda n: (0, 0))
    st_spec = pl.BlockSpec((1, 2, Cout), lambda n: (n, 0, 0))

    # ---- pass 1: conv1 + BN1 partial stats ---------------------------------
    z1, st1 = pl.pallas_call(
        _conv1_kernel,
        grid=(N,),
        in_specs=[img_spec(Cin), row_spec(9 * Cin, Cout)],
        out_specs=[img_spec(Cout), st_spec],
        out_shape=[jax.ShapeDtypeStruct((N, H, W, Cout), f32),
                   jax.ShapeDtypeStruct((N, 2, Cout), f32)],
        scratch_shapes=[pltpu.VMEM((H + 2, W + 2, Cin), f32)],
        compiler_params=cp,
        cost_estimate=pl.CostEstimate(
            flops=2 * N * H * W * 9 * Cin * Cout, transcendentals=0,
            bytes_accessed=4 * N * H * W * (Cin + Cout) + 2 * 9 * Cin * Cout),
    )(x, w1)

    sc1, sh1 = _fold_bn(st1, params["g1"], params["be1"], count)

    # ---- pass 2: BN1 + ReLU -> conv2 + BN2 partial stats --------------------
    z2, st2 = pl.pallas_call(
        _conv2_kernel,
        grid=(N,),
        in_specs=[img_spec(Cout), row_spec(1, Cout), row_spec(1, Cout),
                  row_spec(9 * Cout, Cout)],
        out_specs=[img_spec(Cout), st_spec],
        out_shape=[jax.ShapeDtypeStruct((N, H, W, Cout), f32),
                   jax.ShapeDtypeStruct((N, 2, Cout), f32)],
        scratch_shapes=[pltpu.VMEM((H + 2, W + 2, Cout), f32)],
        compiler_params=cp,
        cost_estimate=pl.CostEstimate(
            flops=2 * N * H * W * 9 * Cout * Cout, transcendentals=0,
            bytes_accessed=4 * N * H * W * 2 * Cout + 2 * 9 * Cout * Cout),
    )(z1, sc1, sh1, w2)

    sc2, sh2 = _fold_bn(st2, params["g2"], params["be2"], count)

    # ---- pass 3: BN2 + 1x1 residual mapping + ReLU --------------------------
    out_nhwc = pl.pallas_call(
        _finalize_kernel,
        grid=(N,),
        in_specs=[img_spec(Cout), img_spec(Cin), row_spec(1, Cout),
                  row_spec(1, Cout), row_spec(Cin, Cout), row_spec(1, Cout)],
        out_specs=img_spec(Cout),
        out_shape=jax.ShapeDtypeStruct((N, H, W, Cout), f32),
        compiler_params=cp,
        cost_estimate=pl.CostEstimate(
            flops=2 * N * H * W * Cin * Cout, transcendentals=0,
            bytes_accessed=4 * N * H * W * (Cin + 2 * Cout)),
    )(z2, x, sc2, sh2, wm, bm)

    return jnp.transpose(out_nhwc, (0, 3, 1, 2))    # back to NCHW


# --------------------------------------------------------------------------- #
# Pure-JAX f32 reference (training-mode BN), matching the PyTorch forward
# --------------------------------------------------------------------------- #
def _reference(x, p):
    def conv(x, w, b, pad):
        y = lax.conv_general_dilated(x, w, (1, 1), [(pad, pad), (pad, pad)],
                                     dimension_numbers=("NCHW", "OIHW", "NCHW"))
        return y + b.reshape(1, -1, 1, 1)

    def bn(x, g, be):
        m = jnp.mean(x, axis=(0, 2, 3), keepdims=True)
        v = jnp.mean((x - m) ** 2, axis=(0, 2, 3), keepdims=True)
        return (x - m) * lax.rsqrt(v + EPS) * g.reshape(1, -1, 1, 1) + be.reshape(1, -1, 1, 1)

    y = jnp.maximum(bn(conv(x, p["w1"], p["b1"], 1), p["g1"], p["be1"]), 0.0)
    y = bn(conv(y, p["w2"], p["b2"], 1), p["g2"], p["be2"])
    return jnp.maximum(y + conv(x, p["wm"], p["bm"], 0), 0.0)


if __name__ == "__main__":
    key = jax.random.PRNGKey(0)
    N, Cin, Cout, H, W = 2, 4, 8, 16, 16
    ks = jax.random.split(key, 11)

    params = dict(
        w1=jax.random.normal(ks[0], (Cout, Cin, 3, 3), jnp.float32) * 0.1,
        b1=jax.random.normal(ks[1], (Cout,), jnp.float32) * 0.1,
        g1=1.0 + jax.random.normal(ks[2], (Cout,), jnp.float32) * 0.1,
        be1=jax.random.normal(ks[3], (Cout,), jnp.float32) * 0.1,
        w2=jax.random.normal(ks[4], (Cout, Cout, 3, 3), jnp.float32) * 0.1,
        b2=jax.random.normal(ks[5], (Cout,), jnp.float32) * 0.1,
        g2=1.0 + jax.random.normal(ks[6], (Cout,), jnp.float32) * 0.1,
        be2=jax.random.normal(ks[7], (Cout,), jnp.float32) * 0.1,
        wm=jax.random.normal(ks[8], (Cout, Cin, 1, 1), jnp.float32) * 0.1,
        bm=jax.random.normal(ks[9], (Cout,), jnp.float32) * 0.1,
    )
    x = jax.random.normal(ks[10], (N, Cin, H, W), jnp.float32)

    out = jax.block_until_ready(double_conv_resid_block(x, params))
    assert out.shape == (N, Cout, H, W)

    ref = _reference(x, params)
    # bf16 MXU operands -> slightly looser tolerance than a pure-f32 comparison.
    np.testing.assert_allclose(np.asarray(out), np.asarray(ref), atol=5e-2, rtol=5e-2)
    print("KERNEL_OK")
</pallas_src>

<mosaic_0001>
module attributes {stable_mosaic.version = 11 : i64} {
  func.func @_conv1_kernel(%arg0: i32, %arg1: memref<1x16x16x4xf32, #tpu.memory_space<vmem>>, %arg2: memref<36x8xbf16, #tpu.memory_space<vmem>>, %arg3: memref<1x16x16x8xf32, #tpu.memory_space<vmem>>, %arg4: memref<1x2x8xf32, #tpu.memory_space<vmem>>, %arg5: memref<18x18x4xf32, #tpu.memory_space<vmem>>) attributes {dimension_semantics = [#tpu.dimension_semantics<parallel>], iteration_bounds = array<i64: 2>, scalar_prefetch = 0 : i64, scratch_operands = 1 : i64, tpu.core_type = #tpu.core_type<tc>, window_params = [{transform_indices = @transform_0, window_bounds = array<i64: 1, 16, 16, 4>}, {pipeline_mode = #tpu.pipeline_mode<synchronous>, transform_indices = @transform_1, window_bounds = array<i64: 36, 8>}, {transform_indices = @transform_2, window_bounds = array<i64: 1, 16, 16, 8>}, {transform_indices = @transform_3, window_bounds = array<i64: 1, 2, 8>}]} {
    %c0 = arith.constant 0 : index
    %c0_0 = arith.constant 0 : index
    %c0_1 = arith.constant 0 : index
    %c0_2 = arith.constant 0 : index
    %0 = vector.load %arg1[%c0, %c0_0, %c0_1, %c0_2] : memref<1x16x16x4xf32, #tpu.memory_space<vmem>>, vector<1x16x16x4xf32>
    %1 = vector.shape_cast %0 : vector<1x16x16x4xf32> to vector<16x16x4xf32>
    %cst = arith.constant 0.000000e+00 : f32
    %2 = vector.broadcast %cst : f32 to vector<1x18x4xf32>
    %c0_3 = arith.constant 0 : index
    %c0_4 = arith.constant 0 : index
    %c0_5 = arith.constant 0 : index
    %3 = vector.load %arg5[%c0_3, %c0_4, %c0_5] : memref<18x18x4xf32, #tpu.memory_space<vmem>>, vector<1x18x4xf32>
    tpu.vector_store %arg5[%c0_3, %c0_4, %c0_5], %2 {strides = array<i32>} : memref<18x18x4xf32, #tpu.memory_space<vmem>>, vector<1x18x4xf32>,
    %cst_6 = arith.constant 0.000000e+00 : f32
    %4 = vector.broadcast %cst_6 : f32 to vector<1x18x4xf32>
    %c17 = arith.constant 17 : index
    %c0_7 = arith.constant 0 : index
    %c0_8 = arith.constant 0 : index
    %5 = vector.load %arg5[%c17, %c0_7, %c0_8] : memref<18x18x4xf32, #tpu.memory_space<vmem>>, vector<1x18x4xf32>
    tpu.vector_store %arg5[%c17, %c0_7, %c0_8], %4 {strides = array<i32>} : memref<18x18x4xf32, #tpu.memory_space<vmem>>, vector<1x18x4xf32>,
    %cst_9 = arith.constant 0.000000e+00 : f32
    %6 = vector.broadcast %cst_9 : f32 to vector<16x1x4xf32>
    %c1 = arith.constant 1 : index
    %c0_10 = arith.constant 0 : index
    %c0_11 = arith.constant 0 : index
    %7 = vector.load %arg5[%c1, %c0_10, %c0_11] : memref<18x18x4xf32, #tpu.memory_space<vmem>>, vector<16x1x4xf32>
    tpu.vector_store %arg5[%c1, %c0_10, %c0_11], %6 {strides = array<i32>} : memref<18x18x4xf32, #tpu.memory_space<vmem>>, vector<16x1x4xf32>,
    %cst_12 = arith.constant 0.000000e+00 : f32
    %8 = vector.broadcast %cst_12 : f32 to vector<16x1x4xf32>
    %c1_13 = arith.constant 1 : index
    %c17_14 = arith.constant 17 : index
    %c0_15 = arith.constant 0 : index
    %9 = vector.load %arg5[%c1_13, %c17_14, %c0_15] : memref<18x18x4xf32, #tpu.memory_space<vmem>>, vector<16x1x4xf32>
    tpu.vector_store %arg5[%c1_13, %c17_14, %c0_15], %8 {strides = array<i32>} : memref<18x18x4xf32, #tpu.memory_space<vmem>>, vector<16x1x4xf32>,
    %c1_16 = arith.constant 1 : index
    %c1_17 = arith.constant 1 : index
    %c0_18 = arith.constant 0 : index
    %10 = vector.load %arg5[%c1_16, %c1_17, %c0_18] : memref<18x18x4xf32, #tpu.memory_space<vmem>>, vector<16x16x4xf32>
    tpu.vector_store %arg5[%c1_16, %c1_17, %c0_18], %1 {strides = array<i32>} : memref<18x18x4xf32, #tpu.memory_space<vmem>>, vector<16x16x4xf32>,
    %c0_19 = arith.constant 0 : index
    %c0_20 = arith.constant 0 : index
    %c0_21 = arith.constant 0 : index
    %11 = vector.load %arg5[%c0_19, %c0_20, %c0_21] : memref<18x18x4xf32, #tpu.memory_space<vmem>>, vector<16x16x4xf32>
    %12 = vector.shape_cast %11 : vector<16x16x4xf32> to vector<256x4xf32>
    %c0_22 = arith.constant 0 : index
    %c1_23 = arith.constant 1 : index
    %c0_24 = arith.constant 0 : index
    %13 = vector.load %arg5[%c0_22, %c1_23, %c0_24] : memref<18x18x4xf32, #tpu.memory_space<vmem>>, vector<16x16x4xf32>
    %14 = vector.shape_cast %13 : vector<16x16x4xf32> to vector<256x4xf32>
    %c0_25 = arith.constant 0 : index
    %c2 = arith.constant 2 : index
    %c0_26 = arith.constant 0 : index
    %15 = vector.load %arg5[%c0_25, %c2, %c0_26] : memref<18x18x4xf32, #tpu.memory_space<vmem>>, vector<16x16x4xf32>
    %16 = vector.shape_cast %15 : vector<16x16x4xf32> to vector<256x4xf32>
    %c1_27 = arith.constant 1 : index
    %c0_28 = arith.constant 0 : index
    %c0_29 = arith.constant 0 : index
    %17 = vector.load %arg5[%c1_27, %c0_28, %c0_29] : memref<18x18x4xf32, #tpu.memory_space<vmem>>, vector<16x16x4xf32>
    %18 = vector.shape_cast %17 : vector<16x16x4xf32> to vector<256x4xf32>
    %c1_30 = arith.constant 1 : index
    %c1_31 = arith.constant 1 : index
    %c0_32 = arith.constant 0 : index
    %19 = vector.load %arg5[%c1_30, %c1_31, %c0_32] : memref<18x18x4xf32, #tpu.memory_space<vmem>>, vector<16x16x4xf32>
    %20 = vector.shape_cast %19 : vector<16x16x4xf32> to vector<256x4xf32>
    %c1_33 = arith.constant 1 : index
    %c2_34 = arith.constant 2 : index
    %c0_35 = arith.constant 0 : index
    %21 = vector.load %arg5[%c1_33, %c2_34, %c0_35] : memref<18x18x4xf32, #tpu.memory_space<vmem>>, vector<16x16x4xf32>
    %22 = vector.shape_cast %21 : vector<16x16x4xf32> to vector<256x4xf32>
    %c2_36 = arith.constant 2 : index
    %c0_37 = arith.constant 0 : index
    %c0_38 = arith.constant 0 : index
    %23 = vector.load %arg5[%c2_36, %c0_37, %c0_38] : memref<18x18x4xf32, #tpu.memory_space<vmem>>, vector<16x16x4xf32>
    %24 = vector.shape_cast %23 : vector<16x16x4xf32> to vector<256x4xf32>
    %c2_39 = arith.constant 2 : index
    %c1_40 = arith.constant 1 : index
    %c0_41 = arith.constant 0 : index
    %25 = vector.load %arg5[%c2_39, %c1_40, %c0_41] : memref<18x18x4xf32, #tpu.memory_space<vmem>>, vector<16x16x4xf32>
    %26 = vector.shape_cast %25 : vector<16x16x4xf32> to vector<256x4xf32>
    %c2_42 = arith.constant 2 : index
    %c2_43 = arith.constant 2 : index
    %c0_44 = arith.constant 0 : index
    %27 = vector.load %arg5[%c2_42, %c2_43, %c0_44] : memref<18x18x4xf32, #tpu.memory_space<vmem>>, vector<16x16x4xf32>
    %28 = vector.shape_cast %27 : vector<16x16x4xf32> to vector<256x4xf32>
    %29 = tpu.concatenate %12, %14, %16, %18, %20, %22, %24, %26, %28 in 1 : vector<256x4xf32>, vector<256x4xf32>, vector<256x4xf32>, vector<256x4xf32>, vector<256x4xf32>, vector<256x4xf32>, vector<256x4xf32>, vector<256x4xf32>, vector<256x4xf32> -> vector<256x36xf32>
    %30 = arith.truncf %29 : vector<256x36xf32> to vector<256x36xbf16>
    %c0_45 = arith.constant 0 : index
    %c0_46 = arith.constant 0 : index
    %31 = vector.load %arg2[%c0_45, %c0_46] : memref<36x8xbf16, #tpu.memory_space<vmem>>, vector<36x8xbf16>
    %cst_47 = arith.constant dense<0.000000e+00> : vector<256x8xf32>
    %32 = tpu.matmul %30, %31, %cst_47 {dimension_numbers = #tpu.dot_dimension_numbers<[1], [0], [0], [1], [0, 0, 1, 1], [], []>} : vector<256x36xbf16>, vector<36x8xbf16>, vector<256x8xf32> -> vector<256x8xf32>
    %33 = vector.shape_cast %32 : vector<256x8xf32> to vector<16x16x8xf32>
    %c0_48 = arith.constant 0 : index
    %c0_49 = arith.constant 0 : index
    %c0_50 = arith.constant 0 : index
    %c0_51 = arith.constant 0 : index
    %34 = vector.load %arg3[%c0_48, %c0_49, %c0_50, %c0_51] : memref<1x16x16x8xf32, #tpu.memory_space<vmem>>, vector<1x16x16x8xf32>
    %35 = vector.shape_cast %34 : vector<1x16x16x8xf32> to vector<16x16x8xf32>
    %36 = vector.shape_cast %33 : vector<16x16x8xf32> to vector<1x16x16x8xf32>
    tpu.vector_store %arg3[%c0_48, %c0_49, %c0_50, %c0_51], %36 {strides = array<i32>} : memref<1x16x16x8xf32, #tpu.memory_space<vmem>>, vector<1x16x16x8xf32>,
    %cst_52 = arith.constant dense<0.000000e+00> : vector<8xf32>
    %37 = vector.multi_reduction <add>, %32, %cst_52 [0] : vector<256x8xf32> to vector<8xf32>
    %38 = vector.shape_cast %37 : vector<8xf32> to vector<1x8xf32>
    %39 = arith.mulf %32, %32 : vector<256x8xf32>
    %cst_53 = arith.constant dense<0.000000e+00> : vector<8xf32>
    %40 = vector.multi_reduction <add>, %39, %cst_53 [0] : vector<256x8xf32> to vector<8xf32>
    %41 = vector.shape_cast %40 : vector<8xf32> to vector<1x8xf32>
    %42 = tpu.concatenate %38, %41 in 0 : vector<1x8xf32>, vector<1x8xf32> -> vector<2x8xf32>
    %c0_54 = arith.constant 0 : index
    %c0_55 = arith.constant 0 : index
    %c0_56 = arith.constant 0 : index
    %43 = vector.load %arg4[%c0_54, %c0_55, %c0_56] : memref<1x2x8xf32, #tpu.memory_space<vmem>>, vector<1x2x8xf32>
    %44 = vector.shape_cast %43 : vector<1x2x8xf32> to vector<2x8xf32>
    %45 = vector.shape_cast %42 : vector<2x8xf32> to vector<1x2x8xf32>
    tpu.vector_store %arg4[%c0_54, %c0_55, %c0_56], %45 {strides = array<i32>} : memref<1x2x8xf32, #tpu.memory_space<vmem>>, vector<1x2x8xf32>,
    return
  }
  func.func @transform_0(%arg0: i32) -> (i32, i32, i32, i32) {
    %c0_i32 = arith.constant 0 : i32
    %c0_i32_0 = arith.constant 0 : i32
    %c0_i32_1 = arith.constant 0 : i32
    %c0_i32_2 = arith.constant 0 : i32
    return %arg0, %c0_i32, %c0_i32_0, %c0_i32_1 : i32, i32, i32, i32
  }
  func.func @transform_1(%arg0: i32) -> (i32, i32) {
    %c0_i32 = arith.constant 0 : i32
    %c0_i32_0 = arith.constant 0 : i32
    %c0_i32_1 = arith.constant 0 : i32
    return %c0_i32, %c0_i32_0 : i32, i32
  }
  func.func @transform_2(%arg0: i32) -> (i32, i32, i32, i32) {
    %c0_i32 = arith.constant 0 : i32
    %c0_i32_0 = arith.constant 0 : i32
    %c0_i32_1 = arith.constant 0 : i32
    %c0_i32_2 = arith.constant 0 : i32
    return %arg0, %c0_i32, %c0_i32_0, %c0_i32_1 : i32, i32, i32, i32
  }
  func.func @transform_3(%arg0: i32) -> (i32, i32, i32) {
    %c0_i32 = arith.constant 0 : i32
    %c0_i32_0 = arith.constant 0 : i32
    %c0_i32_1 = arith.constant 0 : i32
    return %arg0, %c0_i32, %c0_i32_0 : i32, i32, i32
  }
}

module attributes {stable_mosaic.version = 11 : i64} {
  func.func @_conv2_kernel(%arg0: i32, %arg1: memref<1x16x16x8xf32, #tpu.memory_space<vmem>>, %arg2: memref<1x8xf32, #tpu.memory_space<vmem>>, %arg3: memref<1x8xf32, #tpu.memory_space<vmem>>, %arg4: memref<72x8xbf16, #tpu.memory_space<vmem>>, %arg5: memref<1x16x16x8xf32, #tpu.memory_space<vmem>>, %arg6: memref<1x2x8xf32, #tpu.memory_space<vmem>>, %arg7: memref<18x18x8xf32, #tpu.memory_space<vmem>>) attributes {dimension_semantics = [#tpu.dimension_semantics<parallel>], iteration_bounds = array<i64: 2>, scalar_prefetch = 0 : i64, scratch_operands = 1 : i64, tpu.core_type = #tpu.core_type<tc>, window_params = [{transform_indices = @transform_0, window_bounds = array<i64: 1, 16, 16, 8>}, {pipeline_mode = #tpu.pipeline_mode<synchronous>, transform_indices = @transform_1, window_bounds = array<i64: 1, 8>}, {pipeline_mode = #tpu.pipeline_mode<synchronous>, transform_indices = @transform_2, window_bounds = array<i64: 1, 8>}, {pipeline_mode = #tpu.pipeline_mode<synchronous>, transform_indices = @transform_3, window_bounds = array<i64: 72, 8>}, {transform_indices = @transform_4, window_bounds = array<i64: 1, 16, 16, 8>}, {transform_indices = @transform_5, window_bounds = array<i64: 1, 2, 8>}]} {
    %c0 = arith.constant 0 : index
    %c0_0 = arith.constant 0 : index
    %c0_1 = arith.constant 0 : index
    %c0_2 = arith.constant 0 : index
    %0 = vector.load %arg1[%c0, %c0_0, %c0_1, %c0_2] : memref<1x16x16x8xf32, #tpu.memory_space<vmem>>, vector<1x16x16x8xf32>
    %1 = vector.shape_cast %0 : vector<1x16x16x8xf32> to vector<16x16x8xf32>
    %c0_3 = arith.constant 0 : index
    %c0_4 = arith.constant 0 : index
    %2 = vector.load %arg2[%c0_3, %c0_4] : memref<1x8xf32, #tpu.memory_space<vmem>>, vector<1x8xf32>
    %3 = vector.shape_cast %2 : vector<1x8xf32> to vector<1x1x8xf32>
    %4 = vector.broadcast %3 : vector<1x1x8xf32> to vector<16x16x8xf32>
    %5 = arith.mulf %1, %4 : vector<16x16x8xf32>
    %c0_5 = arith.constant 0 : index
    %c0_6 = arith.constant 0 : index
    %6 = vector.load %arg3[%c0_5, %c0_6] : memref<1x8xf32, #tpu.memory_space<vmem>>, vector<1x8xf32>
    %7 = vector.shape_cast %6 : vector<1x8xf32> to vector<1x1x8xf32>
    %8 = vector.broadcast %7 : vector<1x1x8xf32> to vector<16x16x8xf32>
    %9 = arith.addf %5, %8 : vector<16x16x8xf32>
    %cst = arith.constant 0.000000e+00 : f32
    %10 = vector.broadcast %cst : f32 to vector<16x16x8xf32>
    %11 = arith.maximumf %9, %10 : vector<16x16x8xf32>
    %cst_7 = arith.constant 0.000000e+00 : f32
    %12 = vector.broadcast %cst_7 : f32 to vector<1x18x8xf32>
    %c0_8 = arith.constant 0 : index
    %c0_9 = arith.constant 0 : index
    %c0_10 = arith.constant 0 : index
    %13 = vector.load %arg7[%c0_8, %c0_9, %c0_10] : memref<18x18x8xf32, #tpu.memory_space<vmem>>, vector<1x18x8xf32>
    tpu.vector_store %arg7[%c0_8, %c0_9, %c0_10], %12 {strides = array<i32>} : memref<18x18x8xf32, #tpu.memory_space<vmem>>, vector<1x18x8xf32>,
    %cst_11 = arith.constant 0.000000e+00 : f32
    %14 = vector.broadcast %cst_11 : f32 to vector<1x18x8xf32>
    %c17 = arith.constant 17 : index
    %c0_12 = arith.constant 0 : index
    %c0_13 = arith.constant 0 : index
    %15 = vector.load %arg7[%c17, %c0_12, %c0_13] : memref<18x18x8xf32, #tpu.memory_space<vmem>>, vector<1x18x8xf32>
    tpu.vector_store %arg7[%c17, %c0_12, %c0_13], %14 {strides = array<i32>} : memref<18x18x8xf32, #tpu.memory_space<vmem>>, vector<1x18x8xf32>,
    %cst_14 = arith.constant 0.000000e+00 : f32
    %16 = vector.broadcast %cst_14 : f32 to vector<16x1x8xf32>
    %c1 = arith.constant 1 : index
    %c0_15 = arith.constant 0 : index
    %c0_16 = arith.constant 0 : index
    %17 = vector.load %arg7[%c1, %c0_15, %c0_16] : memref<18x18x8xf32, #tpu.memory_space<vmem>>, vector<16x1x8xf32>
    tpu.vector_store %arg7[%c1, %c0_15, %c0_16], %16 {strides = array<i32>} : memref<18x18x8xf32, #tpu.memory_space<vmem>>, vector<16x1x8xf32>,
    %cst_17 = arith.constant 0.000000e+00 : f32
    %18 = vector.broadcast %cst_17 : f32 to vector<16x1x8xf32>
    %c1_18 = arith.constant 1 : index
    %c17_19 = arith.constant 17 : index
    %c0_20 = arith.constant 0 : index
    %19 = vector.load %arg7[%c1_18, %c17_19, %c0_20] : memref<18x18x8xf32, #tpu.memory_space<vmem>>, vector<16x1x8xf32>
    tpu.vector_store %arg7[%c1_18, %c17_19, %c0_20], %18 {strides = array<i32>} : memref<18x18x8xf32, #tpu.memory_space<vmem>>, vector<16x1x8xf32>,
    %c1_21 = arith.constant 1 : index
    %c1_22 = arith.constant 1 : index
    %c0_23 = arith.constant 0 : index
    %20 = vector.load %arg7[%c1_21, %c1_22, %c0_23] : memref<18x18x8xf32, #tpu.memory_space<vmem>>, vector<16x16x8xf32>
    tpu.vector_store %arg7[%c1_21, %c1_22, %c0_23], %11 {strides = array<i32>} : memref<18x18x8xf32, #tpu.memory_space<vmem>>, vector<16x16x8xf32>,
    %c0_24 = arith.constant 0 : index
    %c0_25 = arith.constant 0 : index
    %c0_26 = arith.constant 0 : index
    %21 = vector.load %arg7[%c0_24, %c0_25, %c0_26] : memref<18x18x8xf32, #tpu.memory_space<vmem>>, vector<16x16x8xf32>
    %22 = vector.shape_cast %21 : vector<16x16x8xf32> to vector<256x8xf32>
    %c0_27 = arith.constant 0 : index
    %c1_28 = arith.constant 1 : index
    %c0_29 = arith.constant 0 : index
    %23 = vector.load %arg7[%c0_27, %c1_28, %c0_29] : memref<18x18x8xf32, #tpu.memory_space<vmem>>, vector<16x16x8xf32>
    %24 = vector.shape_cast %23 : vector<16x16x8xf32> to vector<256x8xf32>
    %c0_30 = arith.constant 0 : index
    %c2 = arith.constant 2 : index
    %c0_31 = arith.constant 0 : index
    %25 = vector.load %arg7[%c0_30, %c2, %c0_31] : memref<18x18x8xf32, #tpu.memory_space<vmem>>, vector<16x16x8xf32>
    %26 = vector.shape_cast %25 : vector<16x16x8xf32> to vector<256x8xf32>
    %c1_32 = arith.constant 1 : index
    %c0_33 = arith.constant 0 : index
    %c0_34 = arith.constant 0 : index
    %27 = vector.load %arg7[%c1_32, %c0_33, %c0_34] : memref<18x18x8xf32, #tpu.memory_space<vmem>>, vector<16x16x8xf32>
    %28 = vector.shape_cast %27 : vector<16x16x8xf32> to vector<256x8xf32>
    %c1_35 = arith.constant 1 : index
    %c1_36 = arith.constant 1 : index
    %c0_37 = arith.constant 0 : index
    %29 = vector.load %arg7[%c1_35, %c1_36, %c0_37] : memref<18x18x8xf32, #tpu.memory_space<vmem>>, vector<16x16x8xf32>
    %30 = vector.shape_cast %29 : vector<16x16x8xf32> to vector<256x8xf32>
    %c1_38 = arith.constant 1 : index
    %c2_39 = arith.constant 2 : index
    %c0_40 = arith.constant 0 : index
    %31 = vector.load %arg7[%c1_38, %c2_39, %c0_40] : memref<18x18x8xf32, #tpu.memory_space<vmem>>, vector<16x16x8xf32>
    %32 = vector.shape_cast %31 : vector<16x16x8xf32> to vector<256x8xf32>
    %c2_41 = arith.constant 2 : index
    %c0_42 = arith.constant 0 : index
    %c0_43 = arith.constant 0 : index
    %33 = vector.load %arg7[%c2_41, %c0_42, %c0_43] : memref<18x18x8xf32, #tpu.memory_space<vmem>>, vector<16x16x8xf32>
    %34 = vector.shape_cast %33 : vector<16x16x8xf32> to vector<256x8xf32>
    %c2_44 = arith.constant 2 : index
    %c1_45 = arith.constant 1 : index
    %c0_46 = arith.constant 0 : index
    %35 = vector.load %arg7[%c2_44, %c1_45, %c0_46] : memref<18x18x8xf32, #tpu.memory_space<vmem>>, vector<16x16x8xf32>
    %36 = vector.shape_cast %35 : vector<16x16x8xf32> to vector<256x8xf32>
    %c2_47 = arith.constant 2 : index
    %c2_48 = arith.constant 2 : index
    %c0_49 = arith.constant 0 : index
    %37 = vector.load %arg7[%c2_47, %c2_48, %c0_49] : memref<18x18x8xf32, #tpu.memory_space<vmem>>, vector<16x16x8xf32>
    %38 = vector.shape_cast %37 : vector<16x16x8xf32> to vector<256x8xf32>
    %39 = tpu.concatenate %22, %24, %26, %28, %30, %32, %34, %36, %38 in 1 : vector<256x8xf32>, vector<256x8xf32>, vector<256x8xf32>, vector<256x8xf32>, vector<256x8xf32>, vector<256x8xf32>, vector<256x8xf32>, vector<256x8xf32>, vector<256x8xf32> -> vector<256x72xf32>
    %40 = arith.truncf %39 : vector<256x72xf32> to vector<256x72xbf16>
    %c0_50 = arith.constant 0 : index
    %c0_51 = arith.constant 0 : index
    %41 = vector.load %arg4[%c0_50, %c0_51] : memref<72x8xbf16, #tpu.memory_space<vmem>>, vector<72x8xbf16>
    %cst_52 = arith.constant dense<0.000000e+00> : vector<256x8xf32>
    %42 = tpu.matmul %40, %41, %cst_52 {dimension_numbers = #tpu.dot_dimension_numbers<[1], [0], [0], [1], [0, 0, 1, 1], [], []>} : vector<256x72xbf16>, vector<72x8xbf16>, vector<256x8xf32> -> vector<256x8xf32>
    %43 = vector.shape_cast %42 : vector<256x8xf32> to vector<16x16x8xf32>
    %c0_53 = arith.constant 0 : index
    %c0_54 = arith.constant 0 : index
    %c0_55 = arith.constant 0 : index
    %c0_56 = arith.constant 0 : index
    %44 = vector.load %arg5[%c0_53, %c0_54, %c0_55, %c0_56] : memref<1x16x16x8xf32, #tpu.memory_space<vmem>>, vector<1x16x16x8xf32>
    %45 = vector.shape_cast %44 : vector<1x16x16x8xf32> to vector<16x16x8xf32>
    %46 = vector.shape_cast %43 : vector<16x16x8xf32> to vector<1x16x16x8xf32>
    tpu.vector_store %arg5[%c0_53, %c0_54, %c0_55, %c0_56], %46 {strides = array<i32>} : memref<1x16x16x8xf32, #tpu.memory_space<vmem>>, vector<1x16x16x8xf32>,
    %cst_57 = arith.constant dense<0.000000e+00> : vector<8xf32>
    %47 = vector.multi_reduction <add>, %42, %cst_57 [0] : vector<256x8xf32> to vector<8xf32>
    %48 = vector.shape_cast %47 : vector<8xf32> to vector<1x8xf32>
    %49 = arith.mulf %42, %42 : vector<256x8xf32>
    %cst_58 = arith.constant dense<0.000000e+00> : vector<8xf32>
    %50 = vector.multi_reduction <add>, %49, %cst_58 [0] : vector<256x8xf32> to vector<8xf32>
    %51 = vector.shape_cast %50 : vector<8xf32> to vector<1x8xf32>
    %52 = tpu.concatenate %48, %51 in 0 : vector<1x8xf32>, vector<1x8xf32> -> vector<2x8xf32>
    %c0_59 = arith.constant 0 : index
    %c0_60 = arith.constant 0 : index
    %c0_61 = arith.constant 0 : index
    %53 = vector.load %arg6[%c0_59, %c0_60, %c0_61] : memref<1x2x8xf32, #tpu.memory_space<vmem>>, vector<1x2x8xf32>
    %54 = vector.shape_cast %53 : vector<1x2x8xf32> to vector<2x8xf32>
    %55 = vector.shape_cast %52 : vector<2x8xf32> to vector<1x2x8xf32>
    tpu.vector_store %arg6[%c0_59, %c0_60, %c0_61], %55 {strides = array<i32>} : memref<1x2x8xf32, #tpu.memory_space<vmem>>, vector<1x2x8xf32>,
    return
  }
  func.func @transform_0(%arg0: i32) -> (i32, i32, i32, i32) {
    %c0_i32 = arith.constant 0 : i32
    %c0_i32_0 = arith.constant 0 : i32
    %c0_i32_1 = arith.constant 0 : i32
    %c0_i32_2 = arith.constant 0 : i32
    return %arg0, %c0_i32, %c0_i32_0, %c0_i32_1 : i32, i32, i32, i32
  }
  func.func @transform_1(%arg0: i32) -> (i32, i32) {
    %c0_i32 = arith.constant 0 : i32
    %c0_i32_0 = arith.constant 0 : i32
    %c0_i32_1 = arith.constant 0 : i32
    return %c0_i32, %c0_i32_0 : i32, i32
  }
  func.func @transform_2(%arg0: i32) -> (i32, i32) {
    %c0_i32 = arith.constant 0 : i32
    %c0_i32_0 = arith.constant 0 : i32
    %c0_i32_1 = arith.constant 0 : i32
    return %c0_i32, %c0_i32_0 : i32, i32
  }
  func.func @transform_3(%arg0: i32) -> (i32, i32) {
    %c0_i32 = arith.constant 0 : i32
    %c0_i32_0 = arith.constant 0 : i32
    %c0_i32_1 = arith.constant 0 : i32
    return %c0_i32, %c0_i32_0 : i32, i32
  }
  func.func @transform_4(%arg0: i32) -> (i32, i32, i32, i32) {
    %c0_i32 = arith.constant 0 : i32
    %c0_i32_0 = arith.constant 0 : i32
    %c0_i32_1 = arith.constant 0 : i32
    %c0_i32_2 = arith.constant 0 : i32
    return %arg0, %c0_i32, %c0_i32_0, %c0_i32_1 : i32, i32, i32, i32
  }
  func.func @transform_5(%arg0: i32) -> (i32, i32, i32) {
    %c0_i32 = arith.constant 0 : i32
    %c0_i32_0 = arith.constant 0 : i32
    %c0_i32_1 = arith.constant 0 : i32
    return %arg0, %c0_i32, %c0_i32_0 : i32, i32, i32
  }
}

module attributes {stable_mosaic.version = 11 : i64} {
  func.func @_finalize_kernel(%arg0: i32, %arg1: memref<1x16x16x8xf32, #tpu.memory_space<vmem>>, %arg2: memref<1x16x16x4xf32, #tpu.memory_space<vmem>>, %arg3: memref<1x8xf32, #tpu.memory_space<vmem>>, %arg4: memref<1x8xf32, #tpu.memory_space<vmem>>, %arg5: memref<4x8xbf16, #tpu.memory_space<vmem>>, %arg6: memref<1x8xf32, #tpu.memory_space<vmem>>, %arg7: memref<1x16x16x8xf32, #tpu.memory_space<vmem>>) attributes {dimension_semantics = [#tpu.dimension_semantics<parallel>], iteration_bounds = array<i64: 2>, scalar_prefetch = 0 : i64, scratch_operands = 0 : i64, tpu.core_type = #tpu.core_type<tc>, window_params = [{transform_indices = @transform_0, window_bounds = array<i64: 1, 16, 16, 8>}, {transform_indices = @transform_1, window_bounds = array<i64: 1, 16, 16, 4>}, {pipeline_mode = #tpu.pipeline_mode<synchronous>, transform_indices = @transform_2, window_bounds = array<i64: 1, 8>}, {pipeline_mode = #tpu.pipeline_mode<synchronous>, transform_indices = @transform_3, window_bounds = array<i64: 1, 8>}, {pipeline_mode = #tpu.pipeline_mode<synchronous>, transform_indices = @transform_4, window_bounds = array<i64: 4, 8>}, {pipeline_mode = #tpu.pipeline_mode<synchronous>, transform_indices = @transform_5, window_bounds = array<i64: 1, 8>}, {transform_indices = @transform_6, window_bounds = array<i64: 1, 16, 16, 8>}]} {
    %c0 = arith.constant 0 : index
    %c0_0 = arith.constant 0 : index
    %c0_1 = arith.constant 0 : index
    %c0_2 = arith.constant 0 : index
    %0 = vector.load %arg1[%c0, %c0_0, %c0_1, %c0_2] : memref<1x16x16x8xf32, #tpu.memory_space<vmem>>, vector<1x16x16x8xf32>
    %1 = vector.shape_cast %0 : vector<1x16x16x8xf32> to vector<16x16x8xf32>
    %c0_3 = arith.constant 0 : index
    %c0_4 = arith.constant 0 : index
    %2 = vector.load %arg3[%c0_3, %c0_4] : memref<1x8xf32, #tpu.memory_space<vmem>>, vector<1x8xf32>
    %3 = vector.shape_cast %2 : vector<1x8xf32> to vector<1x1x8xf32>
    %4 = vector.broadcast %3 : vector<1x1x8xf32> to vector<16x16x8xf32>
    %5 = arith.mulf %1, %4 : vector<16x16x8xf32>
    %c0_5 = arith.constant 0 : index
    %c0_6 = arith.constant 0 : index
    %6 = vector.load %arg4[%c0_5, %c0_6] : memref<1x8xf32, #tpu.memory_space<vmem>>, vector<1x8xf32>
    %7 = vector.shape_cast %6 : vector<1x8xf32> to vector<1x1x8xf32>
    %8 = vector.broadcast %7 : vector<1x1x8xf32> to vector<16x16x8xf32>
    %9 = arith.addf %5, %8 : vector<16x16x8xf32>
    %c0_7 = arith.constant 0 : index
    %c0_8 = arith.constant 0 : index
    %c0_9 = arith.constant 0 : index
    %c0_10 = arith.constant 0 : index
    %10 = vector.load %arg2[%c0_7, %c0_8, %c0_9, %c0_10] : memref<1x16x16x4xf32, #tpu.memory_space<vmem>>, vector<1x16x16x4xf32>
    %11 = vector.shape_cast %10 : vector<1x16x16x4xf32> to vector<16x16x4xf32>
    %12 = vector.shape_cast %11 : vector<16x16x4xf32> to vector<256x4xf32>
    %13 = arith.truncf %12 : vector<256x4xf32> to vector<256x4xbf16>
    %c0_11 = arith.constant 0 : index
    %c0_12 = arith.constant 0 : index
    %14 = vector.load %arg5[%c0_11, %c0_12] : memref<4x8xbf16, #tpu.memory_space<vmem>>, vector<4x8xbf16>
    %cst = arith.constant dense<0.000000e+00> : vector<256x8xf32>
    %15 = tpu.matmul %13, %14, %cst {dimension_numbers = #tpu.dot_dimension_numbers<[1], [0], [0], [1], [0, 0, 1, 1], [], []>} : vector<256x4xbf16>, vector<4x8xbf16>, vector<256x8xf32> -> vector<256x8xf32>
    %c0_13 = arith.constant 0 : index
    %c0_14 = arith.constant 0 : index
    %16 = vector.load %arg6[%c0_13, %c0_14] : memref<1x8xf32, #tpu.memory_space<vmem>>, vector<1x8xf32>
    %17 = vector.broadcast %16 : vector<1x8xf32> to vector<256x8xf32>
    %18 = arith.addf %15, %17 : vector<256x8xf32>
    %19 = vector.shape_cast %18 : vector<256x8xf32> to vector<16x16x8xf32>
    %20 = arith.addf %9, %19 : vector<16x16x8xf32>
    %cst_15 = arith.constant 0.000000e+00 : f32
    %21 = vector.broadcast %cst_15 : f32 to vector<16x16x8xf32>
    %22 = arith.maximumf %20, %21 : vector<16x16x8xf32>
    %c0_16 = arith.constant 0 : index
    %c0_17 = arith.constant 0 : index
    %c0_18 = arith.constant 0 : index
    %c0_19 = arith.constant 0 : index
    %23 = vector.load %arg7[%c0_16, %c0_17, %c0_18, %c0_19] : memref<1x16x16x8xf32, #tpu.memory_space<vmem>>, vector<1x16x16x8xf32>
    %24 = vector.shape_cast %23 : vector<1x16x16x8xf32> to vector<16x16x8xf32>
    %25 = vector.shape_cast %22 : vector<16x16x8xf32> to vector<1x16x16x8xf32>
    tpu.vector_store %arg7[%c0_16, %c0_17, %c0_18, %c0_19], %25 {strides = array<i32>} : memref<1x16x16x8xf32, #tpu.memory_space<vmem>>, vector<1x16x16x8xf32>,
    return
  }
  func.func @transform_0(%arg0: i32) -> (i32, i32, i32, i32) {
    %c0_i32 = arith.constant 0 : i32
    %c0_i32_0 = arith.constant 0 : i32
    %c0_i32_1 = arith.constant 0 : i32
    %c0_i32_2 = arith.constant 0 : i32
    return %arg0, %c0_i32, %c0_i32_0, %c0_i32_1 : i32, i32, i32, i32
  }
  func.func @transform_1(%arg0: i32) -> (i32, i32, i32, i32) {
    %c0_i32 = arith.constant 0 : i32
    %c0_i32_0 = arith.constant 0 : i32
    %c0_i32_1 = arith.constant 0 : i32
    %c0_i32_2 = arith.constant 0 : i32
    return %arg0, %c0_i32, %c0_i32_0, %c0_i32_1 : i32, i32, i32, i32
  }
  func.func @transform_2(%arg0: i32) -> (i32, i32) {
    %c0_i32 = arith.constant 0 : i32
    %c0_i32_0 = arith.constant 0 : i32
    %c0_i32_1 = arith.constant 0 : i32
    return %c0_i32, %c0_i32_0 : i32, i32
  }
  func.func @transform_3(%arg0: i32) -> (i32, i32) {
    %c0_i32 = arith.constant 0 : i32
    %c0_i32_0 = arith.constant 0 : i32
    %c0_i32_1 = arith.constant 0 : i32
    return %c0_i32, %c0_i32_0 : i32, i32
  }
  func.func @transform_4(%arg0: i32) -> (i32, i32) {
    %c0_i32 = arith.constant 0 : i32
    %c0_i32_0 = arith.constant 0 : i32
    %c0_i32_1 = arith.constant 0 : i32
    return %c0_i32, %c0_i32_0 : i32, i32
  }
  func.func @transform_5(%arg0: i32) -> (i32, i32) {
    %c0_i32 = arith.constant 0 : i32
    %c0_i32_0 = arith.constant 0 : i32
    %c0_i32_1 = arith.constant 0 : i32
    return %c0_i32, %c0_i32_0 : i32, i32
  }
  func.func @transform_6(%arg0: i32) -> (i32, i32, i32, i32) {
    %c0_i32 = arith.constant 0 : i32
    %c0_i32_0 = arith.constant 0 : i32
    %c0_i32_1 = arith.constant 0 : i32
    %c0_i32_2 = arith.constant 0 : i32
    return %arg0, %c0_i32, %c0_i32_0, %c0_i32_1 : i32, i32, i32, i32
  }
}

</mosaic_0001>

<bundles_post_ra>
// kernel: double_conv_resid_block.5
= control target key start
LH: loop header
LB: loop body
LE: loop exit
PB: predicated region body
PF: predicated region fallthrough
CT: control target
= control target key end

     0   :  { %s825_s21 = smov 0   ;;  %s1120_s0 = inlined_call_operand.vmem [shape: f32[2,16,16,8], index: 0, kind: input, shape index: {}]   ;;  %s1121_s1 = inlined_call_operand.vmem [shape: f32[2,16,16,4], index: 1, kind: input, shape index: {}]   ;;  %s1122_s2 = inlined_call_operand.vmem [shape: f32[1,8], index: 2, kind: input, shape index: {}]   ;;  %s1123_s3 = inlined_call_operand.vmem [shape: f32[1,8], index: 3, kind: input, shape index: {}]   ;;  %s1124_s4 = inlined_call_operand.vmem [shape: bf16[4,8], index: 4, kind: input, shape index: {}]   ;;  %s1125_s5 = inlined_call_operand.vmem [shape: f32[1,8], index: 5, kind: input, shape index: {}]   ;;  %s1126_s6 = inlined_call_operand.vmem [shape: f32[2,16,16,8], index: 6, kind: output, shape index: {}]  }
   0x1 LB: > { %s736_s22 = sadd.s32 4294967295, %s788_s21   ;;  %p740_p0 = scmp.ge.s32.totalorder %s788_s21, 1  ;;  %s788_s21 = sphi %s825_s21, %s16_s21  }
   0x2   : > { %p222_p1 = scmp.lt.s32.totalorder %s788_s21, 3 }
   0x4   : > { %p223_p2 = pnand %p740_p0, %p222_p1 }
   0x5   : > { %p257_p3 = scmp.lt.s32.totalorder (!%p223_p2), %s736_s22, 1 }
   0x6   : > { %226 = sbr.rel (%p223_p2) target bundleno = 215 (0xd7), region = 44 }
   0xb   : > { %v425_v0 = vld [vmem:[%s1124_s4] sm:$0x3]  ;;  %vm479_vm0 = vcmask 1041408   ;;  %s1128_s22 = smov (!%p257_p3, %s736_s22), 1  ;;  %vm430_vm1 = vcmask 31744   ;;  %vm636_vm2 = vcmask 64512  }
   0xc   : > { %v481_v1 = vsel %vm479_vm0, %v425_v0, 0  ;;  %s836_s25 = sshll.u32 %s1128_s22, 8  ;;  %v901_v50 = vld [vmem:[%s1122_s2] ss:$0 sm:$0xff] }
   0xd   : > { %490 = vmatpush.bf16.msra.mxu0 %v481_v1  ;;  %768 = vmatpush.bf16.msra.mxu1 %v481_v1  ;;  %s842_s28 = scalar_lea.vmem %s1121_s1, %s836_s25  ;;  %s896_s7 = scalar_lea.vmem %s1120_s0, %s836_s25  ;;  %v909_v54 = vld [vmem:[%s1123_s3] ss:$0 sm:$0xff] }
   0xe   : > { %769 = vmatpush.bf16.msra.mxu2 %v481_v1  ;;  %770 = vmatpush.bf16.msra.mxu3 %v481_v1  ;;  %v377_v2 = vld [vmem:[%s842_s28] sm:$0xff]  ;;  %v378_v3 = vld [vmem:[%s842_s28 + $0x8] sm:$0xff]  ;;  %v379_v14 = vld [vmem:[%s842_s28 + $0x10] sm:$0xff]  ;;  %s932_s16 = scalar_lea.vmem %s1126_s6, %s836_s25 }
   0xf   : > { %v385_v4 = vld [vmem:[%s842_s28 + $0x40] sm:$0xff]  ;;  %v409_v5 = vpack.c.bf16 %v378_v3, %v377_v2  ;;  %v386_v6 = vld [vmem:[%s842_s28 + $0x48] sm:$0xff]  ;;  %v380_v15 = vld [vmem:[%s842_s28 + $0x18] sm:$0xff] }
  0x10   : > { %v393_v7 = vld [vmem:[%s842_s28 + $0x80] sm:$0xff]  ;;  %v394_v8 = vld [vmem:[%s842_s28 + $0x88] sm:$0xff]  ;;  %v413_v9 = vpack.c.bf16 %v386_v6, %v385_v4  ;;  %v387_v16 = vld [vmem:[%s842_s28 + $0x50] sm:$0xff]  ;;  %v410_v22 = vpack.c.bf16 %v380_v15, %v379_v14 }
  0x11   : > { %v417_v10 = vpack.c.bf16 %v394_v8, %v393_v7  ;;  %v401_v11 = vld [vmem:[%s842_s28 + $0xc0] sm:$0xff]  ;;  %v402_v12 = vld [vmem:[%s842_s28 + $0xc8] sm:$0xff]  ;;  %747 = vmatmul.msk.bf16.vlgmr.msra.gmra.mxu0 %vm430_vm1, %v409_v5  ;;  %v388_v17 = vld [vmem:[%s842_s28 + $0x58] sm:$0xff] }
  0x12   : > { %v421_v13 = vpack.c.bf16 %v402_v12, %v401_v11  ;;  %751 = vmatmul.msk.bf16.vlgmr.msra.gmra.mxu1 %vm430_vm1, %v413_v9  ;;  %v395_v18 = vld [vmem:[%s842_s28 + $0x90] sm:$0xff]  ;;  %v396_v19 = vld [vmem:[%s842_s28 + $0x98] sm:$0xff]  ;;  %v414_v23 = vpack.c.bf16 %v388_v17, %v387_v16  ;;  %v381_v26 = vld [vmem:[%s842_s28 + $0x20] sm:$0xff] }
  0x13   : > { %755 = vmatmul.msk.bf16.vlgmr.msra.gmra.mxu2 %vm430_vm1, %v417_v10  ;;  %v403_v20 = vld [vmem:[%s842_s28 + $0xd0] sm:$0xff]  ;;  %v404_v21 = vld [vmem:[%s842_s28 + $0xd8] sm:$0xff]  ;;  %v418_v24 = vpack.c.bf16 %v396_v19, %v395_v18  ;;  %v382_v27 = vld [vmem:[%s842_s28 + $0x28] sm:$0xff] }
  0x14   : > { %759 = vmatmul.msk.bf16.vlgmr.msra.gmra.mxu3 %vm430_vm1, %v421_v13  ;;  %v422_v25 = vpack.c.bf16 %v404_v21, %v403_v20  ;;  %v389_v28 = vld [vmem:[%s842_s28 + $0x60] sm:$0xff]  ;;  %v390_v29 = vld [vmem:[%s842_s28 + $0x68] sm:$0xff]  ;;  %v411_v34 = vpack.c.bf16 %v382_v27, %v381_v26  ;;  %v383_v38 = vld [vmem:[%s842_s28 + $0x30] sm:$0xff] }
  0x15   : > { %v397_v30 = vld [vmem:[%s842_s28 + $0xa0] sm:$0xff]  ;;  %v398_v31 = vld [vmem:[%s842_s28 + $0xa8] sm:$0xff]  ;;  %v415_v35 = vpack.c.bf16 %v390_v29, %v389_v28  ;;  %v384_v39 = vld [vmem:[%s842_s28 + $0x38] sm:$0xff] }
  0x16   : > { %v405_v32 = vld [vmem:[%s842_s28 + $0xe0] sm:$0xff]  ;;  %v406_v33 = vld [vmem:[%s842_s28 + $0xe8] sm:$0xff]  ;;  %v419_v36 = vpack.c.bf16 %v398_v31, %v397_v30  ;;  %v391_v40 = vld [vmem:[%s842_s28 + $0x70] sm:$0xff]  ;;  %v412_v46 = vpack.c.bf16 %v384_v39, %v383_v38 }
  0x17   : > { %v423_v37 = vpack.c.bf16 %v406_v33, %v405_v32  ;;  %v392_v41 = vld [vmem:[%s842_s28 + $0x78] sm:$0xff]  ;;  %v399_v42 = vld [vmem:[%s842_s28 + $0xb0] sm:$0xff]  ;;  %v273_v51 = vld [vmem:[%s896_s7] sm:$0xff] }
  0x18   : > { %v400_v43 = vld [vmem:[%s842_s28 + $0xb8] sm:$0xff]  ;;  %v407_v44 = vld [vmem:[%s842_s28 + $0xf0] sm:$0xff]  ;;  %v416_v47 = vpack.c.bf16 %v392_v41, %v391_v40  ;;  %v281_v52 = vld [vmem:[%s896_s7 + $0x40] sm:$0xff]  ;;  %v309_v53 = vmul.f32 %v901_v50, %v273_v51 }
  0x19   : > { %v408_v45 = vld [vmem:[%s842_s28 + $0xf8] sm:$0xff]  ;;  %v420_v48 = vpack.c.bf16 %v400_v43, %v399_v42  ;;  %v317_v55 = vmul.f32 %v901_v50, %v281_v52  ;;  %v915_v56 = vld [vmem:[%s1125_s5] ss:$0 sm:$0xff]  ;;  %v274_v62 = vld [vmem:[%s896_s7 + $0x8] sm:$0xff] }
  0x1a   : > { %v424_v49 = vpack.c.bf16 %v408_v45, %v407_v44  ;;  %v345_v57 = vadd.f32 %v909_v54, %v309_v53  ;;  %v289_v58 = vld [vmem:[%s896_s7 + $0x80] sm:$0xff]  ;;  %v282_v1 = vld [vmem:[%s896_s7 + $0x48] sm:$0xff]  ;;  %v310_v6 = vmul.f32 %v901_v50, %v274_v62  ;;  %v275_v21 = vld [vmem:[%s896_s7 + $0x10] sm:$0xff] }
  0x1b   : > { %v353_v60 = vadd.f32 %v909_v54, %v317_v55  ;;  %v297_v61 = vld [vmem:[%s896_s7 + $0xc0] sm:$0xff]  ;;  %v325_v3 = vmul.f32 %v901_v50, %v289_v58  ;;  %v318_v8 = vmul.f32 %v901_v50, %v282_v1  ;;  %v290_v15 = vld [vmem:[%s896_s7 + $0x88] sm:$0xff]  ;;  %v311_v32 = vmul.f32 %v901_v50, %v275_v21  ;;  %v291_v43 = vld [vmem:[%s896_s7 + $0x90] sm:$0xff] }
  0x1c   : > { %v333_v5 = vmul.f32 %v901_v50, %v297_v61  ;;  %v346_v14 = vadd.f32 %v909_v54, %v310_v6  ;;  %v298_v20 = vld [vmem:[%s896_s7 + $0xc8] sm:$0xff]  ;;  %v326_v28 = vmul.f32 %v901_v50, %v290_v15  ;;  %v284_v55 = vld [vmem:[%s896_s7 + $0x58] sm:$0xff] }
  0x1d   : > { %v361_v11 = vadd.f32 %v909_v54, %v325_v3  ;;  %v354_v19 = vadd.f32 %v909_v54, %v318_v8  ;;  %v334_v31 = vmul.f32 %v901_v50, %v298_v20  ;;  %v347_v42 = vadd.f32 %v909_v54, %v311_v32  ;;  %v300_v15 = vld [vmem:[%s896_s7 + $0xd8] sm:$0xff]  ;;  %v285_v20 = vld [vmem:[%s896_s7 + $0x60] sm:$0xff] }
  0x1e   : > { %v369_v13 = vadd.f32 %v909_v54, %v333_v5  ;;  %v362_v39 = vadd.f32 %v909_v54, %v326_v28 }
  0x1f   : > { %v370_v41 = vadd.f32 %v909_v54, %v334_v31 }
  0x21   : > { %748 = vmatmul.msk.bf16.gmra.mxu0 %vm430_vm1, %v410_v22 }
  0x22   : > { %752 = vmatmul.msk.bf16.gmra.mxu1 %vm430_vm1, %v414_v23 }
  0x23   : > { %756 = vmatmul.msk.bf16.gmra.mxu2 %vm430_vm1, %v418_v24 }
  0x24   : > { %760 = vmatmul.msk.bf16.gmra.mxu3 %vm430_vm1, %v422_v25  ;;  %v283_v25 = vld [vmem:[%s896_s7 + $0x50] sm:$0xff] }
  0x31   : > { %749 = vmatmul.msk.bf16.gmra.mxu0 %vm430_vm1, %v411_v34 }
  0x32   : > { %753 = vmatmul.msk.bf16.gmra.mxu1 %vm430_vm1, %v415_v35  ;;  %v319_v35 = vmul.f32 %v901_v50, %v283_v25 }
  0x33   : > { %757 = vmatmul.msk.bf16.gmra.mxu2 %vm430_vm1, %v419_v36 }
  0x34   : > { %761 = vmatmul.msk.bf16.gmra.mxu3 %vm430_vm1, %v423_v37 }
  0x41   : > { %750 = vmatmul.msk.bf16.gmra.mxu0 %vm430_vm1, %v412_v46 }
  0x42   : > { %754 = vmatmul.msk.bf16.gmra.mxu1 %vm430_vm1, %v416_v47  ;;  %v355_v47 = vadd.f32 %v909_v54, %v319_v35  ;;  %v296_v35 = vld [vmem:[%s896_s7 + $0xb8] sm:$0xff] }
  0x43   : > { %758 = vmatmul.msk.bf16.gmra.mxu2 %vm430_vm1, %v420_v48  ;;  %v299_v48 = vld [vmem:[%s896_s7 + $0xd0] sm:$0xff] }
  0x44   : > { %762 = vmatmul.msk.bf16.gmra.mxu3 %vm430_vm1, %v424_v49  ;;  %v276_v49 = vld [vmem:[%s896_s7 + $0x18] sm:$0xff]  ;;  %v335_v62 = vmul.f32 %v901_v50, %v299_v48  ;;  %v278_v48 = vld [vmem:[%s896_s7 + $0x28] sm:$0xff] }
  0x46   : > { %v371_v8 = vadd.f32 %v909_v54, %v335_v62 }
  0x8e   : > { %v492_v59 = vpop.f32.mrf.mxu0 }
  0x8f   : > { %v493_v63 = vadd.f32 %v915_v56, %v492_v59  ;;  %v512_v0 = vpop.f32.mrf.mxu1  ;;  %v327_v59 = vmul.f32 %v901_v50, %v291_v43 }
  0x90   : > { %v513_v2 = vadd.f32 %v915_v56, %v512_v0 }
  0x91   : > { %v572_v4 = vadd.f32 %v493_v63, %v345_v57  ;;  %v312_v63 = vmul.f32 %v901_v50, %v276_v49  ;;  %v363_v6 = vadd.f32 %v909_v54, %v327_v59 }
  0x92   : > { %v580_v7 = vadd.f32 %v513_v2, %v353_v60  ;;  %v320_v2 = vmul.f32 %v901_v50, %v284_v55 }
  0x93   : > { %v604_v9 = vmax.f32 %v572_v4, 0.0 }
  0x94   : > { %v612_v10 = vmax.f32 %v580_v7, 0.0 }
  0x95   : > { %637 = vst.msk [vmem:[%s932_s16] sm:$0xff] %vm636_vm2, %v604_v9  ;;  %v348_v9 = vadd.f32 %v909_v54, %v312_v63 }
  0x96   : > { %v532_v12 = vpop.f32.mrf.mxu2  ;;  %645 = vst.msk [vmem:[%s932_s16 + $0x40] sm:$0xff] %vm636_vm2, %v612_v10  ;;  %v494_v18 = vpop.f32.mrf.mxu0  ;;  %v292_v10 = vld [vmem:[%s896_s7 + $0x98] sm:$0xff] }
  0x97   : > { %v533_v16 = vadd.f32 %v915_v56, %v532_v12  ;;  %v552_v17 = vpop.f32.mrf.mxu3  ;;  %v495_v23 = vadd.f32 %v915_v56, %v494_v18  ;;  %v514_v24 = vpop.f32.mrf.mxu1 }
  0x98   : > { %v553_v22 = vadd.f32 %v915_v56, %v552_v17  ;;  %v515_v27 = vadd.f32 %v915_v56, %v514_v24 }
  0x99   : > { %v588_v26 = vadd.f32 %v533_v16, %v361_v11  ;;  %v573_v30 = vadd.f32 %v495_v23, %v346_v14  ;;  %v356_v14 = vadd.f32 %v909_v54, %v320_v2  ;;  %v277_v16 = vld [vmem:[%s896_s7 + $0x20] sm:$0xff]  ;;  %v328_v23 = vmul.f32 %v901_v50, %v292_v10 }
  0x9a   : > { %v596_v29 = vadd.f32 %v553_v22, %v369_v13  ;;  %v581_v34 = vadd.f32 %v515_v27, %v354_v19  ;;  %v313_v27 = vmul.f32 %v901_v50, %v277_v16  ;;  %v302_v16 = vld [vmem:[%s896_s7 + $0xe8] sm:$0xff] }
  0x9b   : > { %v620_v33 = vmax.f32 %v588_v26, 0.0  ;;  %v605_v37 = vmax.f32 %v573_v30, 0.0  ;;  %v336_v26 = vmul.f32 %v901_v50, %v300_v15  ;;  %v321_v30 = vmul.f32 %v901_v50, %v285_v20 }
  0x9c   : > { %v628_v36 = vmax.f32 %v596_v29, 0.0  ;;  %v613_v38 = vmax.f32 %v581_v34, 0.0  ;;  %v364_v34 = vadd.f32 %v909_v54, %v328_v23 }
  0x9d   : > { %653 = vst.msk [vmem:[%s932_s16 + $0x80] sm:$0xff] %vm636_vm2, %v620_v33 }
  0x9e   : > { %661 = vst.msk [vmem:[%s932_s16 + $0xc0] sm:$0xff] %vm636_vm2, %v628_v36  ;;  %v534_v40 = vpop.f32.mrf.mxu2  ;;  %v497_v46 = vpop.f32.mrf.mxu0  ;;  %v304_v36 = vld [vmem:[%s896_s7 + $0xf8] sm:$0xff] }
  0x9f   : > { %638 = vst.msk [vmem:[%s932_s16 + $0x8] sm:$0xff] %vm636_vm2, %v605_v37  ;;  %v535_v44 = vadd.f32 %v915_v56, %v534_v40  ;;  %v554_v45 = vpop.f32.mrf.mxu3  ;;  %v498_v52 = vadd.f32 %v915_v56, %v497_v46  ;;  %v517_v53 = vpop.f32.mrf.mxu1  ;;  %v293_v40 = vld [vmem:[%s896_s7 + $0xa0] sm:$0xff]  ;;  %v357_v46 = vadd.f32 %v909_v54, %v321_v30 }
  0xa0   : > { %646 = vst.msk [vmem:[%s932_s16 + $0x48] sm:$0xff] %vm636_vm2, %v613_v38  ;;  %v555_v51 = vadd.f32 %v915_v56, %v554_v45  ;;  %v518_v58 = vadd.f32 %v915_v56, %v517_v53  ;;  %v372_v38 = vadd.f32 %v909_v54, %v336_v26  ;;  %v286_v53 = vld [vmem:[%s896_s7 + $0x68] sm:$0xff] }
  0xa1   : > { %v589_v57 = vadd.f32 %v535_v44, %v362_v39  ;;  %v574_v61 = vadd.f32 %v498_v52, %v347_v42  ;;  %v349_v39 = vadd.f32 %v909_v54, %v313_v27  ;;  %v340_v42 = vmul.f32 %v901_v50, %v304_v36 }
  0xa2   : > { %v597_v60 = vadd.f32 %v555_v51, %v370_v41  ;;  %v582_v1 = vadd.f32 %v518_v58, %v355_v47  ;;  %v332_v41 = vmul.f32 %v901_v50, %v296_v35  ;;  %v301_v47 = vld [vmem:[%s896_s7 + $0xe0] sm:$0xff]  ;;  %v338_v27 = vmul.f32 %v901_v50, %v302_v16 }
  0xa3   : > { %v621_v0 = vmax.f32 %v589_v57, 0.0  ;;  %v606_v4 = vmax.f32 %v574_v61, 0.0  ;;  %v1030_v57 = vadd.f32 %v909_v54, %v340_v42  ;;  %v337_v63 = vmul.f32 %v901_v50, %v301_v47 }
  0xa4   : > { %v629_v3 = vmax.f32 %v597_v60, 0.0  ;;  %v614_v5 = vmax.f32 %v582_v1, 0.0  ;;  %v1027_v55 = vadd.f32 %v909_v54, %v332_v41  ;;  %v329_v60 = vmul.f32 %v901_v50, %v293_v40 }
  0xa5   : > { %654 = vst.msk [vmem:[%s932_s16 + $0x88] sm:$0xff] %vm636_vm2, %v621_v0  ;;  %v314_v0 = vmul.f32 %v901_v50, %v278_v48 }
  0xa6   : > { %662 = vst.msk [vmem:[%s932_s16 + $0xc8] sm:$0xff] %vm636_vm2, %v629_v3  ;;  %v537_v7 = vpop.f32.mrf.mxu2  ;;  %v499_v13 = vpop.f32.mrf.mxu0  ;;  %v322_v3 = vmul.f32 %v901_v50, %v286_v53 }
  0xa7   : > { %639 = vst.msk [vmem:[%s932_s16 + $0x10] sm:$0xff] %vm636_vm2, %v606_v4  ;;  %v538_v11 = vadd.f32 %v915_v56, %v537_v7  ;;  %v557_v12 = vpop.f32.mrf.mxu3  ;;  %v500_v18 = vadd.f32 %v915_v56, %v499_v13  ;;  %v519_v19 = vpop.f32.mrf.mxu1  ;;  %v365_v7 = vadd.f32 %v909_v54, %v329_v60  ;;  %v350_v10 = vadd.f32 %v909_v54, %v314_v0 }
  0xa8   : > { %647 = vst.msk [vmem:[%s932_s16 + $0x50] sm:$0xff] %vm636_vm2, %v614_v5  ;;  %v558_v17 = vadd.f32 %v915_v56, %v557_v12  ;;  %v520_v22 = vadd.f32 %v915_v56, %v519_v19  ;;  %v358_v15 = vadd.f32 %v909_v54, %v322_v3 }
  0xa9   : > { %v590_v21 = vadd.f32 %v538_v11, %v363_v6  ;;  %v575_v25 = vadd.f32 %v500_v18, %v348_v9  ;;  %v373_v9 = vadd.f32 %v909_v54, %v337_v63  ;;  %v294_v11 = vld [vmem:[%s896_s7 + $0xa8] sm:$0xff] }
  0xaa   : > { %v598_v24 = vadd.f32 %v558_v17, %v371_v8  ;;  %v583_v29 = vadd.f32 %v520_v22, %v356_v14  ;;  %v279_v17 = vld [vmem:[%s896_s7 + $0x30] sm:$0xff] }
  0xab   : > { %v622_v28 = vmax.f32 %v590_v21, 0.0  ;;  %v607_v32 = vmax.f32 %v575_v25, 0.0  ;;  %v287_v21 = vld [vmem:[%s896_s7 + $0x70] sm:$0xff] }
  0xac   : > { %v630_v31 = vmax.f32 %v598_v24, 0.0  ;;  %v615_v33 = vmax.f32 %v583_v29, 0.0  ;;  %v330_v24 = vmul.f32 %v901_v50, %v294_v11 }
  0xad   : > { %655 = vst.msk [vmem:[%s932_s16 + $0x90] sm:$0xff] %vm636_vm2, %v622_v28  ;;  %v315_v28 = vmul.f32 %v901_v50, %v279_v17 }
  0xae   : > { %663 = vst.msk [vmem:[%s932_s16 + $0xd0] sm:$0xff] %vm636_vm2, %v630_v31  ;;  %v539_v37 = vpop.f32.mrf.mxu2  ;;  %v502_v45 = vpop.f32.mrf.mxu0  ;;  %v323_v31 = vmul.f32 %v901_v50, %v287_v21  ;;  %v366_v35 = vadd.f32 %v909_v54, %v330_v24 }
  0xaf   : > { %640 = vst.msk [vmem:[%s932_s16 + $0x18] sm:$0xff] %vm636_vm2, %v607_v32  ;;  %v540_v43 = vadd.f32 %v915_v56, %v539_v37  ;;  %v559_v44 = vpop.f32.mrf.mxu3  ;;  %v503_v51 = vadd.f32 %v915_v56, %v502_v45  ;;  %v522_v52 = vpop.f32.mrf.mxu1  ;;  %v374_v37 = vadd.f32 %v909_v54, %v338_v27  ;;  %v280_v45 = vld [vmem:[%s896_s7 + $0x38] sm:$0xff] }
  0xb0   : > { %648 = vst.msk [vmem:[%s932_s16 + $0x58] sm:$0xff] %vm636_vm2, %v615_v33  ;;  %v560_v49 = vadd.f32 %v915_v56, %v559_v44  ;;  %v523_v59 = vadd.f32 %v915_v56, %v522_v52  ;;  %v303_v44 = vld [vmem:[%s896_s7 + $0xf0] sm:$0xff] }
  0xb1   : > { %v591_v58 = vadd.f32 %v540_v43, %v364_v34  ;;  %v576_v62 = vadd.f32 %v503_v51, %v349_v39  ;;  %v295_v39 = vld [vmem:[%s896_s7 + $0xb0] sm:$0xff]  ;;  %v359_v43 = vadd.f32 %v909_v54, %v323_v31  ;;  %v339_v60 = vmul.f32 %v901_v50, %v303_v44 }
  0xb2   : > { %v599_v61 = vadd.f32 %v560_v49, %v372_v38  ;;  %v584_v2 = vadd.f32 %v523_v59, %v357_v46  ;;  %v351_v38 = vadd.f32 %v909_v54, %v315_v28  ;;  %v288_v49 = vld [vmem:[%s896_s7 + $0x78] sm:$0xff]  ;;  %v331_v53 = vmul.f32 %v901_v50, %v295_v39 }
  0xb3   : > { %v623_v1 = vmax.f32 %v591_v58, 0.0  ;;  %v608_v5 = vmax.f32 %v576_v62, 0.0  ;;  %v324_v0 = vmul.f32 %v901_v50, %v288_v49 }
  0xb4   : > { %v631_v4 = vmax.f32 %v599_v61, 0.0  ;;  %v616_v6 = vmax.f32 %v584_v2, 0.0  ;;  %v316_v61 = vmul.f32 %v901_v50, %v280_v45 }
  0xb5   : > { %656 = vst.msk [vmem:[%s932_s16 + $0x98] sm:$0xff] %vm636_vm2, %v623_v1 }
  0xb6   : > { %664 = vst.msk [vmem:[%s932_s16 + $0xd8] sm:$0xff] %vm636_vm2, %v631_v4  ;;  %v542_v8 = vpop.f32.mrf.mxu2  ;;  %v504_v14 = vpop.f32.mrf.mxu0  ;;  %v367_v4 = vadd.f32 %v909_v54, %v331_v53 }
  0xb7   : > { %641 = vst.msk [vmem:[%s932_s16 + $0x20] sm:$0xff] %vm636_vm2, %v608_v5  ;;  %v543_v12 = vadd.f32 %v915_v56, %v542_v8  ;;  %v562_v13 = vpop.f32.mrf.mxu3  ;;  %v505_v19 = vadd.f32 %v915_v56, %v504_v14  ;;  %v524_v20 = vpop.f32.mrf.mxu1 }
  0xb8   : > { %649 = vst.msk [vmem:[%s932_s16 + $0x60] sm:$0xff] %vm636_vm2, %v616_v6  ;;  %v563_v18 = vadd.f32 %v915_v56, %v562_v13  ;;  %v525_v23 = vadd.f32 %v915_v56, %v524_v20  ;;  %v375_v6 = vadd.f32 %v909_v54, %v339_v60 }
  0xb9   : > { %v592_v22 = vadd.f32 %v543_v12, %v365_v7  ;;  %v577_v26 = vadd.f32 %v505_v19, %v350_v10  ;;  %v352_v7 = vadd.f32 %v909_v54, %v316_v61  ;;  %v360_v10 = vadd.f32 %v909_v54, %v324_v0 }
  0xba   : > { %v600_v25 = vadd.f32 %v563_v18, %v373_v9  ;;  %v585_v30 = vadd.f32 %v525_v23, %v358_v15 }
  0xbb   : > { %v624_v29 = vmax.f32 %v592_v22, 0.0  ;;  %v609_v33 = vmax.f32 %v577_v26, 0.0 }
  0xbc   : > { %v632_v32 = vmax.f32 %v600_v25, 0.0  ;;  %v617_v34 = vmax.f32 %v585_v30, 0.0 }
  0xbd   : > { %657 = vst.msk [vmem:[%s932_s16 + $0xa0] sm:$0xff] %vm636_vm2, %v624_v29 }
  0xbe   : > { %665 = vst.msk [vmem:[%s932_s16 + $0xe0] sm:$0xff] %vm636_vm2, %v632_v32  ;;  %v544_v36 = vpop.f32.mrf.mxu2  ;;  %v507_v42 = vpop.f32.mrf.mxu0 }
  0xbf   : > { %642 = vst.msk [vmem:[%s932_s16 + $0x28] sm:$0xff] %vm636_vm2, %v609_v33  ;;  %v545_v40 = vadd.f32 %v915_v56, %v544_v36  ;;  %v564_v41 = vpop.f32.mrf.mxu3  ;;  %v508_v47 = vadd.f32 %v915_v56, %v507_v42  ;;  %v527_v48 = vpop.f32.mrf.mxu1 }
  0xc0   : > { %650 = vst.msk [vmem:[%s932_s16 + $0x68] sm:$0xff] %vm636_vm2, %v617_v34  ;;  %v565_v46 = vadd.f32 %v915_v56, %v564_v41  ;;  %v528_v52 = vadd.f32 %v915_v56, %v527_v48 }
  0xc1   : > { %v593_v51 = vadd.f32 %v545_v40, %v366_v35  ;;  %v578_v59 = vadd.f32 %v508_v47, %v351_v38 }
  0xc2   : > { %v601_v58 = vadd.f32 %v565_v46, %v374_v37  ;;  %v586_v63 = vadd.f32 %v528_v52, %v359_v43 }
  0xc3   : > { %v625_v62 = vmax.f32 %v593_v51, 0.0  ;;  %v610_v2 = vmax.f32 %v578_v59, 0.0 }
  0xc4   : > { %v633_v1 = vmax.f32 %v601_v58, 0.0  ;;  %v618_v3 = vmax.f32 %v586_v63, 0.0 }
  0xc5   : > { %658 = vst.msk [vmem:[%s932_s16 + $0xa8] sm:$0xff] %vm636_vm2, %v625_v62 }
  0xc6   : > { %666 = vst.msk [vmem:[%s932_s16 + $0xe8] sm:$0xff] %vm636_vm2, %v633_v1  ;;  %v547_v5 = vpop.f32.mrf.mxu2  ;;  %v509_v9 = vpop.f32.mrf.mxu0 }
  0xc7   : > { %643 = vst.msk [vmem:[%s932_s16 + $0x30] sm:$0xff] %vm636_vm2, %v610_v2  ;;  %v548_v8 = vadd.f32 %v915_v56, %v547_v5  ;;  %v567_v50 = vpop.f32.mrf.mxu3  ;;  %v510_v12 = vadd.f32 %v915_v56, %v509_v9  ;;  %v529_v13 = vpop.f32.mrf.mxu1 }
  0xc8   : > { %651 = vst.msk [vmem:[%s932_s16 + $0x70] sm:$0xff] %vm636_vm2, %v618_v3  ;;  %v568_v11 = vadd.f32 %v915_v56, %v567_v50  ;;  %v530_v15 = vadd.f32 %v915_v56, %v529_v13 }
  0xc9   : > { %v594_v14 = vadd.f32 %v548_v8, %v367_v4  ;;  %v579_v17 = vadd.f32 %v510_v12, %v352_v7 }
  0xca   : > { %v602_v16 = vadd.f32 %v568_v11, %v375_v6  ;;  %v587_v19 = vadd.f32 %v530_v15, %v360_v10 }
  0xcb   : > { %v626_v18 = vmax.f32 %v594_v14, 0.0  ;;  %v611_v54 = vmax.f32 %v579_v17, 0.0 }
  0xcc   : > { %v634_v20 = vmax.f32 %v602_v16, 0.0  ;;  %v619_v21 = vmax.f32 %v587_v19, 0.0 }
  0xcd   : > { %659 = vst.msk [vmem:[%s932_s16 + $0xb0] sm:$0xff] %vm636_vm2, %v626_v18 }
  0xce   : > { %667 = vst.msk [vmem:[%s932_s16 + $0xf0] sm:$0xff] %vm636_vm2, %v634_v20  ;;  %v549_v22 = vpop.f32.mrf.mxu2 }
  0xcf   : > { %644 = vst.msk [vmem:[%s932_s16 + $0x38] sm:$0xff] %vm636_vm2, %v611_v54  ;;  %v550_v23 = vadd.f32 %v915_v56, %v549_v22  ;;  %v569_v24 = vpop.f32.mrf.mxu3 }
  0xd0   : > { %652 = vst.msk [vmem:[%s932_s16 + $0x78] sm:$0xff] %vm636_vm2, %v619_v21  ;;  %v570_v25 = vadd.f32 %v915_v56, %v569_v24 }
  0xd1   : > { %v595_v26 = vadd.f32 %v550_v23, %v1027_v55 }
  0xd2   : > { %v603_v27 = vadd.f32 %v570_v25, %v1030_v57 }
  0xd3   : > { %v627_v28 = vmax.f32 %v595_v26, 0.0 }
  0xd4   : > { %v635_v29 = vmax.f32 %v603_v27, 0.0 }
  0xd5   : > { %660 = vst.msk [vmem:[%s932_s16 + $0xb8] sm:$0xff] %vm636_vm2, %v627_v28 }
  0xd6   : > { %668 = vst.msk [vmem:[%s932_s16 + $0xf8] sm:$0xff] %vm636_vm2, %v635_v29 }
  0xd7 PF: > { %s16_s21 = sadd.s32 1, %s788_s21  }
  0xd8   : > { %p13_p4 = scmp.ge.s32.totalorder %s16_s21, 4  }
  0xda   :  { %15 = sbr.rel (!%p13_p4) target bundleno = 1 (0x1), region = 77 }

// kernel: double_conv_resid_block.3
= control target key start
LH: loop header
LB: loop body
LE: loop exit
PB: predicated region body
PF: predicated region fallthrough
CT: control target
= control target key end

     0   :  { %s3079_s12 = smov 0   ;;  %s4432_s0 = inlined_call_operand.vmem [shape: f32[2,16,16,4], index: 0, kind: input, shape index: {}]   ;;  %s4433_s1 = inlined_call_operand.vmem [shape: bf16[36,8], index: 1, kind: input, shape index: {}]   ;;  %s4434_s2 = inlined_call_operand.vmem [shape: f32[2,16,16,8], index: 2, kind: output, shape index: {0}]   ;;  %s4435_s3 = inlined_call_operand.vmem [shape: f32[2,2,8], index: 3, kind: output, shape index: {1}]  }
   0x1 LB: > { %s2336_s13 = sadd.s32 4294967295, %s3048_s12   ;;  %p2340_p0 = scmp.ge.s32.totalorder %s3048_s12, 1  ;;  %s3048_s12 = sphi %s3079_s12, %s14_s12  }
   0x2   : > { %p140_p1 = scmp.lt.s32.totalorder %s3048_s12, 3 }
   0x4   : > { %p141_p2 = pnand %p2340_p0, %p140_p1 }
   0x6   : > { %144 = sbr.rel (%p141_p2) target bundleno = 654 (0x28e), region = 28 }
   0xb   : > { %vm215_vm0 = vcmask 31744   ;;  %vm218_vm1 = vcmask 25600   ;;  %p168_p3 = scmp.lt.s32.totalorder %s2336_s13, 1  ;;  %v3050_v0 = vmov 0.0   ;;  %s3051_s18 = smov 4   ;;  %vm225_vm2 = vcmask 24576  }
   0xc   : > { %216 = vst.msk [vmem:[#allocation2] sm:$0xff] %vm215_vm0, %v3050_v0  ;;  %s3052_s19 = smov 8   ;;  %s3053_s20 = smov 12   ;;  %vm1635_vm3 = vcmask 64512   ;;  %vm1668_vm4 = vcmask 97280   ;;  %vm1701_vm5 = vcmask 130048  }
   0xd   : > { %217 = vst.msk [vmem:[#allocation2 + $0x8] sm:$0xff] %vm215_vm0, %v3050_v0  ;;  %s4482_s13 = smov (!%p168_p3, %s2336_s13), 1  ;;  %s3054_s21 = smov 16   ;;  %vm1734_vm6 = vcmask 162816   ;;  %vm1951_vm7 = vcmask 1041408   ;;  %vm1767_vm8 = vcmask 195584  }
   0xe   : > { %219 = vst.msk [vmem:[#allocation2 + $0x10] sm:$0x3] %vm218_vm1, %v3050_v0  ;;  %s2372_s14 = sshll.u32 %s4482_s13, 8  ;;  %s3055_s22 = smov 20   ;;  %vm1800_vm9 = vcmask 228352   ;;  %vm1833_vm10 = vcmask 261120  }
   0xf   : > { %223 = vst.msk [vmem:[#allocation2 + $0x1a8] sm:$0x3] %vm218_vm1, %v3050_v0  ;;  %s3103_s17 = scalar_lea.vmem %s4432_s0, %s2372_s14  ;;  %s3056_s23 = smov 24   ;;  %vm1902_vm11 = vcmask 293888   ;;  %vm2246_vm12 = vcmask 1040384   ;;  %vm2248_vm13 = vcmask 58368  }
  0x10   : > { %221 = vst.msk [vmem:[#allocation2 + $0x198] sm:$0xff] %vm215_vm0, %v3050_v0  ;;  %v189_v1 = vld [vmem:[%s3103_s17 + $0x30] sm:$0xff]  ;;  %v190_v2 = vld [vmem:[%s3103_s17 + $0x38] sm:$0xff]  ;;  %v183_v5 = vld [vmem:[%s3103_s17] sm:$0xff]  ;;  %s3057_s24 = smov 28   ;;  %s3058_s25 = smov 32  }
  0x11   : > { %222 = vst.msk [vmem:[#allocation2 + $0x1a0] sm:$0xff] %vm215_vm0, %v3050_v0  ;;  %v185_v3 = vld [vmem:[%s3103_s17 + $0x10] sm:$0xff]  ;;  %v186_v4 = vld [vmem:[%s3103_s17 + $0x18] sm:$0xff]  ;;  %v184_v7 = vld [vmem:[%s3103_s17 + $0x8] sm:$0xff]  ;;  %s4246_s7 = scalar_lea.vmem %s4434_s2, %s2372_s14  ;;  %s2345_s8 = sshll.u32 %s4482_s13, 1 }
  0x12   : > { %264 = vst.msk [vmem:[#allocation2 + $0x61] sm:$0xff] %vm215_vm0, %v189_v1  ;;  %v191_v9 = vld [vmem:[%s3103_s17 + $0x40] sm:$0xff]  ;;  %v192_v11 = vld [vmem:[%s3103_s17 + $0x48] sm:$0xff]  ;;  %v193_v15 = vld [vmem:[%s3103_s17 + $0x50] sm:$0xff]  ;;  %s181_s11 = scalar_lea.vmem %s4435_s3, %s2345_s8 }
  0x13   : > { %265 = vst.msk [vmem:[#allocation2 + $0x69] sm:$0xff] %vm215_vm0, %v190_v2  ;;  %v187_v12 = vld [vmem:[%s3103_s17 + $0x20] sm:$0xff]  ;;  %v188_v13 = vld [vmem:[%s3103_s17 + $0x28] sm:$0xff]  ;;  %v194_v17 = vld [vmem:[%s3103_s17 + $0x58] sm:$0xff] }
  0x14   : > { %v322_v6 = vld [vmem:[#allocation2 + $0x1] sm:$0xff]  ;;  %260 = vst.msk [vmem:[#allocation2 + $0x31] sm:$0xff] %vm215_vm0, %v185_v3  ;;  %v197_v20 = vld [vmem:[%s3103_s17 + $0x70] sm:$0xff]  ;;  %v198_v22 = vld [vmem:[%s3103_s17 + $0x78] sm:$0xff] }
  0x15   : > { %v323_v8 = vld [vmem:[#allocation2 + $0x9] sm:$0xff]  ;;  %261 = vst.msk [vmem:[#allocation2 + $0x39] sm:$0xff] %vm215_vm0, %v186_v4  ;;  %v195_v25 = vld [vmem:[%s3103_s17 + $0x60] sm:$0xff]  ;;  %v202_v42 = vld [vmem:[%s3103_s17 + $0x98] sm:$0xff] }
  0x16   : > { %v2402_v10 = vpack.i.bf16 %v323_v8, %v322_v6  ;;  %258 = vst.msk [vmem:[#allocation2 + $0x19] sm:$0xff] %vm215_vm0, %v183_v5  ;;  %v196_v27 = vld [vmem:[%s3103_s17 + $0x68] sm:$0xff]  ;;  %v199_v30 = vld [vmem:[%s3103_s17 + $0x80] sm:$0xff]  ;;  %v201_v40 = vld [vmem:[%s3103_s17 + $0x90] sm:$0xff] }
  0x17   : > { %259 = vst.msk [vmem:[#allocation2 + $0x21] sm:$0xff] %vm215_vm0, %v184_v7  ;;  %v200_v32 = vld [vmem:[%s3103_s17 + $0x88] sm:$0xff]  ;;  %v203_v35 = vld [vmem:[%s3103_s17 + $0xa0] sm:$0xff]  ;;  %v205_v44 = vld [vmem:[%s3103_s17 + $0xb0] sm:$0xff] }
  0x18   : > { %2403 = vrot.lane.b32.xlu0 %v2402_v10, %s3051_s18  ;;  %266 = vst.msk [vmem:[#allocation2 + $0x79] sm:$0xff] %vm215_vm0, %v191_v9  ;;  %v204_v37 = vld [vmem:[%s3103_s17 + $0xa8] sm:$0xff]  ;;  %v206_v47 = vld [vmem:[%s3103_s17 + $0xb8] sm:$0xff]  ;;  %v209_v48 = vld [vmem:[%s3103_s17 + $0xd0] sm:$0xff] }
  0x19   : > { %v330_v14 = vld [vmem:[#allocation2 + $0x61] sm:$0xff]  ;;  %267 = vst.msk [vmem:[#allocation2 + $0x81] sm:$0xff] %vm215_vm0, %v192_v11  ;;  %v210_v51 = vld [vmem:[%s3103_s17 + $0xd8] sm:$0xff] }
  0x1a   : > { %v331_v16 = vld [vmem:[#allocation2 + $0x69] sm:$0xff]  ;;  %262 = vst.msk [vmem:[#allocation2 + $0x49] sm:$0xff] %vm215_vm0, %v187_v12  ;;  %v207_v53 = vld [vmem:[%s3103_s17 + $0xc0] sm:$0xff] }
  0x1b   : > { %v3129_v18 = vpack.i.bf16 %v331_v16, %v330_v14  ;;  %v326_v19 = vld [vmem:[#allocation2 + $0x31] sm:$0xff]  ;;  %263 = vst.msk [vmem:[#allocation2 + $0x51] sm:$0xff] %vm215_vm0, %v188_v13  ;;  %v208_v56 = vld [vmem:[%s3103_s17 + $0xc8] sm:$0xff]  ;;  %v211_v58 = vld [vmem:[%s3103_s17 + $0xe0] sm:$0xff] }
  0x1c   : > { %v327_v21 = vld [vmem:[#allocation2 + $0x39] sm:$0xff]  ;;  %268 = vst.msk [vmem:[#allocation2 + $0x91] sm:$0xff] %vm215_vm0, %v193_v15  ;;  %v212_v59 = vld [vmem:[%s3103_s17 + $0xe8] sm:$0xff] }
  0x1d   : > { %2423 = vrot.lane.b32.xlu2 %v3129_v18, %s3051_s18  ;;  %v3137_v23 = vpack.i.bf16 %v327_v21, %v326_v19  ;;  %v324_v24 = vld [vmem:[#allocation2 + $0x19] sm:$0xff]  ;;  %269 = vst.msk [vmem:[#allocation2 + $0x99] sm:$0xff] %vm215_vm0, %v194_v17  ;;  %v354_v19 = vld [vmem:[#allocation2 + $0x2] sm:$0xff] }
  0x1e   : > { %v325_v26 = vld [vmem:[#allocation2 + $0x21] sm:$0xff]  ;;  %272 = vst.msk [vmem:[#allocation2 + $0xc1] sm:$0xff] %vm215_vm0, %v197_v20  ;;  %v355_v20 = vld [vmem:[#allocation2 + $0xa] sm:$0xff] }
  0x1f   : > { %2413 = vrot.lane.b32.xlu1 %v3137_v23, %s3051_s18  ;;  %v3145_v28 = vpack.i.bf16 %v325_v26, %v324_v24  ;;  %v332_v29 = vld [vmem:[#allocation2 + $0x79] sm:$0xff]  ;;  %273 = vst.msk [vmem:[#allocation2 + $0xc9] sm:$0xff] %vm215_vm0, %v198_v22  ;;  %v2482_v22 = vpack.i.bf16 %v355_v20, %v354_v19 }
  0x20   : > { %v333_v31 = vld [vmem:[#allocation2 + $0x81] sm:$0xff]  ;;  %270 = vst.msk [vmem:[#allocation2 + $0xa9] sm:$0xff] %vm215_vm0, %v195_v25  ;;  %v358_v24 = vld [vmem:[#allocation2 + $0x32] sm:$0xff] }
  0x21   : > { %2408 = vrot.lane.b32.xlu0 %v3145_v28, %s3051_s18  ;;  %v3153_v33 = vpack.i.bf16 %v333_v31, %v332_v29  ;;  %v328_v34 = vld [vmem:[#allocation2 + $0x49] sm:$0xff]  ;;  %271 = vst.msk [vmem:[#allocation2 + $0xb1] sm:$0xff] %vm215_vm0, %v196_v27  ;;  %v356_v16 = vld [vmem:[#allocation2 + $0x1a] sm:$0xff] }
  0x22   : > { %v329_v36 = vld [vmem:[#allocation2 + $0x51] sm:$0xff]  ;;  %274 = vst.msk [vmem:[#allocation2 + $0xd9] sm:$0xff] %vm215_vm0, %v199_v30  ;;  %v362_v27 = vld [vmem:[#allocation2 + $0x62] sm:$0xff] }
  0x23   : > { %v3159_v38 = vpack.i.bf16 %v329_v36, %v328_v34  ;;  %v334_v39 = vld [vmem:[#allocation2 + $0x91] sm:$0xff]  ;;  %275 = vst.msk [vmem:[#allocation2 + $0xe1] sm:$0xff] %vm215_vm0, %v200_v32 }
  0x24   : > { %v335_v41 = vld [vmem:[#allocation2 + $0x99] sm:$0xff]  ;;  %278 = vst.msk [vmem:[#allocation2 + $0x109] sm:$0xff] %vm215_vm0, %v203_v35  ;;  %v360_v26 = vld [vmem:[#allocation2 + $0x4a] sm:$0xff] }
  0x25   : > { %2428 = vrot.lane.b32.xlu2 %v3153_v33, %s3051_s18  ;;  %v3167_v43 = vpack.i.bf16 %v335_v41, %v334_v39  ;;  %279 = vst.msk [vmem:[#allocation2 + $0x111] sm:$0xff] %vm215_vm0, %v204_v37  ;;  %v338_v45 = vld [vmem:[#allocation2 + $0xc1] sm:$0xff]  ;;  %v366_v41 = vld [vmem:[#allocation2 + $0x92] sm:$0xff] }
  0x26   : > { %v339_v46 = vld [vmem:[#allocation2 + $0xc9] sm:$0xff]  ;;  %276 = vst.msk [vmem:[#allocation2 + $0xf1] sm:$0xff] %vm215_vm0, %v201_v40  ;;  %v364_v35 = vld [vmem:[#allocation2 + $0x7a] sm:$0xff] }
  0x27   : > { %2418 = vrot.lane.b32.xlu1 %v3159_v38, %s3051_s18  ;;  %277 = vst.msk [vmem:[#allocation2 + $0xf9] sm:$0xff] %vm215_vm0, %v202_v42  ;;  %v336_v49 = vld [vmem:[#allocation2 + $0xa9] sm:$0xff]  ;;  %v3181_v52 = vpack.i.bf16 %v339_v46, %v338_v45  ;;  %v3359_v20 = vld [vmem:[#allocation2 + $0x38] sm:$0xff] }
  0x28   : > { %v337_v50 = vld [vmem:[#allocation2 + $0xb1] sm:$0xff]  ;;  %280 = vst.msk [vmem:[#allocation2 + $0x121] sm:$0xff] %vm215_vm0, %v205_v44  ;;  %v370_v46 = vld [vmem:[#allocation2 + $0xc2] sm:$0xff] }
  0x29   : > { %2433 = vrot.lane.b32.xlu0 %v3167_v43, %s3051_s18  ;;  %281 = vst.msk [vmem:[#allocation2 + $0x129] sm:$0xff] %vm215_vm0, %v206_v47  ;;  %v340_v54 = vld [vmem:[#allocation2 + $0xd9] sm:$0xff]  ;;  %v3187_v57 = vpack.i.bf16 %v337_v50, %v336_v49  ;;  %v368_v37 = vld [vmem:[#allocation2 + $0xaa] sm:$0xff] }
  0x2a   : > { %v341_v55 = vld [vmem:[#allocation2 + $0xe1] sm:$0xff]  ;;  %284 = vst.msk [vmem:[#allocation2 + $0x151] sm:$0xff] %vm215_vm0, %v209_v48 }
  0x2b   : > { %285 = vst.msk [vmem:[#allocation2 + $0x159] sm:$0xff] %vm215_vm0, %v210_v51  ;;  %v3195_v60 = vpack.i.bf16 %v341_v55, %v340_v54  ;;  %v344_v61 = vld [vmem:[#allocation2 + $0x109] sm:$0xff]  ;;  %v372_v50 = vld [vmem:[#allocation2 + $0xda] sm:$0xff] }
  0x2c   : > { %282 = vst.msk [vmem:[#allocation2 + $0x139] sm:$0xff] %vm215_vm0, %v207_v53  ;;  %v345_v62 = vld [vmem:[#allocation2 + $0x111] sm:$0xff] }
  0x2d   : > { %2443 = vrot.lane.b32.xlu2 %v3181_v52, %s3051_s18  ;;  %283 = vst.msk [vmem:[#allocation2 + $0x141] sm:$0xff] %vm215_vm0, %v208_v56  ;;  %v342_v63 = vld [vmem:[#allocation2 + $0xf1] sm:$0xff]  ;;  %v3206_v2 = vpack.i.bf16 %v345_v62, %v344_v61 }
  0x2e   : > { %286 = vst.msk [vmem:[#allocation2 + $0x169] sm:$0xff] %vm215_vm0, %v211_v58  ;;  %v343_v1 = vld [vmem:[#allocation2 + $0xf9] sm:$0xff]  ;;  %v376_v55 = vld [vmem:[#allocation2 + $0x10a] sm:$0xff] }
  0x2f   : > { %2438 = vrot.lane.b32.xlu1 %v3187_v57, %s3051_s18  ;;  %287 = vst.msk [vmem:[#allocation2 + $0x171] sm:$0xff] %vm215_vm0, %v212_v59  ;;  %v346_v3 = vld [vmem:[#allocation2 + $0x121] sm:$0xff]  ;;  %v3212_v5 = vpack.i.bf16 %v343_v1, %v342_v63 }
  0x30   : > { %242 = vst.msk [vmem:[#allocation2 + $0x29] sm:$0x1] %vm225_vm2, %v3050_v0  ;;  %v347_v4 = vld [vmem:[#allocation2 + $0x129] sm:$0xff] }
  0x31   : > { %2448 = vrot.lane.b32.xlu0 %v3195_v60, %s3051_s18  ;;  %226 = vst.msk [vmem:[#allocation2 + $0x18] sm:$0x1] %vm225_vm2, %v3050_v0  ;;  %v3220_v6 = vpack.i.bf16 %v347_v4, %v346_v3  ;;  %v350_v7 = vld [vmem:[#allocation2 + $0x151] sm:$0xff]  ;;  %v378_v62 = vld [vmem:[#allocation2 + $0x122] sm:$0xff] }
  0x32   : > { %227 = vst.msk [vmem:[#allocation2 + $0x30] sm:$0x1] %vm225_vm2, %v3050_v0  ;;  %v351_v8 = vld [vmem:[#allocation2 + $0x159] sm:$0xff] }
  0x33   : > { %228 = vst.msk [vmem:[#allocation2 + $0x48] sm:$0x1] %vm225_vm2, %v3050_v0  ;;  %v348_v9 = vld [vmem:[#allocation2 + $0x139] sm:$0xff]  ;;  %v3234_v11 = vpack.i.bf16 %v351_v8, %v350_v7 }
  0x34   : > { %229 = vst.msk [vmem:[#allocation2 + $0x60] sm:$0x1] %vm225_vm2, %v3050_v0  ;;  %v349_v10 = vld [vmem:[#allocation2 + $0x141] sm:$0xff]  ;;  %v382_v4 = vld [vmem:[#allocation2 + $0x152] sm:$0xff] }
  0x35   : > { %2458 = vrot.lane.b32.xlu2 %v3206_v2, %s3051_s18  ;;  %230 = vst.msk [vmem:[#allocation2 + $0x78] sm:$0x1] %vm225_vm2, %v3050_v0  ;;  %v352_v12 = vld [vmem:[#allocation2 + $0x169] sm:$0xff]  ;;  %v3240_v14 = vpack.i.bf16 %v349_v10, %v348_v9  ;;  %v380_v58 = vld [vmem:[#allocation2 + $0x13a] sm:$0xff] }
  0x36   : > { %231 = vst.msk [vmem:[#allocation2 + $0x90] sm:$0x1] %vm225_vm2, %v3050_v0  ;;  %v353_v13 = vld [vmem:[#allocation2 + $0x171] sm:$0xff]  ;;  %v3345_v9 = vld [vmem:[#allocation2 + $0x20] sm:$0xff] }
  0x37   : > { %2453 = vrot.lane.b32.xlu1 %v3212_v5, %s3051_s18  ;;  %232 = vst.msk [vmem:[#allocation2 + $0xa8] sm:$0x1] %vm225_vm2, %v3050_v0  ;;  %v3248_v15 = vpack.i.bf16 %v353_v13, %v352_v12  ;;  %v357_v17 = vld [vmem:[#allocation2 + $0x22] sm:$0xff]  ;;  %v384_v12 = vld [vmem:[#allocation2 + $0x16a] sm:$0xff] }
  0x38   : > { %233 = vst.msk [vmem:[#allocation2 + $0xc0] sm:$0x1] %vm225_vm2, %v3050_v0  ;;  %v3262_v21 = vpack.i.bf16 %v357_v17, %v356_v16  ;;  %v3343_v8 = vld [vmem:[#allocation2 + $0x18] sm:$0xff] }
  0x39   : > { %2463 = vrot.lane.b32.xlu0 %v3220_v6, %s3051_s18  ;;  %234 = vst.msk [vmem:[#allocation2 + $0xd8] sm:$0x1] %vm225_vm2, %v3050_v0  ;;  %v2562_v16 = vpack.i.bf16 %v3345_v9, %v3343_v8  ;;  %v3357_v19 = vld [vmem:[#allocation2 + $0x30] sm:$0xff] }
  0x3a   : > { %235 = vst.msk [vmem:[#allocation2 + $0xf0] sm:$0x1] %vm225_vm2, %v3050_v0 }
  0x3b   : > { %236 = vst.msk [vmem:[#allocation2 + $0x108] sm:$0x1] %vm225_vm2, %v3050_v0 }
  0x3c   : > { %237 = vst.msk [vmem:[#allocation2 + $0x120] sm:$0x1] %vm225_vm2, %v3050_v0 }
  0x3d   : > { %2473 = vrot.lane.b32.xlu2 %v3234_v11, %s3051_s18  ;;  %238 = vst.msk [vmem:[#allocation2 + $0x138] sm:$0x1] %vm225_vm2, %v3050_v0 }
  0x3e   : > { %239 = vst.msk [vmem:[#allocation2 + $0x150] sm:$0x1] %vm225_vm2, %v3050_v0 }
  0x3f   : > { %2468 = vrot.lane.b32.xlu1 %v3240_v14, %s3051_s18  ;;  %240 = vst.msk [vmem:[#allocation2 + $0x168] sm:$0x1] %vm225_vm2, %v3050_v0 }
  0x40   : > { %241 = vst.msk [vmem:[#allocation2 + $0x180] sm:$0x1] %vm225_vm2, %v3050_v0 }
  0x41   : > { %2478 = vrot.lane.b32.xlu0 %v3248_v15, %s3051_s18  ;;  %243 = vst.msk [vmem:[#allocation2 + $0x41] sm:$0x1] %vm225_vm2, %v3050_v0 }
  0x42   : > { %244 = vst.msk [vmem:[#allocation2 + $0x59] sm:$0x1] %vm225_vm2, %v3050_v0 }
  0x43   : > { %245 = vst.msk [vmem:[#allocation2 + $0x71] sm:$0x1] %vm225_vm2, %v3050_v0 }
  0x44   : > { %246 = vst.msk [vmem:[#allocation2 + $0x89] sm:$0x1] %vm225_vm2, %v3050_v0 }
  0x45   : > { %2488 = vrot.lane.b32.xlu2 %v3262_v21, %s3052_s19  ;;  %247 = vst.msk [vmem:[#allocation2 + $0xa1] sm:$0x1] %vm225_vm2, %v3050_v0 }
  0x46   : > { %248 = vst.msk [vmem:[#allocation2 + $0xb9] sm:$0x1] %vm225_vm2, %v3050_v0 }
  0x47   : > { %2483 = vrot.lane.b32.xlu1 %v2482_v22, %s3052_s19  ;;  %249 = vst.msk [vmem:[#allocation2 + $0xd1] sm:$0x1] %vm225_vm2, %v3050_v0  ;;  %v392_v22 = vld [vmem:[#allocation2 + $0x60] sm:$0xff] }
  0x48   : > { %250 = vst.msk [vmem:[#allocation2 + $0xe9] sm:$0x1] %vm225_vm2, %v3050_v0  ;;  %v359_v25 = vld [vmem:[#allocation2 + $0x3a] sm:$0xff] }
  0x49   : > { %251 = vst.msk [vmem:[#allocation2 + $0x101] sm:$0x1] %vm225_vm2, %v3050_v0  ;;  %v3285_v29 = vpack.i.bf16 %v359_v25, %v358_v24  ;;  %v361_v30 = vld [vmem:[#allocation2 + $0x52] sm:$0xff]  ;;  %v393_v24 = vld [vmem:[#allocation2 + $0x68] sm:$0xff] }
  0x4a   : > { %252 = vst.msk [vmem:[#allocation2 + $0x119] sm:$0x1] %vm225_vm2, %v3050_v0  ;;  %v363_v31 = vld [vmem:[#allocation2 + $0x6a] sm:$0xff]  ;;  %v3293_v32 = vpack.i.bf16 %v361_v30, %v360_v26  ;;  %v3367_v26 = vpack.i.bf16 %v3359_v20, %v3357_v19 }
  0x4b   : > { %253 = vst.msk [vmem:[#allocation2 + $0x131] sm:$0x1] %vm225_vm2, %v3050_v0  ;;  %2493 = vrot.lane.b32.xlu0 %v3285_v29, %s3052_s19  ;;  %v3295_v34 = vpack.i.bf16 %v363_v31, %v362_v27  ;;  %v365_v36 = vld [vmem:[#allocation2 + $0x82] sm:$0xff]  ;;  %v213_v25 = vld [vmem:[%s3103_s17 + $0xf0] sm:$0xff]  ;;  %v214_v27 = vld [vmem:[%s3103_s17 + $0xf8] sm:$0xff] }
  0x4c   : > { %254 = vst.msk [vmem:[#allocation2 + $0x149] sm:$0x1] %vm225_vm2, %v3050_v0  ;;  %v3309_v40 = vpack.i.bf16 %v365_v36, %v364_v35  ;;  %v367_v42 = vld [vmem:[#allocation2 + $0x9a] sm:$0xff]  ;;  %v3371_v30 = vld [vmem:[#allocation2 + $0x48] sm:$0xff]  ;;  %v3373_v31 = vld [vmem:[#allocation2 + $0x50] sm:$0xff]  ;;  %v2577_v35 = vpack.i.bf16 %v393_v24, %v392_v22 }
  0x4d   : > { %255 = vst.msk [vmem:[#allocation2 + $0x161] sm:$0x1] %vm225_vm2, %v3050_v0  ;;  %2503 = vrot.lane.b32.xlu2 %v3295_v34, %s3052_s19  ;;  %v369_v39 = vld [vmem:[#allocation2 + $0xb2] sm:$0xff]  ;;  %v3315_v45 = vpack.i.bf16 %v367_v42, %v366_v41  ;;  %v3380_v36 = vpack.i.bf16 %v3373_v31, %v3371_v30  ;;  %v3383_v41 = vld [vmem:[#allocation2 + $0xa8] sm:$0xff] }
  0x4e   : > { %256 = vst.msk [vmem:[#allocation2 + $0x179] sm:$0x1] %vm225_vm2, %v3050_v0  ;;  %v3311_v44 = vpack.i.bf16 %v369_v39, %v368_v37  ;;  %v371_v47 = vld [vmem:[#allocation2 + $0xca] sm:$0xff]  ;;  %v394_v37 = vld [vmem:[#allocation2 + $0x78] sm:$0xff]  ;;  %v395_v39 = vld [vmem:[#allocation2 + $0x80] sm:$0xff] }
  0x4f   : > { %257 = vst.msk [vmem:[#allocation2 + $0x191] sm:$0x1] %vm225_vm2, %v3050_v0  ;;  %2498 = vrot.lane.b32.xlu1 %v3293_v32, %s3052_s19  ;;  %v374_v0 = vld [vmem:[#allocation2 + $0xf2] sm:$0xff]  ;;  %v3321_v49 = vpack.i.bf16 %v371_v47, %v370_v46  ;;  %v373_v51 = vld [vmem:[#allocation2 + $0xe2] sm:$0xff]  ;;  %v2582_v47 = vpack.i.bf16 %v395_v39, %v394_v37 }
  0x50   : > { %4451 = vst [vmem:[#allocation3_spill] sm:$0xff] %v3311_v44  ;;  %v375_v48 = vld [vmem:[#allocation2 + $0xfa] sm:$0xff]  ;;  %v3327_v54 = vpack.i.bf16 %v373_v51, %v372_v50  ;;  %v3385_v42 = vld [vmem:[#allocation2 + $0xb0] sm:$0xff] }
  0x51   : > { %4452 = vst [vmem:[#allocation4_spill] sm:$0xff] %v3315_v45  ;;  %v3323_v53 = vpack.i.bf16 %v375_v48, %v374_v0  ;;  %v377_v56 = vld [vmem:[#allocation2 + $0x112] sm:$0xff] }
  0x52   : > { %4453 = vst [vmem:[#allocation5_spill] sm:$0xff] %v3321_v49  ;;  %v3333_v61 = vpack.i.bf16 %v377_v56, %v376_v55  ;;  %v379_v63 = vld [vmem:[#allocation2 + $0x12a] sm:$0xff]  ;;  %v3391_v51 = vld [vmem:[#allocation2 + $0x98] sm:$0xff]  ;;  %v2592_v55 = vpack.i.bf16 %v3385_v42, %v3383_v41 }
  0x53   : > { %2508 = vrot.lane.b32.xlu0 %v3309_v40, %s3052_s19  ;;  %4454 = vst [vmem:[#allocation6_spill] sm:$0xff] %v3323_v53  ;;  %v381_v59 = vld [vmem:[#allocation2 + $0x142] sm:$0xff]  ;;  %v3339_v3 = vpack.i.bf16 %v379_v63, %v378_v62  ;;  %v3389_v50 = vld [vmem:[#allocation2 + $0x90] sm:$0xff] }
  0x54   : > { %4455 = vst [vmem:[#allocation7_spill] sm:$0xff] %v3327_v54  ;;  %v3335_v1 = vpack.i.bf16 %v381_v59, %v380_v58  ;;  %v383_v7 = vld [vmem:[#allocation2 + $0x15a] sm:$0xff]  ;;  %v3404_v59 = vpack.i.bf16 %v3391_v51, %v3389_v50  ;;  %v401_v63 = vld [vmem:[#allocation2 + $0xc8] sm:$0xff] }
  0x55   : > { %2518 = vrot.lane.b32.xlu2 %v3311_v44, %s3052_s19  ;;  %4456 = vst [vmem:[#allocation8_spill] sm:$0xff] %v3333_v61  ;;  %v3349_v10 = vpack.i.bf16 %v383_v7, %v382_v4  ;;  %v385_v13 = vld [vmem:[#allocation2 + $0x172] sm:$0xff]  ;;  %v400_v62 = vld [vmem:[#allocation2 + $0xc0] sm:$0xff] }
  0x56   : > { %4457 = vst [vmem:[#allocation9_spill] sm:$0xff] %v3335_v1  ;;  %v3355_v17 = vpack.i.bf16 %v385_v13, %v384_v12  ;;  %v3407_v4 = vld [vmem:[#allocation2 + $0xf0] sm:$0xff]  ;;  %v3409_v7 = vld [vmem:[#allocation2 + $0xf8] sm:$0xff]  ;;  %v2597_v13 = vpack.i.bf16 %v401_v63, %v400_v62 }
  0x57   : > { %2513 = vrot.lane.b32.xlu1 %v3315_v45, %s3052_s19  ;;  %4458 = vst [vmem:[#allocation10_spill] sm:$0xff] %v3339_v3 }
  0x58   : > { %4459 = vst [vmem:[#allocation11_spill] sm:$0xff] %v3349_v10 }
  0x59   : > { %4460 = vst [vmem:[#allocation12_spill] sm:$0xff] %v3355_v17 }
  0x5a   : > { %4461 = vst [vmem:[#allocation13_spill] sm:$0xff] %v3367_v26 }
  0x5b   : > { %2523 = vrot.lane.b32.xlu0 %v3321_v49, %s3052_s19  ;;  %288 = vst.msk [vmem:[#allocation2 + $0x181] sm:$0xff] %vm215_vm0, %v213_v25  ;;  %v3415_v25 = vld [vmem:[#allocation2 + $0xe0] sm:$0xff] }
  0x5c   : > { %289 = vst.msk [vmem:[#allocation2 + $0x189] sm:$0xff] %vm215_vm0, %v214_v27  ;;  %v3419_v27 = vpack.i.bf16 %v3409_v7, %v3407_v4 }
  0x5d   : > { %2533 = vrot.lane.b32.xlu2 %v3323_v53, %s3052_s19  ;;  %4462 = vst [vmem:[#allocation14_spill] sm:$0xff] %v3380_v36 }
  0x5e   : > { %4463 = vst [vmem:[#allocation15_spill] sm:$0xff] %v3404_v59 }
  0x5f   : > { %2528 = vrot.lane.b32.xlu1 %v3327_v54, %s3052_s19  ;;  %4465 = vst [vmem:[#allocation17_spill] sm:$0xff] %v3419_v27 }
  0x63   : > { %2538 = vrot.lane.b32.xlu0 %v3333_v61, %s3052_s19  ;;  %v3458_v61 = vld [vmem:[#allocation2 + $0x170] sm:$0xff] }
  0x65   : > { %2548 = vrot.lane.b32.xlu2 %v3335_v1, %s3052_s19  ;;  %v413_v1 = vld [vmem:[#allocation2 + $0x158] sm:$0xff] }
  0x67   : > { %2543 = vrot.lane.b32.xlu1 %v3339_v3, %s3052_s19  ;;  %v417_v3 = vld [vmem:[#allocation2 + $0x188] sm:$0xff] }
  0x6b   : > { %2553 = vrot.lane.b32.xlu0 %v3349_v10, %s3052_s19  ;;  %v416_v10 = vld [vmem:[#allocation2 + $0x180] sm:$0xff] }
  0x6c   : > { %v2637_v54 = vpack.i.bf16 %v417_v3, %v416_v10 }
  0x6d   : > { %2563 = vrot.lane.b32.xlu2 %v2562_v16, %s3053_s20 }
  0x6f   : > { %2558 = vrot.lane.b32.xlu1 %v3355_v17, %s3052_s19 }
  0x73   : > { %2568 = vrot.lane.b32.xlu0 %v3367_v26, %s3053_s20 }
  0x75   : > { %2578 = vrot.lane.b32.xlu2 %v2577_v35, %s3053_s20 }
  0x77   : > { %2573 = vrot.lane.b32.xlu1 %v3380_v36, %s3053_s20  ;;  %v2424_v46 = vpop.permute.xlu2 %2423 }
  0x78   : > { %v2426_v0 = vunpack.i.h.bf16 %v2424_v46  ;;  %v2425_v48 = vunpack.i.l.bf16 %v2424_v46 }
  0x7a   : > { %v3396_v56 = vsel %vm215_vm0, %v392_v22, %v2425_v48  ;;  %v3399_v58 = vsel %vm215_vm0, %v393_v24, %v2426_v0  ;;  %v3413_v24 = vld [vmem:[#allocation2 + $0xd8] sm:$0xff]  ;;  %v406_v0 = vld [vmem:[#allocation2 + $0x108] sm:$0xff]  ;;  %v407_v48 = vld [vmem:[#allocation2 + $0x110] sm:$0xff] }
  0x7b   : > { %2583 = vrot.lane.b32.xlu0 %v2582_v47, %s3053_s20  ;;  %4464 = vst [vmem:[#allocation16_spill] sm:$0xff] %v3413_v24  ;;  %v2602_v47 = vpack.i.bf16 %v3415_v25, %v3413_v24 }
  0x7d   : > { %2593 = vrot.lane.b32.xlu2 %v2592_v55, %s3053_s20  ;;  %v3432_v55 = vld [vmem:[#allocation2 + $0x138] sm:$0xff] }
  0x7f   : > { %2588 = vrot.lane.b32.xlu1 %v3404_v59, %s3053_s20  ;;  %v2429_v12 = vpop.permute.xlu2 %2428  ;;  %v3437_v59 = vld [vmem:[#allocation2 + $0x120] sm:$0xff] }
  0x80   : > { %v2431_v16 = vunpack.i.h.bf16 %v2429_v12  ;;  %v2430_v22 = vunpack.i.l.bf16 %v2429_v12  ;;  %v3434_v12 = vld [vmem:[#allocation2 + $0x140] sm:$0xff] }
  0x81   : > { %v2622_v36 = vpack.i.bf16 %v3434_v12, %v3432_v55 }
  0x82   : > { %v3422_v35 = vsel %vm215_vm0, %v395_v39, %v2431_v16  ;;  %v3425_v46 = vsel %vm215_vm0, %v394_v37, %v2430_v22  ;;  %v2612_v16 = vpack.i.bf16 %v407_v48, %v406_v0 }
  0x83   : > { %2598 = vrot.lane.b32.xlu0 %v2597_v13, %s3053_s20  ;;  %v3439_v13 = vld [vmem:[#allocation2 + $0x128] sm:$0xff] }
  0x85   : > { %2608 = vrot.lane.b32.xlu2 %v3419_v27, %s3053_s20 }
  0x87   : > { %2603 = vrot.lane.b32.xlu1 %v2602_v47, %s3053_s20  ;;  %v2444_v39 = vpop.permute.xlu2 %2443  ;;  %v2617_v47 = vpack.i.bf16 %v3439_v13, %v3437_v59 }
  0x88   : > { %v2446_v37 = vunpack.i.h.bf16 %v2444_v39  ;;  %v2445_v22 = vunpack.i.l.bf16 %v2444_v39  ;;  %v412_v39 = vld [vmem:[#allocation2 + $0x150] sm:$0xff] }
  0x8a   : > { %v3444_v26 = vsel %vm215_vm0, %v401_v63, %v2446_v37  ;;  %v3447_v27 = vsel %vm215_vm0, %v400_v62, %v2445_v22  ;;  %v3449_v17 = vpop.permute.xlu0 %2403  ;;  %v2627_v37 = vpack.i.bf16 %v413_v1, %v412_v39  ;;  %v3456_v22 = vld [vmem:[#allocation2 + $0x168] sm:$0xff] }
  0x8b   : > { %2613 = vrot.lane.b32.xlu0 %v2612_v16, %s3053_s20  ;;  %v2632_v49 = vpack.i.bf16 %v3458_v61, %v3456_v22 }
  0x8d   : > { %2623 = vrot.lane.b32.xlu2 %v2622_v36, %s3053_s20 }
  0x8f   : > { %2618 = vrot.lane.b32.xlu1 %v2617_v47, %s3053_s20  ;;  %v2459_v63 = vpop.permute.xlu2 %2458 }
  0x90   : > { %v2461_v53 = vunpack.i.h.bf16 %v2459_v63  ;;  %v2460_v62 = vunpack.i.l.bf16 %v2459_v63 }
  0x91   : > { %v3460_v16 = vpop.permute.xlu1 %2413 }
  0x92   : > { %v3463_v44 = vsel %vm215_vm0, %v407_v48, %v2461_v53  ;;  %v3466_v36 = vsel %vm215_vm0, %v406_v0, %v2460_v62 }
  0x93   : > { %2628 = vrot.lane.b32.xlu0 %v2627_v37, %s3053_s20  ;;  %v2409_v47 = vpop.permute.xlu0 %2408 }
  0x94   : > { %v2410_v48 = vunpack.i.l.bf16 %v2409_v47 }
  0x95   : > { %2638 = vrot.lane.b32.xlu2 %v2637_v54, %s3053_s20  ;;  %v2411_v54 = vunpack.i.h.bf16 %v2409_v47 }
  0x97   : > { %2633 = vrot.lane.b32.xlu1 %v2632_v49, %s3053_s20  ;;  %v2474_v63 = vpop.permute.xlu2 %2473 }
  0x98   : > { %v2476_v45 = vunpack.i.h.bf16 %v2474_v63  ;;  %v2475_v24 = vunpack.i.l.bf16 %v2474_v63 }
  0x99   : > { %v3473_v3 = vpop.permute.xlu1 %2418 }
  0x9a   : > { %v3476_v53 = vsel %vm215_vm0, %v413_v1, %v2476_v45  ;;  %v3479_v10 = vsel %vm215_vm0, %v412_v39, %v2475_v24  ;;  %v1605_v24 = vsel %vm215_vm0, %v3343_v8, %v2410_v48 }
  0x9b   : > { %2643 = vrot.lane.b32.xlu0 %v3145_v28, %s3054_s21  ;;  %v3483_v0 = vpop.permute.xlu0 %2433  ;;  %v1606_v28 = vsel %vm215_vm0, %v3345_v9, %v2411_v54 }
  0x9d   : > { %2653 = vrot.lane.b32.xlu2 %v3159_v38, %s3054_s21 }
  0x9f   : > { %2648 = vrot.lane.b32.xlu1 %v3137_v23, %s3054_s21  ;;  %v2489_v45 = vpop.permute.xlu2 %2488 }
  0xa0   : > { %v2491_v49 = vunpack.i.h.bf16 %v2489_v45  ;;  %v2490_v1 = vunpack.i.l.bf16 %v2489_v45 }
  0xa1   : > { %v2439_v39 = vpop.permute.xlu1 %2438 }
  0xa2   : > { %v3494_v37 = vsel %vm1635_vm3, %v1605_v24, %v2490_v1  ;;  %v3497_v62 = vsel %vm1635_vm3, %v1606_v28, %v2491_v49  ;;  %v2441_v45 = vunpack.i.h.bf16 %v2439_v39 }
  0xa3   : > { %2658 = vrot.lane.b32.xlu0 %v3129_v18, %s3054_s21  ;;  %v3501_v23 = vpop.permute.xlu0 %2448 }
  0xa4   : > { %v1618_v24 = vsel %vm215_vm0, %v3385_v42, %v2441_v45 }
  0xa5   : > { %2668 = vrot.lane.b32.xlu2 %v3167_v43, %s3054_s21 }
  0xa7   : > { %2663 = vrot.lane.b32.xlu1 %v3153_v33, %s3054_s21  ;;  %v2504_v38 = vpop.permute.xlu2 %2503  ;;  %v2440_v33 = vunpack.i.l.bf16 %v2439_v39 }
  0xa8   : > { %v2506_v8 = vunpack.i.h.bf16 %v2504_v38  ;;  %v2505_v9 = vunpack.i.l.bf16 %v2504_v38 }
  0xa9   : > { %v2454_v47 = vpop.permute.xlu1 %2453 }
  0xaa   : > { %v3509_v63 = vsel %vm1635_vm3, %v3399_v58, %v2506_v8  ;;  %v3513_v54 = vsel %vm1635_vm3, %v3396_v56, %v2505_v9  ;;  %v2456_v8 = vunpack.i.h.bf16 %v2454_v47  ;;  %v2455_v9 = vunpack.i.l.bf16 %v2454_v47  ;;  %v291_v47 = vld [vmem:[#allocation2 + $0x8] sm:$0xff] }
  0xab   : > { %2673 = vrot.lane.b32.xlu0 %v3187_v57, %s3054_s21  ;;  %v2464_v18 = vpop.permute.xlu0 %2463 }
  0xac   : > { %v2466_v43 = vunpack.i.h.bf16 %v2464_v18  ;;  %v2465_v48 = vunpack.i.l.bf16 %v2464_v18  ;;  %v2406_v18 = vunpack.i.h.bf16 %v3449_v17 }
  0xad   : > { %2683 = vrot.lane.b32.xlu2 %v3195_v60, %s3054_s21  ;;  %v1617_v60 = vsel %vm215_vm0, %v3383_v41, %v2440_v33  ;;  %v2415_v33 = vunpack.i.l.bf16 %v3460_v16 }
  0xae   : > { %v3521_v49 = vsel %vm215_vm0, %v3439_v13, %v2466_v43  ;;  %v3525_v58 = vsel %vm215_vm0, %v3437_v59, %v2465_v48  ;;  %v290_v48 = vld [vmem:[#allocation2] sm:$0xff] }
  0xaf   : > { %2678 = vrot.lane.b32.xlu1 %v3181_v52, %s3054_s21  ;;  %v2519_v57 = vpop.permute.xlu2 %2518 }
  0xb0   : > { %v2521_v56 = vunpack.i.h.bf16 %v2519_v57  ;;  %v2520_v1 = vunpack.i.l.bf16 %v2519_v57 }
  0xb1   : > { %v2469_v28 = vpop.permute.xlu1 %2468 }
  0xb2   : > { %v3534_v13 = vsel %vm1635_vm3, %v1618_v24, %v2521_v56  ;;  %v3537_v39 = vsel %vm1635_vm3, %v1617_v60, %v2520_v1  ;;  %v1604_v24 = vsel %vm215_vm0, %v291_v47, %v2406_v18  ;;  %v1607_v18 = vsel %vm215_vm0, %v3357_v19, %v2415_v33 }
  0xb3   : > { %2688 = vrot.lane.b32.xlu0 %v3212_v5, %s3054_s21  ;;  %v2479_v52 = vpop.permute.xlu0 %2478  ;;  %v2405_v5 = vunpack.i.l.bf16 %v3449_v17  ;;  %v2421_v47 = vunpack.i.h.bf16 %v3473_v3 }
  0xb4   : > { %v2481_v59 = vunpack.i.h.bf16 %v2479_v52  ;;  %v2480_v38 = vunpack.i.l.bf16 %v2479_v52  ;;  %v2416_v52 = vunpack.i.h.bf16 %v3460_v16 }
  0xb5   : > { %2698 = vrot.lane.b32.xlu2 %v3220_v6, %s3054_s21  ;;  %v1603_v60 = vsel %vm215_vm0, %v290_v48, %v2405_v5  ;;  %v2420_v48 = vunpack.i.l.bf16 %v3473_v3 }
  0xb6   : > { %v3545_v41 = vsel %vm215_vm0, %v3458_v61, %v2481_v59  ;;  %v3549_v42 = vsel %vm215_vm0, %v3456_v22, %v2480_v38  ;;  %v1624_v61 = vsel %vm215_vm0, %v3409_v7, %v2456_v8  ;;  %v1623_v22 = vsel %vm215_vm0, %v3407_v4, %v2455_v9  ;;  %v448_v59 = vld [vmem:[#allocation2 + $0x181] sm:$0xff]  ;;  %v449_v38 = vld [vmem:[#allocation2 + $0x189] sm:$0xff] }
  0xb7   : > { %2693 = vrot.lane.b32.xlu1 %v3206_v2, %s3054_s21  ;;  %v2534_v43 = vpop.permute.xlu2 %2533  ;;  %v2471_v8 = vunpack.i.h.bf16 %v2469_v28  ;;  %v2470_v9 = vunpack.i.l.bf16 %v2469_v28 }
  0xb8   : > { %v2536_v45 = vunpack.i.h.bf16 %v2534_v43  ;;  %v2535_v6 = vunpack.i.l.bf16 %v2534_v43 }
  0xb9   : > { %v2484_v57 = vpop.permute.xlu1 %2483 }
  0xba   : > { %v2486_v56 = vunpack.i.h.bf16 %v2484_v57  ;;  %v2485_v1 = vunpack.i.l.bf16 %v2484_v57  ;;  %v3561_v17 = vsel %vm1635_vm3, %v1624_v61, %v2536_v45  ;;  %v3564_v2 = vsel %vm1635_vm3, %v1623_v22, %v2535_v6 }
  0xbb   : > { %2703 = vrot.lane.b32.xlu0 %v3240_v14, %s3054_s21  ;;  %v1608_v14 = vsel %vm215_vm0, %v3359_v20, %v2416_v52  ;;  %v2717_v45 = vpack.i.bf16 %v449_v38, %v448_v59  ;;  %v1630_v20 = vsel %vm215_vm0, %v3434_v12, %v2471_v8  ;;  %v1629_v61 = vsel %vm215_vm0, %v3432_v55, %v2470_v9 }
  0xbc   : > { %v1637_v4 = vsel %vm1635_vm3, %v1604_v24, %v2486_v56  ;;  %v1636_v7 = vsel %vm1635_vm3, %v1603_v60, %v2485_v1  ;;  %v1610_v1 = vsel %vm215_vm0, %v3373_v31, %v2421_v47  ;;  %v1609_v24 = vsel %vm215_vm0, %v3371_v30, %v2420_v48 }
  0xbd   : > { %v2494_v43 = vpop.permute.xlu0 %2493  ;;  %2713 = vrot.lane.b32.xlu2 %v3248_v15, %s3054_s21  ;;  %v2436_v38 = vunpack.i.h.bf16 %v3483_v0  ;;  %v2435_v31 = vunpack.i.l.bf16 %v3483_v0 }
  0xbe   : > { %v2496_v5 = vunpack.i.h.bf16 %v2494_v43  ;;  %v2495_v16 = vunpack.i.l.bf16 %v2494_v43 }
  0xbf   : > { %2708 = vrot.lane.b32.xlu1 %v3234_v11, %s3054_s21  ;;  %v2549_v28 = vpop.permute.xlu2 %2548 }
  0xc0   : > { %v3584_v6 = vsel %vm1635_vm3, %v1608_v14, %v2496_v5  ;;  %v3587_v15 = vsel %vm1635_vm3, %v1607_v18, %v2495_v16  ;;  %v2551_v19 = vunpack.i.h.bf16 %v2549_v28  ;;  %v2550_v33 = vunpack.i.l.bf16 %v2549_v28 }
  0xc1   : > { %v2499_v3 = vpop.permute.xlu1 %2498  ;;  %v1616_v14 = vsel %vm215_vm0, %v3391_v51, %v2436_v38  ;;  %v2451_v28 = vunpack.i.h.bf16 %v3501_v23  ;;  %v2450_v51 = vunpack.i.l.bf16 %v3501_v23 }
  0xc2   : > { %v2501_v22 = vunpack.i.h.bf16 %v2499_v3  ;;  %v2500_v57 = vunpack.i.l.bf16 %v2499_v3  ;;  %v3594_v11 = vsel %vm1635_vm3, %v1630_v20, %v2551_v19  ;;  %v3597_v56 = vsel %vm1635_vm3, %v1629_v61, %v2550_v33 }
  0xc3   : > { %2718 = vrot.lane.b32.xlu0 %v2717_v45, %s3054_s21 }
  0xc4   : > { %v1642_v12 = vsel %vm1635_vm3, %v1609_v24, %v2500_v57  ;;  %v1643_v55 = vsel %vm1635_vm3, %v1610_v1, %v2501_v22 }
  0xc5   : > { %v2509_v60 = vpop.permute.xlu0 %2508  ;;  %2728 = vrot.lane.b32.xlu2 %v3285_v29, %s3055_s22 }
  0xc6   : > { %v2511_v52 = vunpack.i.h.bf16 %v2509_v60  ;;  %v2510_v59 = vunpack.i.l.bf16 %v2509_v60 }
  0xc7   : > { %2723 = vrot.lane.b32.xlu1 %v3262_v21, %s3055_s22  ;;  %v2564_v30 = vpop.permute.xlu2 %2563 }
  0xc8   : > { %v3614_v8 = vsel %vm1635_vm3, %v3422_v35, %v2511_v52  ;;  %v3618_v9 = vsel %vm1635_vm3, %v3425_v46, %v2510_v59  ;;  %v2566_v29 = vunpack.i.h.bf16 %v2564_v30  ;;  %v2565_v43 = vunpack.i.l.bf16 %v2564_v30  ;;  %v4469_v52 = vld [vmem:[#allocation3_spill] sm:$0xff] }
  0xc9   : > { %v2514_v18 = vpop.permute.xlu1 %2513  ;;  %v1615_v35 = vsel %vm215_vm0, %v3389_v50, %v2435_v31 }
  0xca   : > { %v2516_v5 = vunpack.i.h.bf16 %v2514_v18  ;;  %v2515_v16 = vunpack.i.l.bf16 %v2514_v18  ;;  %v3621_v0 = vsel %vm1668_vm4, %v1637_v4, %v2566_v29  ;;  %v3624_v21 = vsel %vm1668_vm4, %v1636_v7, %v2565_v43 }
  0xcb   : > { %2733 = vrot.lane.b32.xlu0 %v3293_v32, %s3055_s22 }
  0xcc   : > { %v1648_v46 = vsel %vm1635_vm3, %v1615_v35, %v2515_v16  ;;  %v1649_v47 = vsel %vm1635_vm3, %v1616_v14, %v2516_v5  ;;  %v4470_v14 = vld [vmem:[#allocation7_spill] sm:$0xff] }
  0xcd   : > { %v2524_v48 = vpop.permute.xlu0 %2523  ;;  %2743 = vrot.lane.b32.xlu2 %v3309_v40, %s3055_s22 }
  0xce   : > { %v2526_v4 = vunpack.i.h.bf16 %v2524_v48  ;;  %v2525_v7 = vunpack.i.l.bf16 %v2524_v48  ;;  %v4471_v48 = vld [vmem:[#allocation8_spill] sm:$0xff] }
  0xcf   : > { %2738 = vrot.lane.b32.xlu1 %v3295_v34, %s3055_s22  ;;  %v2579_v50 = vpop.permute.xlu2 %2578  ;;  %v1622_v34 = vsel %vm215_vm0, %v3415_v25, %v2451_v28 }
  0xd0   : > { %v3642_v32 = vsel %vm1635_vm3, %v3444_v26, %v2526_v4  ;;  %v3646_v45 = vsel %vm1635_vm3, %v3447_v27, %v2525_v7  ;;  %v2581_v19 = vunpack.i.h.bf16 %v2579_v50  ;;  %v2580_v40 = vunpack.i.l.bf16 %v2579_v50  ;;  %v4466_v26 = vld [vmem:[#allocation16_spill] sm:$0xff] }
  0xd1   : > { %v2529_v33 = vpop.permute.xlu1 %2528  ;;  %v1621_v22 = vsel %vm215_vm0, %v4466_v26, %v2450_v51  ;;  %v4467_v27 = vld [vmem:[#allocation4_spill] sm:$0xff]  ;;  %v4474_v26 = vld [vmem:[#allocation11_spill] sm:$0xff] }
  0xd2   : > { %v2531_v20 = vunpack.i.h.bf16 %v2529_v33  ;;  %v2530_v61 = vunpack.i.l.bf16 %v2529_v33  ;;  %v3649_v3 = vsel %vm1668_vm4, %v1643_v55, %v2581_v19  ;;  %v3652_v23 = vsel %vm1668_vm4, %v1642_v12, %v2580_v40  ;;  %v4468_v55 = vld [vmem:[#allocation5_spill] sm:$0xff] }
  0xd3   : > { %2748 = vrot.lane.b32.xlu0 %v4467_v27, %s3055_s22 }
  0xd4   : > { %v1654_v57 = vsel %vm1635_vm3, %v1621_v22, %v2530_v61  ;;  %v1655_v1 = vsel %vm1635_vm3, %v1622_v34, %v2531_v20  ;;  %v4473_v61 = vld [vmem:[#allocation10_spill] sm:$0xff] }
  0xd5   : > { %v2539_v24 = vpop.permute.xlu0 %2538  ;;  %2758 = vrot.lane.b32.xlu2 %v4468_v55, %s3055_s22 }
  0xd6   : > { %v2541_v60 = vunpack.i.h.bf16 %v2539_v24  ;;  %v2540_v12 = vunpack.i.l.bf16 %v2539_v24 }
  0xd7   : > { %2753 = vrot.lane.b32.xlu1 %v4469_v52, %s3055_s22  ;;  %v2594_v25 = vpop.permute.xlu2 %2593 }
  0xd8   : > { %v3668_v59 = vsel %vm1635_vm3, %v3463_v44, %v2541_v60  ;;  %v3672_v38 = vsel %vm1635_vm3, %v3466_v36, %v2540_v12  ;;  %v2596_v31 = vunpack.i.h.bf16 %v2594_v25  ;;  %v2595_v30 = vunpack.i.l.bf16 %v2594_v25  ;;  %v480_v60 = vld [vmem:[#allocation2 + $0x182] sm:$0xff]  ;;  %v481_v12 = vld [vmem:[#allocation2 + $0x18a] sm:$0xff] }
  0xd9   : > { %v2544_v29 = vpop.permute.xlu1 %2543 }
  0xda   : > { %v2546_v43 = vunpack.i.h.bf16 %v2544_v29  ;;  %v2545_v18 = vunpack.i.l.bf16 %v2544_v29  ;;  %v3675_v5 = vsel %vm1668_vm4, %v1648_v46, %v2595_v30  ;;  %v3678_v16 = vsel %vm1668_vm4, %v1649_v47, %v2596_v31  ;;  %v4472_v46 = vld [vmem:[#allocation6_spill] sm:$0xff] }
  0xdb   : > { %2763 = vrot.lane.b32.xlu0 %v4470_v14, %s3055_s22  ;;  %v515_v14 = vld [vmem:[#allocation2 + $0x31] sm:$0xff] }
  0xdc   : > { %v1660_v44 = vsel %vm1635_vm3, %v3525_v58, %v2545_v18  ;;  %v1661_v36 = vsel %vm1635_vm3, %v3521_v49, %v2546_v43  ;;  %v3730_v43 = vpack.i.bf16 %v481_v12, %v480_v60 }
  0xdd   : > { %v2554_v35 = vpop.permute.xlu0 %2553  ;;  %2773 = vrot.lane.b32.xlu2 %v4471_v48, %s3055_s22 }
  0xde   : > { %v2556_v4 = vunpack.i.h.bf16 %v2554_v35  ;;  %v2555_v7 = vunpack.i.l.bf16 %v2554_v35  ;;  %v516_v35 = vld [vmem:[#allocation2 + $0x39] sm:$0xff] }
  0xdf   : > { %2768 = vrot.lane.b32.xlu1 %v4472_v46, %s3055_s22  ;;  %v2609_v47 = vpop.permute.xlu2 %2608  ;;  %v2807_v46 = vpack.i.bf16 %v516_v35, %v515_v14 }
  0xe0   : > { %v3692_v28 = vsel %vm1635_vm3, %v3476_v53, %v2556_v4  ;;  %v3696_v58 = vsel %vm1635_vm3, %v3479_v10, %v2555_v7  ;;  %v2611_v51 = vunpack.i.h.bf16 %v2609_v47  ;;  %v2610_v49 = vunpack.i.l.bf16 %v2609_v47 }
  0xe1   : > { %v2559_v50 = vpop.permute.xlu1 %2558 }
  0xe2   : > { %v2561_v19 = vunpack.i.h.bf16 %v2559_v50  ;;  %v2560_v40 = vunpack.i.l.bf16 %v2559_v50  ;;  %v3699_v33 = vsel %vm1668_vm4, %v1654_v57, %v2610_v49  ;;  %v3702_v20 = vsel %vm1668_vm4, %v1655_v1, %v2611_v51  ;;  %v4475_v57 = vld [vmem:[#allocation9_spill] sm:$0xff]  ;;  %v547_v49 = vld [vmem:[#allocation2 + $0x32] sm:$0xff] }
  0xe3   : > { %2778 = vrot.lane.b32.xlu0 %v4473_v61, %s3055_s22  ;;  %v548_v50 = vld [vmem:[#allocation2 + $0x3a] sm:$0xff] }
  0xe4   : > { %v1666_v53 = vsel %vm1635_vm3, %v3549_v42, %v2560_v40  ;;  %v1667_v10 = vsel %vm1635_vm3, %v3545_v41, %v2561_v19 }
  0xe5   : > { %v2569_v34 = vpop.permute.xlu0 %2568  ;;  %2788 = vrot.lane.b32.xlu2 %v4474_v26, %s3055_s22 }
  0xe6   : > { %v2571_v22 = vunpack.i.h.bf16 %v2569_v34  ;;  %v2570_v27 = vunpack.i.l.bf16 %v2569_v34 }
  0xe7   : > { %2783 = vrot.lane.b32.xlu1 %v4475_v57, %s3055_s22  ;;  %v2624_v1 = vpop.permute.xlu2 %2623  ;;  %v4478_v57 = vld [vmem:[#allocation14_spill] sm:$0xff] }
  0xe8   : > { %v3716_v24 = vsel %vm1668_vm4, %v3494_v37, %v2570_v27  ;;  %v3720_v42 = vsel %vm1668_vm4, %v3497_v62, %v2571_v22  ;;  %v2626_v55 = vunpack.i.h.bf16 %v2624_v1  ;;  %v2625_v41 = vunpack.i.l.bf16 %v2624_v1  ;;  %v4476_v37 = vld [vmem:[#allocation12_spill] sm:$0xff] }
  0xe9   : > { %v2574_v52 = vpop.permute.xlu1 %2573 }
  0xea   : > { %v2576_v25 = vunpack.i.h.bf16 %v2574_v52  ;;  %v2575_v31 = vunpack.i.l.bf16 %v2574_v52  ;;  %v3723_v30 = vsel %vm1668_vm4, %v1660_v44, %v2625_v41  ;;  %v3726_v29 = vsel %vm1668_vm4, %v1661_v36, %v2626_v55  ;;  %v4477_v44 = vld [vmem:[#allocation13_spill] sm:$0xff]  ;;  %v523_v55 = vld [vmem:[#allocation2 + $0x91] sm:$0xff]  ;;  %v517_v52 = vld [vmem:[#allocation2 + $0x49] sm:$0xff] }
  0xeb   : > { %2793 = vrot.lane.b32.xlu0 %v4476_v37, %s3055_s22  ;;  %v524_v41 = vld [vmem:[#allocation2 + $0x99] sm:$0xff] }
  0xec   : > { %v1673_v62 = vsel %vm1668_vm4, %v3587_v15, %v2575_v31  ;;  %v1674_v18 = vsel %vm1668_vm4, %v3584_v6, %v2576_v25  ;;  %v518_v25 = vld [vmem:[#allocation2 + $0x51] sm:$0xff]  ;;  %v2832_v37 = vpack.i.bf16 %v524_v41, %v523_v55 }
  0xed   : > { %v2584_v48 = vpop.permute.xlu0 %2583  ;;  %2803 = vrot.lane.b32.xlu2 %v4477_v44, %s3056_s23  ;;  %v531_v41 = vld [vmem:[#allocation2 + $0xf1] sm:$0xff] }
  0xee   : > { %v2586_v36 = vunpack.i.h.bf16 %v2584_v48  ;;  %v2585_v4 = vunpack.i.l.bf16 %v2584_v48 }
  0xef   : > { %2798 = vrot.lane.b32.xlu1 %v3730_v43, %s3055_s22  ;;  %v2639_v7 = vpop.permute.xlu2 %2638 }
  0xf0   : > { %v3742_v15 = vsel %vm1668_vm4, %v3509_v63, %v2586_v36  ;;  %v3746_v6 = vsel %vm1668_vm4, %v3513_v54, %v2585_v4  ;;  %v2641_v47 = vunpack.i.h.bf16 %v2639_v7  ;;  %v2640_v51 = vunpack.i.l.bf16 %v2639_v7  ;;  %v549_v7 = vld [vmem:[#allocation2 + $0x4a] sm:$0xff] }
  0xf1   : > { %v2589_v19 = vpop.permute.xlu1 %2588  ;;  %v2812_v63 = vpack.i.bf16 %v548_v50, %v547_v49  ;;  %v2827_v36 = vpack.i.bf16 %v518_v25, %v517_v52  ;;  %v487_v25 = vld [vmem:[#allocation2 + $0x60] sm:$0xff] }
  0xf2   : > { %v2591_v40 = vunpack.i.h.bf16 %v2589_v19  ;;  %v2590_v61 = vunpack.i.l.bf16 %v2589_v19  ;;  %v3749_v34 = vsel %vm1668_vm4, %v1666_v53, %v2640_v51  ;;  %v3752_v26 = vsel %vm1668_vm4, %v1667_v10, %v2641_v47 }
  0xf3   : > { %2808 = vrot.lane.b32.xlu0 %v2807_v46, %s3057_s24  ;;  %v550_v46 = vld [vmem:[#allocation2 + $0x52] sm:$0xff] }
  0xf4   : > { %v1679_v54 = vsel %vm1668_vm4, %v3618_v9, %v2590_v61  ;;  %v1680_v22 = vsel %vm1668_vm4, %v3614_v8, %v2591_v40  ;;  %v2837_v49 = vpack.i.bf16 %v550_v46, %v549_v7  ;;  %v555_v40 = vld [vmem:[#allocation2 + $0x92] sm:$0xff]  ;;  %v556_v61 = vld [vmem:[#allocation2 + $0x9a] sm:$0xff] }
  0xf5   : > { %v2599_v27 = vpop.permute.xlu0 %2598  ;;  %2818 = vrot.lane.b32.xlu2 %v4478_v57, %s3056_s23 }
  0xf6   : > { %v2601_v1 = vunpack.i.h.bf16 %v2599_v27  ;;  %v2600_v53 = vunpack.i.l.bf16 %v2599_v27 }
  0xf7   : > { %2813 = vrot.lane.b32.xlu1 %v2812_v63, %s3058_s25  ;;  %v2654_v10 = vpop.permute.xlu2 %2653 }
  0xf8   : > { %v3764_v60 = vsel %vm1668_vm4, %v3534_v13, %v2601_v1  ;;  %v3768_v8 = vsel %vm1668_vm4, %v3537_v39, %v2600_v53  ;;  %v2656_v9 = vunpack.i.h.bf16 %v2654_v10  ;;  %v2655_v12 = vunpack.i.l.bf16 %v2654_v10  ;;  %v4479_v13 = vld [vmem:[#allocation15_spill] sm:$0xff]  ;;  %v532_v10 = vld [vmem:[#allocation2 + $0xf9] sm:$0xff] }
  0xf9   : > { %v2604_v31 = vpop.permute.xlu1 %2603 }
  0xfa   : > { %v2606_v14 = vunpack.i.h.bf16 %v2604_v31  ;;  %v2605_v35 = vunpack.i.l.bf16 %v2604_v31  ;;  %v3771_v48 = vsel %vm1701_vm5, %v1673_v62, %v2655_v12  ;;  %v3774_v44 = vsel %vm1701_vm5, %v1674_v18, %v2656_v9  ;;  %v4480_v12 = vld [vmem:[#allocation17_spill] sm:$0xff] }
  0xfb   : > { %2823 = vrot.lane.b32.xlu0 %v4479_v13, %s3056_s23  ;;  %v563_v13 = vld [vmem:[#allocation2 + $0xf2] sm:$0xff] }
  0xfc   : > { %v1685_v39 = vsel %vm1668_vm4, %v3646_v45, %v2605_v35  ;;  %v1686_v4 = vsel %vm1668_vm4, %v3642_v32, %v2606_v14 }
  0xfd   : > { %v2614_v47 = vpop.permute.xlu0 %2613  ;;  %2833 = vrot.lane.b32.xlu2 %v2832_v37, %s3057_s24  ;;  %v2852_v37 = vpack.i.bf16 %v532_v10, %v531_v41  ;;  %v519_v10 = vld [vmem:[#allocation2 + $0x61] sm:$0xff] }
  0xfe   : > { %v2616_v62 = vunpack.i.h.bf16 %v2614_v47  ;;  %v2615_v51 = vunpack.i.l.bf16 %v2614_v47 }
  0xff   : > { %2828 = vrot.lane.b32.xlu1 %v2827_v36, %s3057_s24  ;;  %v2669_v18 = vpop.permute.xlu2 %2668  ;;  %v564_v36 = vld [vmem:[#allocation2 + $0xfa] sm:$0xff] }
 0x100   : > { %v3786_v50 = vsel %vm1668_vm4, %v3561_v17, %v2616_v62  ;;  %v3790_v45 = vsel %vm1668_vm4, %v3564_v2, %v2615_v51  ;;  %v2671_v32 = vunpack.i.h.bf16 %v2669_v18  ;;  %v2670_v19 = vunpack.i.l.bf16 %v2669_v18 }
 0x101   : > { %v2619_v63 = vpop.permute.xlu1 %2618  ;;  %v2842_v17 = vpack.i.bf16 %v556_v61, %v555_v40 }
 0x102   : > { %v2621_v27 = vunpack.i.h.bf16 %v2619_v63  ;;  %v2620_v57 = vunpack.i.l.bf16 %v2619_v63  ;;  %v3793_v1 = vsel %vm1701_vm5, %v1679_v54, %v2670_v19  ;;  %v3796_v53 = vsel %vm1701_vm5, %v1680_v22, %v2671_v32  ;;  %v488_v22 = vld [vmem:[#allocation2 + $0x68] sm:$0xff]  ;;  %v494_v19 = vld [vmem:[#allocation2 + $0xb0] sm:$0xff] }
 0x103   : > { %2838 = vrot.lane.b32.xlu0 %v2837_v49, %s3058_s25  ;;  %v2862_v46 = vpack.i.bf16 %v488_v22, %v487_v25  ;;  %v493_v32 = vld [vmem:[#allocation2 + $0xa8] sm:$0xff] }
 0x104   : > { %v1691_v2 = vsel %vm1668_vm4, %v3672_v38, %v2620_v57  ;;  %v1692_v55 = vsel %vm1668_vm4, %v3668_v59, %v2621_v27  ;;  %v525_v63 = vld [vmem:[#allocation2 + $0xa9] sm:$0xff]  ;;  %v526_v27 = vld [vmem:[#allocation2 + $0xb1] sm:$0xff]  ;;  %v2867_v57 = vpack.i.bf16 %v494_v19, %v493_v32 }
 0x105   : > { %v2629_v9 = vpop.permute.xlu0 %2628  ;;  %2848 = vrot.lane.b32.xlu2 %v4480_v12, %s3056_s23  ;;  %v557_v32 = vld [vmem:[#allocation2 + $0xaa] sm:$0xff]  ;;  %v558_v19 = vld [vmem:[#allocation2 + $0xb2] sm:$0xff] }
 0x106   : > { %v2631_v54 = vunpack.i.h.bf16 %v2629_v9  ;;  %v2630_v52 = vunpack.i.l.bf16 %v2629_v9  ;;  %v520_v9 = vld [vmem:[#allocation2 + $0x69] sm:$0xff] }
 0x107   : > { %2843 = vrot.lane.b32.xlu1 %v2842_v17, %s3058_s25  ;;  %v2684_v31 = vpop.permute.xlu2 %2683 }
 0x108   : > { %v3808_v38 = vsel %vm1668_vm4, %v3594_v11, %v2631_v54  ;;  %v3812_v59 = vsel %vm1668_vm4, %v3597_v56, %v2630_v52  ;;  %v2686_v14 = vunpack.i.h.bf16 %v2684_v31  ;;  %v2685_v35 = vunpack.i.l.bf16 %v2684_v31 }
 0x109   : > { %v2634_v7 = vpop.permute.xlu1 %2633  ;;  %v2857_v11 = vpack.i.bf16 %v564_v36, %v563_v13  ;;  %v2877_v54 = vpack.i.bf16 %v526_v27, %v525_v63 }
 0x10a   : > { %v2636_v47 = vunpack.i.h.bf16 %v2634_v7  ;;  %v2635_v62 = vunpack.i.l.bf16 %v2634_v7  ;;  %v3815_v51 = vsel %vm1701_vm5, %v1685_v39, %v2685_v35  ;;  %v3818_v18 = vsel %vm1701_vm5, %v1686_v4, %v2686_v14  ;;  %v551_v14 = vld [vmem:[#allocation2 + $0x62] sm:$0xff]  ;;  %v552_v35 = vld [vmem:[#allocation2 + $0x6a] sm:$0xff] }
 0x10b   : > { %2853 = vrot.lane.b32.xlu0 %v2852_v37, %s3057_s24  ;;  %v502_v7 = vld [vmem:[#allocation2 + $0x110] sm:$0xff] }
 0x10c   : > { %v1697_v56 = vsel %vm1668_vm4, %v3696_v58, %v2635_v62  ;;  %v1698_v49 = vsel %vm1668_vm4, %v3692_v28, %v2636_v47  ;;  %v2882_v47 = vpack.i.bf16 %v552_v35, %v551_v14 }
 0x10d   : > { %v2644_v40 = vpop.permute.xlu0 %2643  ;;  %2863 = vrot.lane.b32.xlu2 %v2862_v46, %s3056_s23 }
 0x10e   : > { %v2646_v61 = vunpack.i.h.bf16 %v2644_v40  ;;  %v2645_v39 = vunpack.i.l.bf16 %v2644_v40 }
 0x10f   : > { %2858 = vrot.lane.b32.xlu1 %v2857_v11, %s3058_s25  ;;  %v2699_v4 = vpop.permute.xlu2 %2698 }
 0x110   : > { %v3829_v17 = vsel %vm1701_vm5, %v3621_v0, %v2646_v61  ;;  %v3833_v28 = vsel %vm1701_vm5, %v3624_v21, %v2645_v39  ;;  %v2701_v58 = vunpack.i.h.bf16 %v2699_v4  ;;  %v2700_v41 = vunpack.i.l.bf16 %v2699_v4 }
 0x111   : > { %v2649_v12 = vpop.permute.xlu1 %2648  ;;  %v2872_v0 = vpack.i.bf16 %v520_v9, %v519_v10 }
 0x112   : > { %v2651_v52 = vunpack.i.h.bf16 %v2649_v12  ;;  %v2650_v25 = vunpack.i.l.bf16 %v2649_v12  ;;  %v3836_v22 = vsel %vm1701_vm5, %v1691_v2, %v2700_v41  ;;  %v3839_v31 = vsel %vm1701_vm5, %v1692_v55, %v2701_v58  ;;  %v501_v55 = vld [vmem:[#allocation2 + $0x108] sm:$0xff]  ;;  %v507_v58 = vld [vmem:[#allocation2 + $0x150] sm:$0xff]  ;;  %v508_v41 = vld [vmem:[#allocation2 + $0x158] sm:$0xff] }
 0x113   : > { %2868 = vrot.lane.b32.xlu0 %v2867_v57, %s3056_s23  ;;  %v2892_v61 = vpack.i.bf16 %v502_v7, %v501_v55  ;;  %v540_v12 = vld [vmem:[#allocation2 + $0x159] sm:$0xff]  ;;  %v565_v7 = vld [vmem:[#allocation2 + $0x10a] sm:$0xff] }
 0x114   : > { %v3844_v21 = vsel %vm1701_vm5, %v3716_v24, %v2650_v25  ;;  %v3848_v37 = vsel %vm1701_vm5, %v3720_v42, %v2651_v52  ;;  %v2897_v52 = vpack.i.bf16 %v508_v41, %v507_v58  ;;  %v533_v25 = vld [vmem:[#allocation2 + $0x109] sm:$0xff] }
 0x115   : > { %v2659_v13 = vpop.permute.xlu0 %2658  ;;  %2878 = vrot.lane.b32.xlu2 %v2877_v54, %s3057_s24 }
 0x116   : > { %v2661_v2 = vunpack.i.h.bf16 %v2659_v13  ;;  %v2660_v36 = vunpack.i.l.bf16 %v2659_v13 }
 0x117   : > { %2873 = vrot.lane.b32.xlu1 %v2872_v0, %s3057_s24  ;;  %v2714_v46 = vpop.permute.xlu2 %2713  ;;  %v534_v0 = vld [vmem:[#allocation2 + $0x111] sm:$0xff] }
 0x118   : > { %v3854_v24 = vsel %vm1701_vm5, %v3649_v3, %v2661_v2  ;;  %v3858_v42 = vsel %vm1701_vm5, %v3652_v23, %v2660_v36  ;;  %v2716_v62 = vunpack.i.h.bf16 %v2714_v46  ;;  %v2715_v11 = vunpack.i.l.bf16 %v2714_v46  ;;  %v566_v46 = vld [vmem:[#allocation2 + $0x112] sm:$0xff] }
 0x119   : > { %v2664_v40 = vpop.permute.xlu1 %2663  ;;  %v2887_v3 = vpack.i.bf16 %v558_v19, %v557_v32  ;;  %v2902_v36 = vpack.i.bf16 %v534_v0, %v533_v25  ;;  %v490_v32 = vld [vmem:[#allocation2 + $0x80] sm:$0xff]  ;;  %v528_v0 = vld [vmem:[#allocation2 + $0xc9] sm:$0xff] }
 0x11a   : > { %v2666_v39 = vunpack.i.h.bf16 %v2664_v40  ;;  %v2665_v63 = vunpack.i.l.bf16 %v2664_v40  ;;  %v3861_v27 = vsel %vm1701_vm5, %v1697_v56, %v2715_v11  ;;  %v3864_v4 = vsel %vm1701_vm5, %v1698_v49, %v2716_v62  ;;  %v539_v49 = vld [vmem:[#allocation2 + $0x151] sm:$0xff]  ;;  %v527_v25 = vld [vmem:[#allocation2 + $0xc1] sm:$0xff] }
 0x11b   : > { %2883 = vrot.lane.b32.xlu0 %v2882_v47, %s3058_s25  ;;  %v2907_v35 = vpack.i.bf16 %v540_v12, %v539_v49  ;;  %v489_v11 = vld [vmem:[#allocation2 + $0x78] sm:$0xff]  ;;  %v2912_v40 = vpack.i.bf16 %v566_v46, %v565_v7  ;;  %v496_v49 = vld [vmem:[#allocation2 + $0xc8] sm:$0xff] }
 0x11c   : > { %v3869_v23 = vsel %vm1701_vm5, %v3746_v6, %v2665_v63  ;;  %v3873_v57 = vsel %vm1701_vm5, %v3742_v15, %v2666_v39  ;;  %v572_v39 = vld [vmem:[#allocation2 + $0x15a] sm:$0xff] }
 0x11d   : > { %v2674_v10 = vpop.permute.xlu0 %2673  ;;  %2893 = vrot.lane.b32.xlu2 %v2892_v61, %s3056_s23  ;;  %v571_v61 = vld [vmem:[#allocation2 + $0x152] sm:$0xff]  ;;  %v522_v7 = vld [vmem:[#allocation2 + $0x81] sm:$0xff] }
 0x11e   : > { %v2676_v56 = vunpack.i.h.bf16 %v2674_v10  ;;  %v2675_v9 = vunpack.i.l.bf16 %v2674_v10  ;;  %v2917_v10 = vpack.i.bf16 %v572_v39, %v571_v61  ;;  %v553_v61 = vld [vmem:[#allocation2 + $0x7a] sm:$0xff]  ;;  %v554_v39 = vld [vmem:[#allocation2 + $0x82] sm:$0xff] }
 0x11f   : > { %2888 = vrot.lane.b32.xlu1 %v2887_v3, %s3058_s25  ;;  %v3877_v54 = vpop.permute.xlu2 %2728  ;;  %v2922_v3 = vpack.i.bf16 %v490_v32, %v489_v11 }
 0x120   : > { %v3881_v6 = vsel %vm1701_vm5, %v3675_v5, %v2675_v9  ;;  %v3885_v15 = vsel %vm1701_vm5, %v3678_v16, %v2676_v56  ;;  %v495_v9 = vld [vmem:[#allocation2 + $0xc0] sm:$0xff] }
 0x121   : > { %v2679_v14 = vpop.permute.xlu1 %2678 }
 0x122   : > { %v2681_v13 = vunpack.i.h.bf16 %v2679_v14  ;;  %v2680_v2 = vunpack.i.l.bf16 %v2679_v14 }
 0x123   : > { %2898 = vrot.lane.b32.xlu0 %v2897_v52, %s3056_s23 }
 0x124   : > { %v1716_v55 = vsel %vm1701_vm5, %v3768_v8, %v2680_v2  ;;  %v1717_v5 = vsel %vm1701_vm5, %v3764_v60, %v2681_v13 }
 0x125   : > { %v2689_v47 = vpop.permute.xlu0 %2688  ;;  %2908 = vrot.lane.b32.xlu2 %v2907_v35, %s3057_s24  ;;  %v2927_v35 = vpack.i.bf16 %v496_v49, %v495_v9 }
 0x126   : > { %v2691_v16 = vunpack.i.h.bf16 %v2689_v47  ;;  %v2690_v62 = vunpack.i.l.bf16 %v2689_v47  ;;  %v2937_v47 = vpack.i.bf16 %v528_v0, %v527_v25 }
 0x127   : > { %2903 = vrot.lane.b32.xlu1 %v2902_v36, %s3057_s24  ;;  %v3894_v19 = vpop.permute.xlu2 %2743  ;;  %v521_v36 = vld [vmem:[#allocation2 + $0x79] sm:$0xff] }
 0x128   : > { %v3898_v8 = vsel %vm1701_vm5, %v3699_v33, %v2690_v62  ;;  %v3902_v60 = vsel %vm1701_vm5, %v3702_v20, %v2691_v16 }
 0x129   : > { %v2694_v63 = vpop.permute.xlu1 %2693 }
 0x12a   : > { %v2696_v58 = vunpack.i.h.bf16 %v2694_v63  ;;  %v2695_v41 = vunpack.i.l.bf16 %v2694_v63 }
 0x12b   : > { %2913 = vrot.lane.b32.xlu0 %v2912_v40, %s3058_s25 }
 0x12c   : > { %v1722_v56 = vsel %vm1701_vm5, %v3790_v45, %v2695_v41  ;;  %v1723_v33 = vsel %vm1701_vm5, %v3786_v50, %v2696_v58  ;;  %v503_v58 = vld [vmem:[#allocation2 + $0x120] sm:$0xff]  ;;  %v504_v41 = vld [vmem:[#allocation2 + $0x128] sm:$0xff] }
 0x12d   : > { %v2704_v12 = vpop.permute.xlu0 %2703  ;;  %2923 = vrot.lane.b32.xlu2 %v2922_v3, %s3056_s23  ;;  %v2952_v25 = vpack.i.bf16 %v504_v41, %v503_v58 }
 0x12e   : > { %v2706_v20 = vunpack.i.h.bf16 %v2704_v12  ;;  %v2705_v52 = vunpack.i.l.bf16 %v2704_v12  ;;  %v559_v12 = vld [vmem:[#allocation2 + $0xc2] sm:$0xff] }
 0x12f   : > { %2918 = vrot.lane.b32.xlu1 %v2917_v10, %s3058_s25  ;;  %v2759_v14 = vpop.permute.xlu2 %2758  ;;  %v2942_v10 = vpack.i.bf16 %v554_v39, %v553_v61  ;;  %v535_v61 = vld [vmem:[#allocation2 + $0x121] sm:$0xff]  ;;  %v536_v39 = vld [vmem:[#allocation2 + $0x129] sm:$0xff] }
 0x130   : > { %v3913_v13 = vsel %vm1701_vm5, %v3723_v30, %v2705_v52  ;;  %v3917_v50 = vsel %vm1701_vm5, %v3726_v29, %v2706_v20  ;;  %v2761_v45 = vunpack.i.h.bf16 %v2759_v14  ;;  %v2760_v2 = vunpack.i.l.bf16 %v2759_v14  ;;  %v560_v20 = vld [vmem:[#allocation2 + $0xca] sm:$0xff] }
 0x131   : > { %v2709_v46 = vpop.permute.xlu1 %2708  ;;  %v2932_v30 = vpack.i.bf16 %v522_v7, %v521_v36  ;;  %v541_v7 = vld [vmem:[#allocation2 + $0x169] sm:$0xff] }
 0x132   : > { %v2711_v16 = vunpack.i.h.bf16 %v2709_v46  ;;  %v2710_v62 = vunpack.i.l.bf16 %v2709_v46  ;;  %v3920_v11 = vsel %vm1734_vm6, %v1716_v55, %v2760_v2  ;;  %v3923_v32 = vsel %vm1734_vm6, %v1717_v5, %v2761_v45  ;;  %v510_v45 = vld [vmem:[#allocation2 + $0x170] sm:$0xff] }
 0x133   : > { %2928 = vrot.lane.b32.xlu0 %v2927_v35, %s3056_s23  ;;  %v509_v35 = vld [vmem:[#allocation2 + $0x168] sm:$0xff]  ;;  %v542_v46 = vld [vmem:[#allocation2 + $0x171] sm:$0xff] }
 0x134   : > { %v1728_v29 = vsel %vm1701_vm5, %v3812_v59, %v2710_v62  ;;  %v1729_v40 = vsel %vm1701_vm5, %v3808_v38, %v2711_v16 }
 0x135   : > { %v2719_v63 = vpop.permute.xlu0 %2718  ;;  %2938 = vrot.lane.b32.xlu2 %v2937_v47, %s3057_s24 }
 0x136   : > { %v2721_v3 = vunpack.i.h.bf16 %v2719_v63  ;;  %v2720_v55 = vunpack.i.l.bf16 %v2719_v63  ;;  %v1886_v63 = vld [vmem:[%s4433_s1 + $0x10] sm:$0x3] }
 0x137   : > { %2933 = vrot.lane.b32.xlu1 %v2932_v30, %s3057_s24  ;;  %v2774_v5 = vpop.permute.xlu2 %2773  ;;  %v1896_v58 = vunpack.c.l.b16 %v1886_v63  ;;  %v529_v63 = vld [vmem:[#allocation2 + $0xd9] sm:$0xff] }
 0x138   : > { %v3934_v9 = vsel %vm1701_vm5, %v3749_v34, %v2720_v55  ;;  %v3938_v38 = vsel %vm1701_vm5, %v3752_v26, %v2721_v3  ;;  %v2776_v59 = vunpack.i.h.bf16 %v2774_v5  ;;  %v2775_v49 = vunpack.i.l.bf16 %v2774_v5 }
 0x139   : > { %v3940_v52 = vpop.permute.xlu1 %2723  ;;  %v2947_v34 = vpack.i.bf16 %v560_v20, %v559_v12  ;;  %v2967_v55 = vpack.i.bf16 %v542_v46, %v541_v7  ;;  %v567_v20 = vld [vmem:[#allocation2 + $0x122] sm:$0xff]  ;;  %v573_v7 = vld [vmem:[#allocation2 + $0x16a] sm:$0xff]  ;;  %v574_v46 = vld [vmem:[#allocation2 + $0x172] sm:$0xff] }
 0x13a   : > { %v3943_v0 = vsel %vm1734_vm6, %v1722_v56, %v2775_v49  ;;  %v3946_v14 = vsel %vm1734_vm6, %v1723_v33, %v2776_v59  ;;  %v2957_v56 = vpack.i.bf16 %v510_v45, %v509_v35  ;;  %v1899_v59 = vpack.c.b16 %v1896_v58, %v1896_v58  ;;  %v497_v45 = vld [vmem:[#allocation2 + $0xd8] sm:$0xff] }
 0x13b   : > { %2943 = vrot.lane.b32.xlu0 %v2942_v10, %s3058_s25 }
 0x13d   : > { %v2734_v26 = vpop.permute.xlu0 %2733  ;;  %2953 = vrot.lane.b32.xlu2 %v2952_v25, %s3056_s23  ;;  %v568_v25 = vld [vmem:[#allocation2 + $0x12a] sm:$0xff] }
 0x13e   : > { %v2736_v2 = vunpack.i.h.bf16 %v2734_v26  ;;  %v2735_v36 = vunpack.i.l.bf16 %v2734_v26  ;;  %v498_v26 = vld [vmem:[#allocation2 + $0xe0] sm:$0xff] }
 0x13f   : > { %2948 = vrot.lane.b32.xlu1 %v2947_v34, %s3058_s25  ;;  %v2789_v47 = vpop.permute.xlu2 %2788 }
 0x140   : > { %v3953_v33 = vsel %vm1734_vm6, %v3771_v48, %v2735_v36  ;;  %v3957_v16 = vsel %vm1734_vm6, %v3774_v44, %v2736_v2  ;;  %v2791_v62 = vunpack.i.h.bf16 %v2789_v47  ;;  %v2790_v30 = vunpack.i.l.bf16 %v2789_v47  ;;  %v2375_v47 = vld [vmem:[%s4433_s1 + $0x8] sm:$0xff] }
 0x141   : > { %v2739_v3 = vpop.permute.xlu1 %2738  ;;  %v2962_v44 = vpack.i.bf16 %v536_v39, %v535_v61  ;;  %v2972_v2 = vpack.i.bf16 %v568_v25, %v567_v20 }
 0x142   : > { %v2741_v41 = vunpack.i.h.bf16 %v2739_v3  ;;  %v2740_v5 = vunpack.i.l.bf16 %v2739_v3  ;;  %v3963_v48 = vsel %vm1734_vm6, %v1728_v29, %v2790_v30  ;;  %v3966_v10 = vsel %vm1734_vm6, %v1729_v40, %v2791_v62  ;;  %v530_v3 = vld [vmem:[#allocation2 + $0xe1] sm:$0xff] }
 0x143   : > { %2958 = vrot.lane.b32.xlu0 %v2957_v56, %s3056_s23  ;;  %v1953_v40 = vsel %vm1951_vm7, %v1899_v59, 0  ;;  %v2982_v62 = vpack.i.bf16 %v498_v26, %v497_v45  ;;  %v562_v59 = vld [vmem:[#allocation2 + $0xe2] sm:$0xff] }
 0x144   : > { %v3971_v49 = vsel %vm1734_vm6, %v3858_v42, %v2740_v5  ;;  %v3975_v12 = vsel %vm1734_vm6, %v3854_v24, %v2741_v41  ;;  %1960 = vmatpush.bf16.msra.mxu0 %v1953_v40  ;;  %2376 = vmatpush.bf16.msra.mxu1 %v1953_v40  ;;  %v505_v41 = vld [vmem:[#allocation2 + $0x138] sm:$0xff]  ;;  %v506_v5 = vld [vmem:[#allocation2 + $0x140] sm:$0xff] }
 0x145   : > { %v2749_v29 = vpop.permute.xlu0 %2748  ;;  %2968 = vrot.lane.b32.xlu2 %v2967_v55, %s3057_s24  ;;  %2377 = vmatpush.bf16.msra.mxu2 %v1953_v40  ;;  %v2374_v55 = vld [vmem:[%s4433_s1] sm:$0xff]  ;;  %v2997_v25 = vpack.i.bf16 %v506_v5, %v505_v41 }
 0x146   : > { %v2751_v34 = vunpack.i.h.bf16 %v2749_v29  ;;  %v2750_v35 = vunpack.i.l.bf16 %v2749_v29  ;;  %2378 = vmatpush.bf16.msra.mxu3 %v1953_v40  ;;  %v511_v26 = vld [vmem:[#allocation2 + $0x180] sm:$0xff] }
 0x147   : > { %2963 = vrot.lane.b32.xlu1 %v2962_v44, %s3057_s24  ;;  %v3979_v42 = vpop.permute.xlu2 %2803  ;;  %v561_v44 = vld [vmem:[#allocation2 + $0xda] sm:$0xff] }
 0x148   : > { %v3983_v24 = vsel %vm1734_vm6, %v3793_v1, %v2750_v35  ;;  %v3987_v36 = vsel %vm1734_vm6, %v3796_v53, %v2751_v34  ;;  %1961 = vmatpush.bf16.msra.mxu0 %v2375_v47  ;;  %2379 = vmatpush.bf16.msra.mxu1 %v2375_v47  ;;  %v2977_v1 = vpack.i.bf16 %v574_v46, %v573_v7 }
 0x149   : > { %v2754_v56 = vpop.permute.xlu1 %2753  ;;  %2380 = vmatpush.bf16.msra.mxu2 %v2375_v47  ;;  %v2992_v34 = vpack.i.bf16 %v562_v59, %v561_v44  ;;  %v570_v59 = vld [vmem:[#allocation2 + $0x142] sm:$0xff] }
 0x14a   : > { %v2756_v30 = vunpack.i.h.bf16 %v2754_v56  ;;  %v2755_v61 = vunpack.i.l.bf16 %v2754_v56  ;;  %2381 = vmatpush.bf16.msra.mxu3 %v2375_v47  ;;  %v543_v56 = vld [vmem:[#allocation2 + $0x181] sm:$0xff] }
 0x14b   : > { %2973 = vrot.lane.b32.xlu0 %v2972_v2, %s3058_s25  ;;  %v512_v2 = vld [vmem:[#allocation2 + $0x188] sm:$0xff] }
 0x14c   : > { %v3995_v53 = vsel %vm1734_vm6, %v3881_v6, %v2755_v61  ;;  %v3999_v39 = vsel %vm1734_vm6, %v3885_v15, %v2756_v30  ;;  %1962 = vmatpush.bf16.msra.mxu0 %v2374_v55  ;;  %2382 = vmatpush.bf16.msra.mxu1 %v2374_v55  ;;  %v2987_v15 = vpack.i.bf16 %v530_v3, %v529_v63  ;;  %v537_v61 = vld [vmem:[#allocation2 + $0x139] sm:$0xff] }
 0x14d   : > { %v4004_v58 = vpop.permute.xlu0 %2763  ;;  %2983 = vrot.lane.b32.xlu2 %v2982_v62, %s3056_s23  ;;  %2383 = vmatpush.bf16.msra.mxu2 %v2374_v55  ;;  %v544_v62 = vld [vmem:[#allocation2 + $0x189] sm:$0xff]  ;;  %v3002_v30 = vpack.i.bf16 %v512_v2, %v511_v26 }
 0x14e   : > { %2384 = vmatpush.bf16.msra.mxu3 %v2374_v55  ;;  %v3012_v55 = vpack.i.bf16 %v544_v62, %v543_v56 }
 0x14f   : > { %2978 = vrot.lane.b32.xlu1 %v2977_v1, %s3058_s25  ;;  %v4008_v6 = vpop.permute.xlu2 %2818  ;;  %v538_v1 = vld [vmem:[#allocation2 + $0x141] sm:$0xff] }
 0x151   : > { %v2769_v20 = vpop.permute.xlu1 %2768 }
 0x152   : > { %v2771_v29 = vunpack.i.h.bf16 %v2769_v20  ;;  %v2770_v40 = vunpack.i.l.bf16 %v2769_v20 }
 0x153   : > { %2988 = vrot.lane.b32.xlu0 %v2987_v15, %s3057_s24  ;;  %v3007_v15 = vpack.i.bf16 %v538_v1, %v537_v61  ;;  %v546_v61 = vld [vmem:[#allocation2 + $0x1a1] sm:$0xff]  ;;  %v2725_v1 = vunpack.i.l.bf16 %v3940_v52 }
 0x154   : > { %v4013_v35 = vsel %vm1734_vm6, %v3898_v8, %v2770_v40  ;;  %v4017_v45 = vsel %vm1734_vm6, %v3902_v60, %v2771_v29  ;;  %v513_v40 = vld [vmem:[#allocation2 + $0x198] sm:$0xff] }
 0x155   : > { %v2779_v7 = vpop.permute.xlu0 %2778  ;;  %2998 = vrot.lane.b32.xlu2 %v2997_v25, %s3056_s23 }
 0x156   : > { %v2781_v46 = vunpack.i.h.bf16 %v2779_v7  ;;  %v2780_v47 = vunpack.i.l.bf16 %v2779_v7 }
 0x157   : > { %2993 = vrot.lane.b32.xlu1 %v2992_v34, %s3058_s25  ;;  %v4029_v3 = vpop.permute.xlu2 %2833  ;;  %v514_v34 = vld [vmem:[#allocation2 + $0x1a0] sm:$0xff] }
 0x158   : > { %v4023_v8 = vsel %vm1734_vm6, %v3836_v22, %v2780_v47  ;;  %v4027_v60 = vsel %vm1734_vm6, %v3839_v31, %v2781_v46  ;;  %v569_v31 = vld [vmem:[#allocation2 + $0x13a] sm:$0xff]  ;;  %v3027_v7 = vpack.i.bf16 %v514_v34, %v513_v40 }
 0x159   : > { %v2784_v63 = vpop.permute.xlu1 %2783  ;;  %v3017_v26 = vpack.i.bf16 %v570_v59, %v569_v31  ;;  %v578_v31 = vld [vmem:[#allocation2 + $0x1a2] sm:$0xff] }
 0x15a   : > { %v2786_v41 = vunpack.i.h.bf16 %v2784_v63  ;;  %v2785_v5 = vunpack.i.l.bf16 %v2784_v63 }
 0x15b   : > { %3003 = vrot.lane.b32.xlu0 %v3002_v30, %s3056_s23  ;;  %v545_v30 = vld [vmem:[#allocation2 + $0x199] sm:$0xff] }
 0x15c   : > { %v4034_v44 = vsel %vm1734_vm6, %v3913_v13, %v2785_v5  ;;  %v4038_v22 = vsel %vm1734_vm6, %v3917_v50, %v2786_v41  ;;  %v2805_v41 = vunpack.i.l.bf16 %v3979_v42 }
 0x15d   : > { %v2794_v20 = vpop.permute.xlu0 %2793  ;;  %3013 = vrot.lane.b32.xlu2 %v3012_v55, %s3057_s24  ;;  %v2806_v55 = vunpack.i.h.bf16 %v3979_v42 }
 0x15e   : > { %v2796_v25 = vunpack.i.h.bf16 %v2794_v20  ;;  %v2795_v29 = vunpack.i.l.bf16 %v2794_v20 }
 0x15f   : > { %3008 = vrot.lane.b32.xlu1 %v3007_v15, %s3057_s24  ;;  %v4050_v56 = vpop.permute.xlu2 %2848  ;;  %v577_v15 = vld [vmem:[#allocation2 + $0x19a] sm:$0xff] }
 0x160   : > { %v4044_v13 = vsel %vm1734_vm6, %v3861_v27, %v2795_v29  ;;  %v4048_v50 = vsel %vm1734_vm6, %v3864_v4, %v2796_v25  ;;  %v2726_v4 = vunpack.i.h.bf16 %v3940_v52  ;;  %v1735_v52 = vsel %vm1734_vm6, %v3833_v28, %v2725_v1 }
 0x161   : > { %v2799_v2 = vpop.permute.xlu1 %2798  ;;  %v1768_v42 = vsel %vm1767_vm8, %v1735_v52, %v2805_v41 }
 0x162   : > { %v2801_v46 = vunpack.i.h.bf16 %v2799_v2  ;;  %v2800_v47 = vunpack.i.l.bf16 %v2799_v2  ;;  %v1736_v59 = vsel %vm1734_vm6, %v3829_v17, %v2726_v4  ;;  %v2820_v4 = vunpack.i.l.bf16 %v4008_v6 }
 0x163   : > { %3018 = vrot.lane.b32.xlu0 %v3017_v26, %s3058_s25  ;;  %v1769_v25 = vsel %vm1767_vm8, %v1736_v59, %v2806_v55  ;;  %v3037_v26 = vpack.i.bf16 %v578_v31, %v577_v15 }
 0x164   : > { %v4055_v62 = vsel %vm1734_vm6, %v3934_v9, %v2800_v47  ;;  %v4059_v27 = vsel %vm1734_vm6, %v3938_v38, %v2801_v46  ;;  %v3032_v38 = vpack.i.bf16 %v546_v61, %v545_v30  ;;  %v2731_v47 = vunpack.i.h.bf16 %v3877_v54 }
 0x165   : > { %v2809_v63 = vpop.permute.xlu0 %2808  ;;  %3028 = vrot.lane.b32.xlu2 %v3027_v7, %s3056_s23  ;;  %v2730_v30 = vunpack.i.l.bf16 %v3877_v54  ;;  %v2821_v61 = vunpack.i.h.bf16 %v4008_v6  ;;  %v2745_v54 = vunpack.i.l.bf16 %v3894_v19 }
 0x166   : > { %v2811_v9 = vunpack.i.h.bf16 %v2809_v63  ;;  %v2810_v5 = vunpack.i.l.bf16 %v2809_v63 }
 0x167   : > { %3023 = vrot.lane.b32.xlu1 %v3730_v43, %s3058_s25  ;;  %v4079_v17 = vpop.permute.xlu2 %2863  ;;  %v1737_v41 = vsel %vm1734_vm6, %v3844_v21, %v2730_v30 }
 0x168   : > { %v1801_v43 = vsel %vm1800_vm9, %v1768_v42, %v2810_v5  ;;  %v1802_v34 = vsel %vm1800_vm9, %v1769_v25, %v2811_v9  ;;  %v1738_v9 = vsel %vm1734_vm6, %v3848_v37, %v2731_v47  ;;  %v2746_v5 = vunpack.i.h.bf16 %v3894_v19 }
 0x169   : > { %v2814_v20 = vpop.permute.xlu1 %2813  ;;  %v1771_v15 = vsel %vm1767_vm8, %v1738_v9, %v2821_v61  ;;  %v1743_v37 = vsel %vm1734_vm6, %v3869_v23, %v2745_v54  ;;  %v2836_v19 = vunpack.i.h.bf16 %v4029_v3  ;;  %v2766_v61 = vunpack.i.h.bf16 %v4004_v58 }
 0x16a   : > { %v2816_v29 = vunpack.i.h.bf16 %v2814_v20  ;;  %v2815_v40 = vunpack.i.l.bf16 %v2814_v20  ;;  %v1744_v25 = vsel %vm1734_vm6, %v3873_v57, %v2746_v5 }
 0x16b   : > { %3033 = vrot.lane.b32.xlu0 %v3032_v38, %s3057_s24  ;;  %v1770_v38 = vsel %vm1767_vm8, %v1737_v41, %v2820_v4  ;;  %v2765_v4 = vunpack.i.l.bf16 %v4004_v58  ;;  %v2850_v41 = vunpack.i.l.bf16 %v4050_v56 }
 0x16c   : > { %v1834_v28 = vsel %vm1833_vm10, %v1801_v43, %v2815_v40  ;;  %v1835_v2 = vsel %vm1833_vm10, %v1802_v34, %v2816_v29  ;;  %v2835_v29 = vunpack.i.l.bf16 %v4029_v3 }
 0x16d   : > { %v2824_v7 = vpop.permute.xlu0 %2823  ;;  %v1866_v46 = vpack.c.bf16 %v1835_v2, %v1834_v28  ;;  %v1751_v54 = vsel %vm1734_vm6, %v3815_v51, %v2765_v4 }
 0x16e   : > { %v2826_v31 = vunpack.i.h.bf16 %v2824_v7  ;;  %v2825_v52 = vunpack.i.l.bf16 %v2824_v7 }
 0x16f   : > { %3038 = vrot.lane.b32.xlu1 %v3037_v26, %s3058_s25  ;;  %2354 = vmatmul.msk.bf16.vlgmr.msra.gmra.mxu0 %vm1902_vm11, %v1866_v46  ;;  %v4103_v40 = vpop.permute.xlu2 %2878 }
 0x170   : > { %v1776_v43 = vsel %vm1767_vm8, %v1743_v37, %v2825_v52  ;;  %v1777_v34 = vsel %vm1767_vm8, %v1744_v25, %v2826_v31  ;;  %v1784_v31 = vsel %vm1767_vm8, %v1751_v54, %v2850_v41  ;;  %v2865_v25 = vunpack.i.l.bf16 %v4079_v17 }
 0x171   : > { %v2829_v1 = vpop.permute.xlu1 %2828  ;;  %v1809_v57 = vsel %vm1800_vm9, %v1776_v43, %v2835_v29  ;;  %v1810_v47 = vsel %vm1800_vm9, %v1777_v34, %v2836_v19 }
 0x172   : > { %v2831_v63 = vunpack.i.h.bf16 %v2829_v1  ;;  %v2830_v55 = vunpack.i.l.bf16 %v2829_v1 }
 0x174   : > { %v1803_v6 = vsel %vm1800_vm9, %v1770_v38, %v2830_v55  ;;  %v1804_v59 = vsel %vm1800_vm9, %v1771_v15, %v2831_v63  ;;  %v2851_v55 = vunpack.i.h.bf16 %v4050_v56  ;;  %v1752_v38 = vsel %vm1734_vm6, %v3818_v18, %v2766_v61 }
 0x175   : > { %v2839_v20 = vpop.permute.xlu0 %2838  ;;  %v2866_v18 = vunpack.i.h.bf16 %v4079_v17  ;;  %v2881_v17 = vunpack.i.h.bf16 %v4103_v40 }
 0x176   : > { %v2841_v42 = vunpack.i.h.bf16 %v2839_v20  ;;  %v2840_v21 = vunpack.i.l.bf16 %v2839_v20  ;;  %v1785_v52 = vsel %vm1767_vm8, %v1752_v38, %v2851_v55 }
 0x177   : > { %v2894_v15 = vpop.permute.xlu2 %2893 }
 0x178   : > { %v1836_v26 = vsel %vm1833_vm10, %v1803_v6, %v2840_v21  ;;  %v1837_v28 = vsel %vm1833_vm10, %v1804_v59, %v2841_v42 }
 0x179   : > { %v2844_v2 = vpop.permute.xlu1 %2843  ;;  %v1867_v7 = vpack.c.bf16 %v1837_v28, %v1836_v26  ;;  %v1772_v26 = vsel %vm1767_vm8, %v3953_v33, %v2865_v25  ;;  %v1773_v28 = vsel %vm1767_vm8, %v3957_v16, %v2866_v18 }
 0x17a   : > { %v2846_v23 = vunpack.i.h.bf16 %v2844_v2  ;;  %v2845_v46 = vunpack.i.l.bf16 %v2844_v2 }
 0x17c   : > { %v1842_v3 = vsel %vm1833_vm10, %v1809_v57, %v2845_v46  ;;  %v1843_v30 = vsel %vm1833_vm10, %v1810_v47, %v2846_v23 }
 0x17d   : > { %v2854_v1 = vpop.permute.xlu0 %2853  ;;  %v1870_v63 = vpack.c.bf16 %v1843_v30, %v1842_v3  ;;  %v2880_v30 = vunpack.i.l.bf16 %v4103_v40 }
 0x17e   : > { %v2856_v9 = vunpack.i.h.bf16 %v2854_v1  ;;  %v2855_v5 = vunpack.i.l.bf16 %v2854_v1 }
 0x17f   : > { %2355 = vmatmul.msk.bf16.gmra.mxu0 %vm1902_vm11, %v1867_v7  ;;  %2358 = vmatmul.msk.bf16.vlgmr.msra.gmra.mxu1 %vm1902_vm11, %v1870_v63  ;;  %v2909_v34 = vpop.permute.xlu2 %2908 }
 0x180   : > { %v1817_v59 = vsel %vm1800_vm9, %v1784_v31, %v2855_v5  ;;  %v1818_v20 = vsel %vm1800_vm9, %v1785_v52, %v2856_v9  ;;  %v2895_v31 = vunpack.i.l.bf16 %v2894_v15 }
 0x181   : > { %v2859_v58 = vpop.permute.xlu1 %2858 }
 0x182   : > { %v2861_v6 = vunpack.i.h.bf16 %v2859_v58  ;;  %v2860_v56 = vunpack.i.l.bf16 %v2859_v58  ;;  %v2896_v58 = vunpack.i.h.bf16 %v2894_v15  ;;  %v2910_v15 = vunpack.i.l.bf16 %v2909_v34 }
 0x184   : > { %v1850_v42 = vsel %vm1833_vm10, %v1817_v59, %v2860_v56  ;;  %v1851_v21 = vsel %vm1833_vm10, %v1818_v20, %v2861_v6  ;;  %v1786_v59 = vsel %vm1767_vm8, %v4013_v35, %v2895_v31  ;;  %v1787_v20 = vsel %vm1767_vm8, %v4017_v45, %v2896_v58 }
 0x185   : > { %v2869_v51 = vpop.permute.xlu0 %2868  ;;  %v1874_v37 = vpack.c.bf16 %v1851_v21, %v1850_v42 }
 0x186   : > { %v2871_v2 = vunpack.i.h.bf16 %v2869_v51  ;;  %v2870_v7 = vunpack.i.l.bf16 %v2869_v51 }
 0x187   : > { %2362 = vmatmul.msk.bf16.vlgmr.msra.gmra.mxu2 %vm1902_vm11, %v1874_v37  ;;  %v2924_v54 = vpop.permute.xlu2 %2923 }
 0x188   : > { %v1778_v61 = vsel %vm1767_vm8, %v3983_v24, %v2870_v7  ;;  %v1779_v33 = vsel %vm1767_vm8, %v3987_v36, %v2871_v2 }
 0x189   : > { %v2874_v19 = vpop.permute.xlu1 %2873  ;;  %v1811_v9 = vsel %vm1800_vm9, %v1778_v61, %v2880_v30  ;;  %v1812_v40 = vsel %vm1800_vm9, %v1779_v33, %v2881_v17  ;;  %v2926_v17 = vunpack.i.h.bf16 %v2924_v54  ;;  %v2925_v30 = vunpack.i.l.bf16 %v2924_v54 }
 0x18a   : > { %v2876_v29 = vunpack.i.h.bf16 %v2874_v19  ;;  %v2875_v43 = vunpack.i.l.bf16 %v2874_v19 }
 0x18c   : > { %v1805_v23 = vsel %vm1800_vm9, %v1772_v26, %v2875_v43  ;;  %v1806_v46 = vsel %vm1800_vm9, %v1773_v28, %v2876_v29  ;;  %v2911_v29 = vunpack.i.h.bf16 %v2909_v34 }
 0x18d   : > { %v2884_v57 = vpop.permute.xlu0 %2883 }
 0x18e   : > { %v2886_v47 = vunpack.i.h.bf16 %v2884_v57  ;;  %v2885_v3 = vunpack.i.l.bf16 %v2884_v57 }
 0x18f   : > { %v2939_v43 = vpop.permute.xlu2 %2938 }
 0x190   : > { %v1838_v16 = vsel %vm1833_vm10, %v1805_v23, %v2885_v3  ;;  %v1839_v4 = vsel %vm1833_vm10, %v1806_v46, %v2886_v47  ;;  %v2941_v54 = vunpack.i.h.bf16 %v2939_v43 }
 0x191   : > { %v2889_v1 = vpop.permute.xlu1 %2888  ;;  %v1868_v63 = vpack.c.bf16 %v1839_v4, %v1838_v16 }
 0x192   : > { %v2891_v55 = vunpack.i.h.bf16 %v2889_v1  ;;  %v2890_v41 = vunpack.i.l.bf16 %v2889_v1  ;;  %v1774_v1 = vsel %vm1767_vm8, %v3971_v49, %v2925_v30 }
 0x193   : > { %2356 = vmatmul.msk.bf16.gmra.mxu0 %vm1902_vm11, %v1868_v63  ;;  %v1775_v63 = vsel %vm1767_vm8, %v3975_v12, %v2926_v17 }
 0x194   : > { %v1844_v5 = vsel %vm1833_vm10, %v1811_v9, %v2890_v41  ;;  %v1845_v24 = vsel %vm1833_vm10, %v1812_v40, %v2891_v55 }
 0x195   : > { %v2899_v36 = vpop.permute.xlu0 %2898  ;;  %v1871_v38 = vpack.c.bf16 %v1845_v24, %v1844_v5 }
 0x196   : > { %v2901_v42 = vunpack.i.h.bf16 %v2899_v36  ;;  %v2900_v21 = vunpack.i.l.bf16 %v2899_v36 }
 0x197   : > { %2359 = vmatmul.msk.bf16.gmra.mxu1 %vm1902_vm11, %v1871_v38  ;;  %v2954_v61 = vpop.permute.xlu2 %2953  ;;  %v2940_v38 = vunpack.i.l.bf16 %v2939_v43 }
 0x198   : > { %v1792_v26 = vsel %vm1767_vm8, %v4034_v44, %v2900_v21  ;;  %v1793_v35 = vsel %vm1767_vm8, %v4038_v22, %v2901_v42 }
 0x199   : > { %v2904_v52 = vpop.permute.xlu1 %2903  ;;  %v1825_v57 = vsel %vm1800_vm9, %v1792_v26, %v2910_v15  ;;  %v1826_v34 = vsel %vm1800_vm9, %v1793_v35, %v2911_v29 }
 0x19a   : > { %v2906_v6 = vunpack.i.h.bf16 %v2904_v52  ;;  %v2905_v56 = vunpack.i.l.bf16 %v2904_v52 }
 0x19c   : > { %v1819_v51 = vsel %vm1800_vm9, %v1786_v59, %v2905_v56  ;;  %v1820_v37 = vsel %vm1800_vm9, %v1787_v20, %v2906_v6 }
 0x19d   : > { %v2914_v18 = vpop.permute.xlu0 %2913 }
 0x19e   : > { %v2916_v25 = vunpack.i.h.bf16 %v2914_v18  ;;  %v2915_v19 = vunpack.i.l.bf16 %v2914_v18  ;;  %v2956_v18 = vunpack.i.h.bf16 %v2954_v61 }
 0x19f   : > { %v2969_v20 = vpop.permute.xlu2 %2968 }
 0x1a0   : > { %v1852_v45 = vsel %vm1833_vm10, %v1819_v51, %v2915_v19  ;;  %v1853_v28 = vsel %vm1833_vm10, %v1820_v37, %v2916_v25  ;;  %v2955_v25 = vunpack.i.l.bf16 %v2954_v61  ;;  %v1789_v26 = vsel %vm1767_vm8, %v3946_v14, %v2956_v18 }
 0x1a1   : > { %v2919_v2 = vpop.permute.xlu1 %2918  ;;  %v1875_v7 = vpack.c.bf16 %v1853_v28, %v1852_v45 }
 0x1a2   : > { %v2921_v23 = vunpack.i.h.bf16 %v2919_v2  ;;  %v2920_v46 = vunpack.i.l.bf16 %v2919_v2  ;;  %v1788_v43 = vsel %vm1767_vm8, %v3943_v0, %v2955_v25 }
 0x1a3   : > { %2363 = vmatmul.msk.bf16.gmra.mxu2 %vm1902_vm11, %v1875_v7 }
 0x1a4   : > { %v1858_v47 = vsel %vm1833_vm10, %v1825_v57, %v2920_v46  ;;  %v1859_v44 = vsel %vm1833_vm10, %v1826_v34, %v2921_v23  ;;  %v2971_v34 = vunpack.i.h.bf16 %v2969_v20 }
 0x1a5   : > { %v2929_v3 = vpop.permute.xlu0 %2928  ;;  %v1878_v22 = vpack.c.bf16 %v1859_v44, %v1858_v47  ;;  %v2970_v47 = vunpack.i.l.bf16 %v2969_v20 }
 0x1a6   : > { %v2931_v55 = vunpack.i.h.bf16 %v2929_v3  ;;  %v2930_v41 = vunpack.i.l.bf16 %v2929_v3 }
 0x1a7   : > { %2366 = vmatmul.msk.bf16.vlgmr.msra.gmra.mxu3 %vm1902_vm11, %v1878_v22  ;;  %v2984_v28 = vpop.permute.xlu2 %2983 }
 0x1a8   : > { %v1780_v58 = vsel %vm1767_vm8, %v3995_v53, %v2930_v41  ;;  %v1781_v49 = vsel %vm1767_vm8, %v3999_v39, %v2931_v55  ;;  %v2985_v55 = vunpack.i.l.bf16 %v2984_v28 }
 0x1a9   : > { %v2934_v33 = vpop.permute.xlu1 %2933  ;;  %v1813_v42 = vsel %vm1800_vm9, %v1780_v58, %v2940_v38  ;;  %v1814_v21 = vsel %vm1800_vm9, %v1781_v49, %v2941_v54 }
 0x1aa   : > { %v2936_v16 = vunpack.i.h.bf16 %v2934_v33  ;;  %v2935_v4 = vunpack.i.l.bf16 %v2934_v33 }
 0x1ac   : > { %v1807_v9 = vsel %vm1800_vm9, %v1774_v1, %v2935_v4  ;;  %v1808_v40 = vsel %vm1800_vm9, %v1775_v63, %v2936_v16  ;;  %v2986_v63 = vunpack.i.h.bf16 %v2984_v28 }
 0x1ad   : > { %v2944_v5 = vpop.permute.xlu0 %2943 }
 0x1ae   : > { %v2946_v24 = vunpack.i.h.bf16 %v2944_v5  ;;  %v2945_v36 = vunpack.i.l.bf16 %v2944_v5 }
 0x1af   : > { %v2999_v41 = vpop.permute.xlu2 %2998 }
 0x1b0   : > { %v1840_v31 = vsel %vm1833_vm10, %v1807_v9, %v2945_v36  ;;  %v1841_v12 = vsel %vm1833_vm10, %v1808_v40, %v2946_v24  ;;  %v1782_v24 = vsel %vm1767_vm8, %v3920_v11, %v2985_v55  ;;  %v1783_v36 = vsel %vm1767_vm8, %v3923_v32, %v2986_v63 }
 0x1b1   : > { %v2949_v52 = vpop.permute.xlu1 %2948  ;;  %v1869_v6 = vpack.c.bf16 %v1841_v12, %v1840_v31 }
 0x1b2   : > { %v2951_v56 = vunpack.i.h.bf16 %v2949_v52  ;;  %v2950_v59 = vunpack.i.l.bf16 %v2949_v52 }
 0x1b3   : > { %2357 = vmatmul.msk.bf16.gmra.mxu0 %vm1902_vm11, %v1869_v6 }
 0x1b4   : > { %v1846_v53 = vsel %vm1833_vm10, %v1813_v42, %v2950_v59  ;;  %v1847_v51 = vsel %vm1833_vm10, %v1814_v21, %v2951_v56  ;;  %v3001_v56 = vunpack.i.h.bf16 %v2999_v41  ;;  %v3000_v59 = vunpack.i.l.bf16 %v2999_v41 }
 0x1b5   : > { %v2959_v39 = vpop.permute.xlu0 %2958  ;;  %v1872_v37 = vpack.c.bf16 %v1847_v51, %v1846_v53 }
 0x1b6   : > { %v2961_v35 = vunpack.i.h.bf16 %v2959_v39  ;;  %v2960_v45 = vunpack.i.l.bf16 %v2959_v39  ;;  %v1790_v21 = vsel %vm1767_vm8, %v4023_v8, %v3000_v59  ;;  %v1791_v53 = vsel %vm1767_vm8, %v4027_v60, %v3001_v56 }
 0x1b7   : > { %2360 = vmatmul.msk.bf16.gmra.mxu1 %vm1902_vm11, %v1872_v37  ;;  %v3014_v11 = vpop.permute.xlu2 %3013 }
 0x1b8   : > { %v1794_v44 = vsel %vm1767_vm8, %v3963_v48, %v2960_v45  ;;  %v1795_v0 = vsel %vm1767_vm8, %v3966_v10, %v2961_v35 }
 0x1b9   : > { %v2964_v19 = vpop.permute.xlu1 %2963  ;;  %v1827_v33 = vsel %vm1800_vm9, %v1794_v44, %v2970_v47  ;;  %v1828_v16 = vsel %vm1800_vm9, %v1795_v0, %v2971_v34 }
 0x1ba   : > { %v2966_v29 = vunpack.i.h.bf16 %v2964_v19  ;;  %v2965_v15 = vunpack.i.l.bf16 %v2964_v19 }
 0x1bc   : > { %v1821_v2 = vsel %vm1800_vm9, %v1788_v43, %v2965_v15  ;;  %v1822_v7 = vsel %vm1800_vm9, %v1789_v26, %v2966_v29  ;;  %v3016_v15 = vunpack.i.h.bf16 %v3014_v11  ;;  %v3015_v43 = vunpack.i.l.bf16 %v3014_v11 }
 0x1bd   : > { %v2974_v23 = vpop.permute.xlu0 %2973 }
 0x1be   : > { %v2976_v46 = vunpack.i.h.bf16 %v2974_v23  ;;  %v2975_v57 = vunpack.i.l.bf16 %v2974_v23 }
 0x1bf   : > { %v3029_v23 = vpop.permute.xlu2 %3028 }
 0x1c0   : > { %v1854_v14 = vsel %vm1833_vm10, %v1821_v2, %v2975_v57  ;;  %v1855_v3 = vsel %vm1833_vm10, %v1822_v7, %v2976_v46  ;;  %v3031_v44 = vunpack.i.h.bf16 %v3029_v23  ;;  %v3030_v0 = vunpack.i.l.bf16 %v3029_v23 }
 0x1c1   : > { %v2979_v22 = vpop.permute.xlu1 %2978  ;;  %v1876_v17 = vpack.c.bf16 %v1855_v3, %v1854_v14 }
 0x1c2   : > { %v2981_v30 = vunpack.i.h.bf16 %v2979_v22  ;;  %v2980_v61 = vunpack.i.l.bf16 %v2979_v22 }
 0x1c3   : > { %2364 = vmatmul.msk.bf16.gmra.mxu2 %vm1902_vm11, %v1876_v17  ;;  %v1798_v17 = vsel %vm1767_vm8, %v4055_v62, %v3030_v0 }
 0x1c4   : > { %v1860_v4 = vsel %vm1833_vm10, %v1827_v33, %v2980_v61  ;;  %v1861_v48 = vsel %vm1833_vm10, %v1828_v16, %v2981_v30  ;;  %v1799_v30 = vsel %vm1767_vm8, %v4059_v27, %v3031_v44 }
 0x1c5   : > { %v2989_v1 = vpop.permute.xlu0 %2988  ;;  %v1879_v10 = vpack.c.bf16 %v1861_v48, %v1860_v4 }
 0x1c6   : > { %v2991_v9 = vunpack.i.h.bf16 %v2989_v1  ;;  %v2990_v40 = vunpack.i.l.bf16 %v2989_v1 }
 0x1c7   : > { %2367 = vmatmul.msk.bf16.gmra.mxu3 %vm1902_vm11, %v1879_v10 }
 0x1c8   : > { %v1815_v58 = vsel %vm1800_vm9, %v1782_v24, %v2990_v40  ;;  %v1816_v49 = vsel %vm1800_vm9, %v1783_v36, %v2991_v9 }
 0x1c9   : > { %v2994_v5 = vpop.permute.xlu1 %2993 }
 0x1ca   : > { %v2996_v54 = vunpack.i.h.bf16 %v2994_v5  ;;  %v2995_v38 = vunpack.i.l.bf16 %v2994_v5 }
 0x1cc   : > { %v1848_v31 = vsel %vm1833_vm10, %v1815_v58, %v2995_v38  ;;  %v1849_v12 = vsel %vm1833_vm10, %v1816_v49, %v2996_v54 }
 0x1cd   : > { %v3004_v52 = vpop.permute.xlu0 %3003  ;;  %v1873_v6 = vpack.c.bf16 %v1849_v12, %v1848_v31 }
 0x1ce   : > { %v3006_v51 = vunpack.i.h.bf16 %v3004_v52  ;;  %v3005_v39 = vunpack.i.l.bf16 %v3004_v52 }
 0x1cf   : > { %2361 = vmatmul.msk.bf16.gmra.mxu1 %vm1902_vm11, %v1873_v6 }
 0x1d0   : > { %v1796_v26 = vsel %vm1767_vm8, %v4044_v13, %v3005_v39  ;;  %v1797_v8 = vsel %vm1767_vm8, %v4048_v50, %v3006_v51 }
 0x1d1   : > { %v3009_v20 = vpop.permute.xlu1 %3008  ;;  %v1829_v46 = vsel %vm1800_vm9, %v1796_v26, %v3015_v43  ;;  %v1830_v57 = vsel %vm1800_vm9, %v1797_v8, %v3016_v15 }
 0x1d2   : > { %v3011_v42 = vunpack.i.h.bf16 %v3009_v20  ;;  %v3010_v32 = vunpack.i.l.bf16 %v3009_v20 }
 0x1d4   : > { %v1823_v37 = vsel %vm1800_vm9, %v1790_v21, %v3010_v32  ;;  %v1824_v18 = vsel %vm1800_vm9, %v1791_v53, %v3011_v42 }
 0x1d5   : > { %v3019_v25 = vpop.permute.xlu0 %3018 }
 0x1d6   : > { %v3021_v19 = vunpack.i.h.bf16 %v3019_v25  ;;  %v3020_v29 = vunpack.i.l.bf16 %v3019_v25 }
 0x1d8   : > { %v1856_v35 = vsel %vm1833_vm10, %v1823_v37, %v3020_v29  ;;  %v1857_v60 = vsel %vm1833_vm10, %v1824_v18, %v3021_v19 }
 0x1d9   : > { %v3024_v45 = vpop.permute.xlu1 %3023  ;;  %v1877_v28 = vpack.c.bf16 %v1857_v60, %v1856_v35 }
 0x1da   : > { %v3026_v2 = vunpack.i.h.bf16 %v3024_v45  ;;  %v3025_v7 = vunpack.i.l.bf16 %v3024_v45 }
 0x1db   : > { %2365 = vmatmul.msk.bf16.gmra.mxu2 %vm1902_vm11, %v1877_v28 }
 0x1dc   : > { %v1862_v13 = vsel %vm1833_vm10, %v1829_v46, %v3025_v7  ;;  %v1863_v34 = vsel %vm1833_vm10, %v1830_v57, %v3026_v2 }
 0x1dd   : > { %v3034_v50 = vpop.permute.xlu0 %3033  ;;  %v1880_v47 = vpack.c.bf16 %v1863_v34, %v1862_v13 }
 0x1de   : > { %v3036_v14 = vunpack.i.h.bf16 %v3034_v50  ;;  %v3035_v3 = vunpack.i.l.bf16 %v3034_v50 }
 0x1df   : > { %2368 = vmatmul.msk.bf16.gmra.mxu3 %vm1902_vm11, %v1880_v47 }
 0x1e0   : > { %v1831_v16 = vsel %vm1800_vm9, %v1798_v17, %v3035_v3  ;;  %v1832_v4 = vsel %vm1800_vm9, %v1799_v30, %v3036_v14 }
 0x1e1   : > { %v3039_v22 = vpop.permute.xlu1 %3038 }
 0x1e2   : > { %v3041_v61 = vunpack.i.h.bf16 %v3039_v22  ;;  %v3040_v33 = vunpack.i.l.bf16 %v3039_v22 }
 0x1e4   : > { %v1864_v48 = vsel %vm1833_vm10, %v1831_v16, %v3040_v33  ;;  %v1865_v1 = vsel %vm1833_vm10, %v1832_v4, %v3041_v61 }
 0x1e5   : > { %v1881_v10 = vpack.c.bf16 %v1865_v1, %v1864_v48 }
 0x1ec   : > { %v1964_v62 = vpop.f32.mrf.mxu0 }
 0x1ed   : > { %2044 = vst.msk [vmem:[%s4246_s7] sm:$0xff] %vm1635_vm3, %v1964_v62  ;;  %v2145_v27 = vmul.f32 %v1964_v62, %v1964_v62  ;;  %v2076_v55 = vsel %vm1635_vm3, %v1964_v62, 0.0 }
 0x1ef   : > { %2369 = vmatmul.msk.bf16.gmra.mxu3 %vm1902_vm11, %v1881_v10  ;;  %v2177_v5 = vsel %vm1635_vm3, %v2145_v27, 0.0 }
 0x1f4   : > { %v1966_v63 = vpop.f32.mrf.mxu0 }
 0x1f5   : > { %2045 = vst.msk [vmem:[%s4246_s7 + $0x8] sm:$0xff] %vm1635_vm3, %v1966_v63  ;;  %v2077_v41 = vsel %vm1635_vm3, %v1966_v63, 0.0  ;;  %v2146_v9 = vmul.f32 %v1966_v63, %v1966_v63 }
 0x1f6   : > { %v2078_v40 = vadd.f32 %v2077_v41, %v2076_v55 }
 0x1f7   : > { %v2178_v24 = vsel %vm1635_vm3, %v2146_v9, 0.0 }
 0x1f8   : > { %v2179_v36 = vadd.f32 %v2178_v24, %v2177_v5 }
 0x1fc   : > { %v1969_v54 = vpop.f32.mrf.mxu0  ;;  %v1984_v38 = vpop.f32.mrf.mxu1 }
 0x1fd   : > { %2046 = vst.msk [vmem:[%s4246_s7 + $0x10] sm:$0xff] %vm1635_vm3, %v1969_v54  ;;  %v2079_v58 = vsel %vm1635_vm3, %v1969_v54, 0.0  ;;  %v2147_v49 = vmul.f32 %v1969_v54, %v1969_v54  ;;  %v2153_v0 = vmul.f32 %v1984_v38, %v1984_v38  ;;  %v2091_v30 = vsel %vm1635_vm3, %v1984_v38, 0.0 }
 0x1fe   : > { %v2080_v31 = vadd.f32 %v2079_v58, %v2078_v40  ;;  %2052 = vst.msk [vmem:[%s4246_s7 + $0x40] sm:$0xff] %vm1635_vm3, %v1984_v38 }
 0x1ff   : > { %v2180_v12 = vsel %vm1635_vm3, %v2147_v49, 0.0  ;;  %v2192_v1 = vsel %vm1635_vm3, %v2153_v0, 0.0 }
 0x200   : > { %v2181_v52 = vadd.f32 %v2180_v12, %v2179_v36 }
 0x204   : > { %v1971_v6 = vpop.f32.mrf.mxu0  ;;  %v1986_v56 = vpop.f32.mrf.mxu1 }
 0x205   : > { %2047 = vst.msk [vmem:[%s4246_s7 + $0x18] sm:$0xff] %vm1635_vm3, %v1971_v6  ;;  %v2081_v59 = vsel %vm1635_vm3, %v1971_v6, 0.0  ;;  %v2148_v18 = vmul.f32 %v1971_v6, %v1971_v6  ;;  %v2154_v61 = vmul.f32 %v1986_v56, %v1986_v56  ;;  %v2093_v10 = vsel %vm1635_vm3, %v1986_v56, 0.0 }
 0x206   : > { %v2082_v11 = vadd.f32 %v2081_v59, %v2080_v31  ;;  %2053 = vst.msk [vmem:[%s4246_s7 + $0x48] sm:$0xff] %vm1635_vm3, %v1986_v56 }
 0x207   : > { %v2182_v15 = vsel %vm1635_vm3, %v2148_v18, 0.0  ;;  %v2194_v63 = vsel %vm1635_vm3, %v2154_v61, 0.0 }
 0x208   : > { %v2183_v28 = vadd.f32 %v2182_v15, %v2181_v52 }
 0x20a   : > { %v4268_v20 = vpop.f32.mrf.mxu2 }
 0x20b   : > { %2060 = vst.msk [vmem:[%s4246_s7 + $0x80] sm:$0xff] %vm1635_vm3, %v4268_v20 }
 0x210   : > { %v1974_v42 = vpop.f32.mrf.mxu0 }
 0x211   : > { %2048 = vst.msk [vmem:[%s4246_s7 + $0x20] sm:$0xff] %vm1635_vm3, %v1974_v42  ;;  %v2149_v19 = vmul.f32 %v1974_v42, %v1974_v42  ;;  %v2083_v43 = vsel %vm1635_vm3, %v1974_v42, 0.0 }
 0x212   : > { %v4275_v32 = vpop.f32.mrf.mxu2  ;;  %v2084_v2 = vadd.f32 %v2083_v43, %v2082_v11 }
 0x213   : > { %2061 = vst.msk [vmem:[%s4246_s7 + $0x88] sm:$0xff] %vm1635_vm3, %v4275_v32  ;;  %v2184_v35 = vsel %vm1635_vm3, %v2149_v19, 0.0  ;;  %v2109_v0 = vsel %vm1635_vm3, %v4275_v32, 0.0 }
 0x214   : > { %v1989_v21 = vpop.f32.mrf.mxu1  ;;  %v2185_v57 = vadd.f32 %v2184_v35, %v2183_v28  ;;  %v2161_v28 = vmul.f32 %v4268_v20, %v4268_v20 }
 0x215   : > { %2054 = vst.msk [vmem:[%s4246_s7 + $0x50] sm:$0xff] %vm1635_vm3, %v1989_v21  ;;  %v2155_v41 = vmul.f32 %v1989_v21, %v1989_v21  ;;  %v2095_v9 = vsel %vm1635_vm3, %v1989_v21, 0.0 }
 0x217   : > { %v2196_v24 = vsel %vm1635_vm3, %v2155_v41, 0.0 }
 0x218   : > { %v1976_v53 = vpop.f32.mrf.mxu0 }
 0x219   : > { %2049 = vst.msk [vmem:[%s4246_s7 + $0x28] sm:$0xff] %vm1635_vm3, %v1976_v53  ;;  %v2150_v26 = vmul.f32 %v1976_v53, %v1976_v53  ;;  %v2085_v60 = vsel %vm1635_vm3, %v1976_v53, 0.0 }
 0x21a   : > { %v2086_v13 = vadd.f32 %v2085_v60, %v2084_v2 }
 0x21b   : > { %v2186_v23 = vsel %vm1635_vm3, %v2150_v26, 0.0 }
 0x21c   : > { %v1991_v51 = vpop.f32.mrf.mxu1  ;;  %v2187_v50 = vadd.f32 %v2186_v23, %v2185_v57  ;;  %v2107_v57 = vsel %vm1635_vm3, %v4268_v20, 0.0 }
 0x21d   : > { %2055 = vst.msk [vmem:[%s4246_s7 + $0x58] sm:$0xff] %vm1635_vm3, %v1991_v51  ;;  %v2156_v36 = vmul.f32 %v1991_v51, %v1991_v51  ;;  %v2097_v38 = vsel %vm1635_vm3, %v1991_v51, 0.0 }
 0x21f   : > { %v2198_v31 = vsel %vm1635_vm3, %v2156_v36, 0.0 }
 0x226   : > { %v4286_v39 = vpop.f32.mrf.mxu2 }
 0x227   : > { %2062 = vst.msk [vmem:[%s4246_s7 + $0x90] sm:$0xff] %vm1635_vm3, %v4286_v39 }
 0x22a   : > { %v4291_v37 = vpop.f32.mrf.mxu3 }
 0x22b   : > { %2068 = vst.msk [vmem:[%s4246_s7 + $0xc0] sm:$0xff] %vm1635_vm3, %v4291_v37 }
 0x22e   : > { %v4296_v25 = vpop.f32.mrf.mxu2 }
 0x22f   : > { %2063 = vst.msk [vmem:[%s4246_s7 + $0x98] sm:$0xff] %vm1635_vm3, %v4296_v25 }
 0x230   : > { %v1979_v29 = vpop.f32.mrf.mxu0 }
 0x231   : > { %2050 = vst.msk [vmem:[%s4246_s7 + $0x30] sm:$0xff] %vm1635_vm3, %v1979_v29  ;;  %v2151_v45 = vmul.f32 %v1979_v29, %v1979_v29  ;;  %v2087_v46 = vsel %vm1635_vm3, %v1979_v29, 0.0 }
 0x232   : > { %v4305_v8 = vpop.f32.mrf.mxu3  ;;  %v2088_v47 = vadd.f32 %v2087_v46, %v2086_v13  ;;  %v2162_v13 = vmul.f32 %v4275_v32, %v4275_v32  ;;  %v2113_v32 = vsel %vm1635_vm3, %v4296_v25, 0.0 }
 0x233   : > { %2069 = vst.msk [vmem:[%s4246_s7 + $0xc8] sm:$0xff] %vm1635_vm3, %v4305_v8  ;;  %v2188_v34 = vsel %vm1635_vm3, %v2151_v45, 0.0 }
 0x234   : > { %v1994_v7 = vpop.f32.mrf.mxu1  ;;  %v2189_v22 = vadd.f32 %v2188_v34, %v2187_v50  ;;  %v2210_v20 = vsel %vm1635_vm3, %v2162_v13, 0.0 }
 0x235   : > { %2056 = vst.msk [vmem:[%s4246_s7 + $0x60] sm:$0xff] %vm1635_vm3, %v1994_v7  ;;  %v2157_v12 = vmul.f32 %v1994_v7, %v1994_v7  ;;  %v2099_v56 = vsel %vm1635_vm3, %v1994_v7, 0.0 }
 0x237   : > { %v2200_v42 = vsel %vm1635_vm3, %v2157_v12, 0.0 }
 0x238   : > { %v1981_v44 = vpop.f32.mrf.mxu0 }
 0x239   : > { %2051 = vst.msk [vmem:[%s4246_s7 + $0x38] sm:$0xff] %vm1635_vm3, %v1981_v44  ;;  %v2089_v14 = vsel %vm1635_vm3, %v1981_v44, 0.0  ;;  %v2152_v3 = vmul.f32 %v1981_v44, %v1981_v44  ;;  %v2208_v44 = vsel %vm1635_vm3, %v2161_v28, 0.0 }
 0x23a   : > { %v2090_v17 = vadd.f32 %v2089_v14, %v2088_v47  ;;  %v2163_v14 = vmul.f32 %v4286_v39, %v4286_v39 }
 0x23b   : > { %v2190_v33 = vsel %vm1635_vm3, %v2152_v3, 0.0 }
 0x23c   : > { %v2092_v16 = vadd.f32 %v2091_v30, %v2090_v17  ;;  %v2191_v4 = vadd.f32 %v2190_v33, %v2189_v22  ;;  %v1996_v48 = vpop.f32.mrf.mxu1  ;;  %v2111_v17 = vsel %vm1635_vm3, %v4286_v39, 0.0  ;;  %v2164_v30 = vmul.f32 %v4296_v25, %v4296_v25 }
 0x23d   : > { %2057 = vst.msk [vmem:[%s4246_s7 + $0x68] sm:$0xff] %vm1635_vm3, %v1996_v48  ;;  %v2158_v21 = vmul.f32 %v1996_v48, %v1996_v48  ;;  %v2101_v18 = vsel %vm1635_vm3, %v1996_v48, 0.0 }
 0x23e   : > { %v2094_v62 = vadd.f32 %v2093_v10, %v2092_v16  ;;  %v2193_v27 = vadd.f32 %v2192_v1, %v2191_v4  ;;  %v2212_v16 = vsel %vm1635_vm3, %v2163_v14, 0.0 }
 0x23f   : > { %v2202_v43 = vsel %vm1635_vm3, %v2158_v21, 0.0  ;;  %v2170_v21 = vmul.f32 %v4305_v8, %v4305_v8 }
 0x240   : > { %v2195_v55 = vadd.f32 %v2194_v63, %v2193_v27  ;;  %v2096_v40 = vadd.f32 %v2095_v9, %v2094_v62  ;;  %v2214_v62 = vsel %vm1635_vm3, %v2164_v30, 0.0 }
 0x242   : > { %v2197_v54 = vadd.f32 %v2196_v24, %v2195_v55  ;;  %v2098_v58 = vadd.f32 %v2097_v38, %v2096_v40 }
 0x244   : > { %v2199_v52 = vadd.f32 %v2198_v31, %v2197_v54  ;;  %v2100_v59 = vadd.f32 %v2099_v56, %v2098_v58 }
 0x246   : > { %v2014_v5 = vpop.f32.mrf.mxu2  ;;  %v2201_v51 = vadd.f32 %v2200_v42, %v2199_v52  ;;  %v2102_v29 = vadd.f32 %v2101_v18, %v2100_v59  ;;  %v2123_v42 = vsel %vm1635_vm3, %v4291_v37, 0.0 }
 0x247   : > { %2064 = vst.msk [vmem:[%s4246_s7 + $0xa0] sm:$0xff] %vm1635_vm3, %v2014_v5  ;;  %v2165_v4 = vmul.f32 %v2014_v5, %v2014_v5  ;;  %v2115_v27 = vsel %vm1635_vm3, %v2014_v5, 0.0 }
 0x248   : > { %v2203_v35 = vadd.f32 %v2202_v43, %v2201_v51  ;;  %v2125_v43 = vsel %vm1635_vm3, %v4305_v8, 0.0 }
 0x249   : > { %v2216_v41 = vsel %vm1635_vm3, %v2165_v4, 0.0 }
 0x24a   : > { %v4332_v49 = vpop.f32.mrf.mxu3 }
 0x24b   : > { %2070 = vst.msk [vmem:[%s4246_s7 + $0xd0] sm:$0xff] %vm1635_vm3, %v4332_v49 }
 0x24c   : > { %v1999_v6 = vpop.f32.mrf.mxu1 }
 0x24d   : > { %2058 = vst.msk [vmem:[%s4246_s7 + $0x70] sm:$0xff] %vm1635_vm3, %v1999_v6  ;;  %v2159_v53 = vmul.f32 %v1999_v6, %v1999_v6  ;;  %v2103_v19 = vsel %vm1635_vm3, %v1999_v6, 0.0  ;;  %v2169_v6 = vmul.f32 %v4291_v37, %v4291_v37 }
 0x24e   : > { %v2016_v11 = vpop.f32.mrf.mxu2  ;;  %v2104_v60 = vadd.f32 %v2103_v19, %v2102_v29 }
 0x24f   : > { %2065 = vst.msk [vmem:[%s4246_s7 + $0xa8] sm:$0xff] %vm1635_vm3, %v2016_v11  ;;  %v2204_v26 = vsel %vm1635_vm3, %v2159_v53, 0.0  ;;  %v2166_v39 = vmul.f32 %v2016_v11, %v2016_v11  ;;  %v2117_v9 = vsel %vm1635_vm3, %v2016_v11, 0.0  ;;  %v2224_v29 = vsel %vm1635_vm3, %v2169_v6, 0.0 }
 0x250   : > { %v2205_v23 = vadd.f32 %v2204_v26, %v2203_v35  ;;  %v2171_v26 = vmul.f32 %v4332_v49, %v4332_v49 }
 0x251   : > { %v2218_v54 = vsel %vm1635_vm3, %v2166_v39, 0.0 }
 0x252   : > { %v4346_v15 = vpop.f32.mrf.mxu3  ;;  %v2228_v8 = vsel %vm1635_vm3, %v2171_v26, 0.0 }
 0x253   : > { %2071 = vst.msk [vmem:[%s4246_s7 + $0xd8] sm:$0xff] %vm1635_vm3, %v4346_v15  ;;  %v2172_v28 = vmul.f32 %v4346_v15, %v4346_v15 }
 0x254   : > { %v2001_v45 = vpop.f32.mrf.mxu1 }
 0x255   : > { %2059 = vst.msk [vmem:[%s4246_s7 + $0x78] sm:$0xff] %vm1635_vm3, %v2001_v45  ;;  %v2105_v2 = vsel %vm1635_vm3, %v2001_v45, 0.0  ;;  %v2160_v7 = vmul.f32 %v2001_v45, %v2001_v45  ;;  %v2127_v45 = vsel %vm1635_vm3, %v4332_v49, 0.0 }
 0x256   : > { %v2106_v46 = vadd.f32 %v2105_v2, %v2104_v60  ;;  %v2226_v60 = vsel %vm1635_vm3, %v2170_v21, 0.0 }
 0x257   : > { %v2206_v34 = vsel %vm1635_vm3, %v2160_v7, 0.0 }
 0x258   : > { %v2108_v50 = vadd.f32 %v2107_v57, %v2106_v46  ;;  %v2207_v47 = vadd.f32 %v2206_v34, %v2205_v23  ;;  %v2129_v23 = vsel %vm1635_vm3, %v4346_v15, 0.0  ;;  %v2230_v34 = vsel %vm1635_vm3, %v2172_v28, 0.0 }
 0x25a   : > { %v2110_v3 = vadd.f32 %v2109_v0, %v2108_v50  ;;  %v2209_v22 = vadd.f32 %v2208_v44, %v2207_v47 }
 0x25c   : > { %v2112_v61 = vadd.f32 %v2111_v17, %v2110_v3  ;;  %v2211_v33 = vadd.f32 %v2210_v20, %v2209_v22 }
 0x25e   : > { %v2213_v48 = vadd.f32 %v2212_v16, %v2211_v33  ;;  %v2019_v1 = vpop.f32.mrf.mxu2  ;;  %v2114_v10 = vadd.f32 %v2113_v32, %v2112_v61 }
 0x25f   : > { %2066 = vst.msk [vmem:[%s4246_s7 + $0xb0] sm:$0xff] %vm1635_vm3, %v2019_v1  ;;  %v2167_v25 = vmul.f32 %v2019_v1, %v2019_v1  ;;  %v2119_v38 = vsel %vm1635_vm3, %v2019_v1, 0.0 }
 0x260   : > { %v2116_v63 = vadd.f32 %v2115_v27, %v2114_v10  ;;  %v2215_v55 = vadd.f32 %v2214_v62, %v2213_v48 }
 0x261   : > { %v2220_v31 = vsel %vm1635_vm3, %v2167_v25, 0.0 }
 0x262   : > { %v2118_v40 = vadd.f32 %v2117_v9, %v2116_v63  ;;  %v2217_v24 = vadd.f32 %v2216_v41, %v2215_v55  ;;  %v2034_v36 = vpop.f32.mrf.mxu3 }
 0x263   : > { %2072 = vst.msk [vmem:[%s4246_s7 + $0xe0] sm:$0xff] %vm1635_vm3, %v2034_v36  ;;  %v2173_v46 = vmul.f32 %v2034_v36, %v2034_v36  ;;  %v2131_v50 = vsel %vm1635_vm3, %v2034_v36, 0.0 }
 0x264   : > { %v2120_v5 = vadd.f32 %v2119_v38, %v2118_v40  ;;  %v2219_v58 = vadd.f32 %v2218_v54, %v2217_v24 }
 0x265   : > { %v2232_v0 = vsel %vm1635_vm3, %v2173_v46, 0.0 }
 0x266   : > { %v2221_v12 = vadd.f32 %v2220_v31, %v2219_v58  ;;  %v2021_v52 = vpop.f32.mrf.mxu2 }
 0x267   : > { %2067 = vst.msk [vmem:[%s4246_s7 + $0xb8] sm:$0xff] %vm1635_vm3, %v2021_v52  ;;  %v2121_v56 = vsel %vm1635_vm3, %v2021_v52, 0.0  ;;  %v2168_v59 = vmul.f32 %v2021_v52, %v2021_v52 }
 0x268   : > { %v2122_v11 = vadd.f32 %v2121_v56, %v2120_v5 }
 0x269   : > { %v2222_v53 = vsel %vm1635_vm3, %v2168_v59, 0.0 }
 0x26a   : > { %v2124_v51 = vadd.f32 %v2123_v42, %v2122_v11  ;;  %v2223_v18 = vadd.f32 %v2222_v53, %v2221_v12  ;;  %v2036_v19 = vpop.f32.mrf.mxu3 }
 0x26b   : > { %2073 = vst.msk [vmem:[%s4246_s7 + $0xe8] sm:$0xff] %vm1635_vm3, %v2036_v19  ;;  %v2174_v14 = vmul.f32 %v2036_v19, %v2036_v19  ;;  %v2133_v22 = vsel %vm1635_vm3, %v2036_v19, 0.0 }
 0x26c   : > { %v2126_v35 = vadd.f32 %v2125_v43, %v2124_v51  ;;  %v2225_v37 = vadd.f32 %v2224_v29, %v2223_v18 }
 0x26d   : > { %v2234_v17 = vsel %vm1635_vm3, %v2174_v14, 0.0 }
 0x26e   : > { %v2128_v2 = vadd.f32 %v2127_v45, %v2126_v35  ;;  %v2227_v7 = vadd.f32 %v2226_v60, %v2225_v37 }
 0x270   : > { %v2229_v57 = vadd.f32 %v2228_v8, %v2227_v7  ;;  %v2130_v13 = vadd.f32 %v2129_v23, %v2128_v2 }
 0x272   : > { %v2132_v47 = vadd.f32 %v2131_v50, %v2130_v13  ;;  %v2231_v49 = vadd.f32 %v2230_v34, %v2229_v57  ;;  %v2039_v44 = vpop.f32.mrf.mxu3 }
 0x273   : > { %2074 = vst.msk [vmem:[%s4246_s7 + $0xf0] sm:$0xff] %vm1635_vm3, %v2039_v44  ;;  %v2175_v15 = vmul.f32 %v2039_v44, %v2039_v44  ;;  %v2135_v30 = vsel %vm1635_vm3, %v2039_v44, 0.0 }
 0x274   : > { %v2233_v3 = vadd.f32 %v2232_v0, %v2231_v49  ;;  %v2134_v20 = vadd.f32 %v2133_v22, %v2132_v47 }
 0x275   : > { %v2236_v33 = vsel %vm1635_vm3, %v2175_v15, 0.0 }
 0x276   : > { %v2235_v61 = vadd.f32 %v2234_v17, %v2233_v3  ;;  %v2136_v16 = vadd.f32 %v2135_v30, %v2134_v20 }
 0x278   : > { %v2237_v1 = vadd.f32 %v2236_v33, %v2235_v61 }
 0x27a   : > { %v2041_v32 = vpop.f32.mrf.mxu3 }
 0x27b   : > { %2075 = vst.msk [vmem:[%s4246_s7 + $0xf8] sm:$0xff] %vm1635_vm3, %v2041_v32  ;;  %v2137_v4 = vsel %vm1635_vm3, %v2041_v32, 0.0  ;;  %v2176_v48 = vmul.f32 %v2041_v32, %v2041_v32 }
 0x27c   : > { %v2138_v10 = vadd.f32 %v2137_v4, %v2136_v16 }
 0x27d   : > { %v2238_v62 = vsel %vm1635_vm3, %v2176_v48, 0.0 }
 0x27e   : > { %v2139_v27 = vrot.slane %v2138_v10, 4  ;;  %v2239_v39 = vadd.f32 %v2238_v62, %v2237_v1 }
 0x280   : > { %v2140_v63 = vadd.f32 %v2139_v27, %v2138_v10  ;;  %v2240_v55 = vrot.slane %v2239_v39, 4 }
 0x282   : > { %v2141_v41 = vrot.slane %v2140_v63, 2  ;;  %v2241_v9 = vadd.f32 %v2240_v55, %v2239_v39 }
 0x284   : > { %v2142_v25 = vadd.f32 %v2141_v41, %v2140_v63  ;;  %v2242_v40 = vrot.slane %v2241_v9, 2 }
 0x286   : > { %v2143_v24 = vrot.slane %v2142_v25, 1  ;;  %v2243_v36 = vadd.f32 %v2242_v40, %v2241_v9 }
 0x288   : > { %v2244_v54 = vrot.slane %v2243_v36, 1  ;;  %v2144_v38 = vadd.f32 %v2143_v24, %v2142_v25 }
 0x28a   : > { %v2245_v5 = vadd.f32 %v2244_v54, %v2243_v36 }
 0x28c   : > { %v2247_v58 = vsel %vm2246_vm12, %v2144_v38, %v2245_v5 }
 0x28d   : > { %2249 = vst.msk [vmem:[%s181_s11] sm:$0x3] %vm2248_vm13, %v2247_v58 }
 0x28e PF: > { %s14_s12 = sadd.s32 1, %s3048_s12  }
 0x28f   : > { %p11_p4 = scmp.ge.s32.totalorder %s14_s12, 4  }
 0x291   :  { %13 = sbr.rel (!%p11_p4) target bundleno = 1 (0x1), region = 73 }

// kernel: double_conv_resid_block.4
= control target key start
LH: loop header
LB: loop body
LE: loop exit
PB: predicated region body
PF: predicated region fallthrough
CT: control target
= control target key end

     0   :  { %s3280_s18 = smov 0   ;;  %s4714_s0 = inlined_call_operand.vmem [shape: f32[2,16,16,8], index: 0, kind: input, shape index: {}]   ;;  %s4715_s1 = inlined_call_operand.vmem [shape: f32[1,8], index: 1, kind: input, shape index: {}]   ;;  %s4716_s2 = inlined_call_operand.vmem [shape: f32[1,8], index: 2, kind: input, shape index: {}]   ;;  %s4717_s3 = inlined_call_operand.vmem [shape: bf16[72,8], index: 3, kind: input, shape index: {}]   ;;  %s4718_s4 = inlined_call_operand.vmem [shape: f32[2,16,16,8], index: 4, kind: output, shape index: {0}]   ;;  %s4719_s5 = inlined_call_operand.vmem [shape: f32[2,2,8], index: 5, kind: output, shape index: {1}]  }
   0x1 LB: > { %s2509_s19 = sadd.s32 4294967295, %s3239_s18   ;;  %p2513_p0 = scmp.ge.s32.totalorder %s3239_s18, 1  ;;  %s3239_s18 = sphi %s3280_s18, %s16_s18  }
   0x2   : > { %p190_p1 = scmp.lt.s32.totalorder %s3239_s18, 3 }
   0x4   : > { %p191_p2 = pnand %p2513_p0, %p190_p1 }
   0x6   : > { %194 = sbr.rel (%p191_p2) target bundleno = 659 (0x293), region = 36 }
   0xb   : > { %vm373_vm0 = vcmask 64512   ;;  %vm376_vm1 = vcmask 58368   ;;  %p222_p3 = scmp.lt.s32.totalorder %s2509_s19, 1  ;;  %v3241_v0 = vmov 0.0   ;;  %v3299_v1 = vld [vmem:[%s4715_s1] ss:$0 sm:$0xff] }
   0xc   : > { %374 = vst.msk [vmem:[#allocation2] sm:$0xff] %vm373_vm0, %v3241_v0  ;;  %v3316_v2 = vld [vmem:[%s4716_s2] ss:$0 sm:$0xff]  ;;  %s3242_s28 = smov 8   ;;  %vm383_vm2 = vcmask 57344   ;;  %s3243_s29 = smov 16  }
   0xd   : > { %375 = vst.msk [vmem:[#allocation2 + $0x8] sm:$0xff] %vm373_vm0, %v3241_v0  ;;  %s4766_s19 = smov (!%p222_p3, %s2509_s19), 1  ;;  %s3244_s30 = smov 24   ;;  %vm1793_vm3 = vcmask 130048   ;;  %vm1826_vm4 = vcmask 195584   ;;  %vm1859_vm5 = vcmask 261120  }
   0xe   : > { %377 = vst.msk [vmem:[#allocation2 + $0x10] sm:$0x3] %vm376_vm1, %v3241_v0  ;;  %s2553_s22 = sshll.u32 %s4766_s19, 8  ;;  %s3245_s6 = smov 32   ;;  %vm1892_vm6 = vcmask 326656   ;;  %vm2125_vm7 = vcmask 1043456  }
   0xf   : > { %379 = vst.msk [vmem:[#allocation2 + $0x198] sm:$0xff] %vm373_vm0, %v3241_v0  ;;  %s3311_s25 = scalar_lea.vmem %s4714_s0, %s2553_s22  ;;  %s3246_s7 = smov 40   ;;  %vm1925_vm8 = vcmask 392192   ;;  %vm1958_vm9 = vcmask 457728   ;;  %vm1991_vm10 = vcmask 523264   ;;  %vm2076_vm11 = vcmask 588800  }
  0x10   : > { %380 = vst.msk [vmem:[#allocation2 + $0x1a0] sm:$0xff] %vm373_vm0, %v3241_v0  ;;  %v243_v3 = vld [vmem:[%s3311_s25 + $0x30] sm:$0xff]  ;;  %v244_v4 = vld [vmem:[%s3311_s25 + $0x38] sm:$0xff]  ;;  %v237_v10 = vld [vmem:[%s3311_s25] sm:$0xff]  ;;  %s3247_s8 = smov 48   ;;  %s3248_s9 = smov 56  }
  0x11   : > { %381 = vst.msk [vmem:[#allocation2 + $0x1a8] sm:$0x3] %vm376_vm1, %v3241_v0  ;;  %v239_v5 = vld [vmem:[%s3311_s25 + $0x10] sm:$0xff]  ;;  %v279_v6 = vmul.f32 %v3299_v1, %v243_v3  ;;  %v280_v7 = vmul.f32 %v3299_v1, %v244_v4  ;;  %v240_v8 = vld [vmem:[%s3311_s25 + $0x18] sm:$0xff]  ;;  %v238_v11 = vld [vmem:[%s3311_s25 + $0x8] sm:$0xff]  ;;  %v273_v13 = vmul.f32 %v3299_v1, %v237_v10  ;;  %s3249_s10 = smov 64   ;;  %s4527_s26 = scalar_lea.vmem %s4718_s4, %s2553_s22 }
  0x12   : > { %v275_v9 = vmul.f32 %v3299_v1, %v239_v5  ;;  %v276_v12 = vmul.f32 %v3299_v1, %v240_v8  ;;  %v274_v14 = vmul.f32 %v3299_v1, %v238_v11  ;;  %v245_v15 = vld [vmem:[%s3311_s25 + $0x40] sm:$0xff]  ;;  %v246_v16 = vld [vmem:[%s3311_s25 + $0x48] sm:$0xff]  ;;  %v247_v33 = vld [vmem:[%s3311_s25 + $0x50] sm:$0xff]  ;;  %400 = vst.msk [vmem:[#allocation2 + $0x29] sm:$0x1] %vm383_vm2, %v3241_v0  ;;  %s2518_s22 = sshll.u32 %s4766_s19, 1 }
  0x13   : > { %v315_v18 = vadd.f32 %v3316_v2, %v279_v6  ;;  %v316_v19 = vadd.f32 %v3316_v2, %v280_v7  ;;  %v281_v21 = vmul.f32 %v3299_v1, %v245_v15  ;;  %v309_v24 = vadd.f32 %v3316_v2, %v273_v13  ;;  %v241_v27 = vld [vmem:[%s3311_s25 + $0x20] sm:$0xff]  ;;  %v242_v28 = vld [vmem:[%s3311_s25 + $0x28] sm:$0xff]  ;;  %v248_v34 = vld [vmem:[%s3311_s25 + $0x58] sm:$0xff]  ;;  %384 = vst.msk [vmem:[#allocation2 + $0x18] sm:$0x1] %vm383_vm2, %v3241_v0 }
  0x14   : > { %v480_v17 = vld [vmem:[#allocation2 + $0x1] sm:$0xff]  ;;  %v311_v20 = vadd.f32 %v3316_v2, %v275_v9  ;;  %v312_v23 = vadd.f32 %v3316_v2, %v276_v12  ;;  %v310_v25 = vadd.f32 %v3316_v2, %v274_v14  ;;  %v282_v26 = vmul.f32 %v3299_v1, %v246_v16  ;;  %v251_v35 = vld [vmem:[%s3311_s25 + $0x70] sm:$0xff]  ;;  %v252_v38 = vld [vmem:[%s3311_s25 + $0x78] sm:$0xff]  ;;  %385 = vst.msk [vmem:[#allocation2 + $0x30] sm:$0x1] %vm383_vm2, %v3241_v0 }
  0x15   : > { %v481_v22 = vld [vmem:[#allocation2 + $0x9] sm:$0xff]  ;;  %v347_v30 = vmax.f32 %v315_v18, 0.0  ;;  %v348_v31 = vmax.f32 %v316_v19, 0.0  ;;  %v317_v37 = vadd.f32 %v3316_v2, %v281_v21  ;;  %v341_v39 = vmax.f32 %v309_v24, 0.0  ;;  %v249_v43 = vld [vmem:[%s3311_s25 + $0x60] sm:$0xff]  ;;  %v256_v10 = vld [vmem:[%s3311_s25 + $0x98] sm:$0xff] }
  0x16   : > { %v2591_v29 = vpack.i.bf16 %v481_v22, %v480_v17  ;;  %v343_v32 = vmax.f32 %v311_v20, 0.0  ;;  %v344_v36 = vmax.f32 %v312_v23, 0.0  ;;  %v318_v40 = vadd.f32 %v3316_v2, %v282_v26  ;;  %v250_v48 = vld [vmem:[%s3311_s25 + $0x68] sm:$0xff]  ;;  %v253_v57 = vld [vmem:[%s3311_s25 + $0x80] sm:$0xff]  ;;  %v255_v5 = vld [vmem:[%s3311_s25 + $0x90] sm:$0xff] }
  0x17   : > { %422 = vst.msk [vmem:[#allocation2 + $0x61] sm:$0xff] %vm373_vm0, %v347_v30  ;;  %v277_v41 = vmul.f32 %v3299_v1, %v241_v27  ;;  %v278_v42 = vmul.f32 %v3299_v1, %v242_v28  ;;  %v342_v44 = vmax.f32 %v310_v25, 0.0  ;;  %v283_v45 = vmul.f32 %v3299_v1, %v247_v33  ;;  %v254_v58 = vld [vmem:[%s3311_s25 + $0x88] sm:$0xff]  ;;  %v257_v62 = vld [vmem:[%s3311_s25 + $0xa0] sm:$0xff]  ;;  %v259_v16 = vld [vmem:[%s3311_s25 + $0xb0] sm:$0xff] }
  0x18   : > { %2592 = vrot.lane.b32.xlu0 %v2591_v29, %s3242_s28  ;;  %423 = vst.msk [vmem:[#allocation2 + $0x69] sm:$0xff] %vm373_vm0, %v348_v31  ;;  %v284_v46 = vmul.f32 %v3299_v1, %v248_v34  ;;  %v287_v47 = vmul.f32 %v3299_v1, %v251_v35  ;;  %v349_v49 = vmax.f32 %v317_v37, 0.0  ;;  %v288_v52 = vmul.f32 %v3299_v1, %v252_v38  ;;  %v258_v63 = vld [vmem:[%s3311_s25 + $0xa8] sm:$0xff]  ;;  %v260_v26 = vld [vmem:[%s3311_s25 + $0xb8] sm:$0xff]  ;;  %v263_v27 = vld [vmem:[%s3311_s25 + $0xd0] sm:$0xff] }
  0x19   : > { %418 = vst.msk [vmem:[#allocation2 + $0x31] sm:$0xff] %vm373_vm0, %v343_v32  ;;  %v313_v50 = vadd.f32 %v3316_v2, %v277_v41  ;;  %v314_v51 = vadd.f32 %v3316_v2, %v278_v42  ;;  %v350_v53 = vmax.f32 %v318_v40, 0.0  ;;  %v319_v54 = vadd.f32 %v3316_v2, %v283_v45  ;;  %v264_v32 = vld [vmem:[%s3311_s25 + $0xd8] sm:$0xff]  ;;  %v261_v37 = vld [vmem:[%s3311_s25 + $0xc0] sm:$0xff] }
  0x1a   : > { %419 = vst.msk [vmem:[#allocation2 + $0x39] sm:$0xff] %vm373_vm0, %v344_v36  ;;  %v320_v55 = vadd.f32 %v3316_v2, %v284_v46  ;;  %v285_v56 = vmul.f32 %v3299_v1, %v249_v43  ;;  %v323_v60 = vadd.f32 %v3316_v2, %v287_v47  ;;  %v286_v61 = vmul.f32 %v3299_v1, %v250_v48  ;;  %v262_v43 = vld [vmem:[%s3311_s25 + $0xc8] sm:$0xff] }
  0x1b   : > { %416 = vst.msk [vmem:[#allocation2 + $0x19] sm:$0xff] %vm373_vm0, %v341_v39  ;;  %v345_v59 = vmax.f32 %v313_v50, 0.0  ;;  %v346_v3 = vmax.f32 %v314_v51, 0.0  ;;  %v324_v4 = vadd.f32 %v3316_v2, %v288_v52  ;;  %v351_v6 = vmax.f32 %v319_v54, 0.0  ;;  %v266_v54 = vld [vmem:[%s3311_s25 + $0xe8] sm:$0xff] }
  0x1c   : > { %417 = vst.msk [vmem:[#allocation2 + $0x21] sm:$0xff] %vm373_vm0, %v342_v44  ;;  %v321_v7 = vadd.f32 %v3316_v2, %v285_v56  ;;  %v289_v8 = vmul.f32 %v3299_v1, %v253_v57  ;;  %v290_v9 = vmul.f32 %v3299_v1, %v254_v58  ;;  %v352_v12 = vmax.f32 %v320_v55, 0.0 }
  0x1d   : > { %424 = vst.msk [vmem:[#allocation2 + $0x79] sm:$0xff] %vm373_vm0, %v349_v49  ;;  %v322_v13 = vadd.f32 %v3316_v2, %v286_v61  ;;  %v293_v14 = vmul.f32 %v3299_v1, %v257_v62  ;;  %v294_v15 = vmul.f32 %v3299_v1, %v258_v63  ;;  %v355_v18 = vmax.f32 %v323_v60, 0.0  ;;  %v265_v49 = vld [vmem:[%s3311_s25 + $0xe0] sm:$0xff] }
  0x1e   : > { %v488_v11 = vld [vmem:[#allocation2 + $0x61] sm:$0xff]  ;;  %425 = vst.msk [vmem:[#allocation2 + $0x81] sm:$0xff] %vm373_vm0, %v350_v53  ;;  %v325_v19 = vadd.f32 %v3316_v2, %v289_v8  ;;  %v291_v20 = vmul.f32 %v3299_v1, %v255_v5  ;;  %v356_v23 = vmax.f32 %v324_v4, 0.0  ;;  %v326_v24 = vadd.f32 %v3316_v2, %v290_v9 }
  0x1f   : > { %v489_v17 = vld [vmem:[#allocation2 + $0x69] sm:$0xff]  ;;  %420 = vst.msk [vmem:[#allocation2 + $0x49] sm:$0xff] %vm373_vm0, %v345_v59  ;;  %v292_v25 = vmul.f32 %v3299_v1, %v256_v10  ;;  %v353_v29 = vmax.f32 %v321_v7, 0.0  ;;  %v329_v30 = vadd.f32 %v3316_v2, %v293_v14  ;;  %v295_v31 = vmul.f32 %v3299_v1, %v259_v16 }
  0x20   : > { %v3391_v21 = vpack.i.bf16 %v489_v17, %v488_v11  ;;  %v484_v22 = vld [vmem:[#allocation2 + $0x31] sm:$0xff]  ;;  %421 = vst.msk [vmem:[#allocation2 + $0x51] sm:$0xff] %vm373_vm0, %v346_v3  ;;  %v354_v35 = vmax.f32 %v322_v13, 0.0  ;;  %v330_v36 = vadd.f32 %v3316_v2, %v294_v15  ;;  %v357_v39 = vmax.f32 %v325_v19, 0.0 }
  0x21   : > { %v485_v28 = vld [vmem:[#allocation2 + $0x39] sm:$0xff]  ;;  %426 = vst.msk [vmem:[#allocation2 + $0x91] sm:$0xff] %vm373_vm0, %v351_v6  ;;  %v327_v40 = vadd.f32 %v3316_v2, %v291_v20  ;;  %v296_v41 = vmul.f32 %v3299_v1, %v260_v26  ;;  %v299_v42 = vmul.f32 %v3299_v1, %v263_v27  ;;  %v358_v46 = vmax.f32 %v326_v24, 0.0 }
  0x22   : > { %2612 = vrot.lane.b32.xlu2 %v3391_v21, %s3242_s28  ;;  %v3404_v33 = vpack.i.bf16 %v485_v28, %v484_v22  ;;  %v482_v34 = vld [vmem:[#allocation2 + $0x19] sm:$0xff]  ;;  %427 = vst.msk [vmem:[#allocation2 + $0x99] sm:$0xff] %vm373_vm0, %v352_v12  ;;  %v328_v47 = vadd.f32 %v3316_v2, %v292_v25  ;;  %v300_v48 = vmul.f32 %v3299_v1, %v264_v32  ;;  %v361_v51 = vmax.f32 %v329_v30, 0.0 }
  0x23   : > { %v483_v38 = vld [vmem:[#allocation2 + $0x21] sm:$0xff]  ;;  %430 = vst.msk [vmem:[#allocation2 + $0xc1] sm:$0xff] %vm373_vm0, %v355_v18  ;;  %v331_v52 = vadd.f32 %v3316_v2, %v295_v31  ;;  %v297_v53 = vmul.f32 %v3299_v1, %v261_v37  ;;  %v362_v57 = vmax.f32 %v330_v36, 0.0  ;;  %v332_v58 = vadd.f32 %v3316_v2, %v296_v41 }
  0x24   : > { %2602 = vrot.lane.b32.xlu1 %v3404_v33, %s3242_s28  ;;  %v3416_v44 = vpack.i.bf16 %v483_v38, %v482_v34  ;;  %v490_v45 = vld [vmem:[#allocation2 + $0x79] sm:$0xff]  ;;  %431 = vst.msk [vmem:[#allocation2 + $0xc9] sm:$0xff] %vm373_vm0, %v356_v23  ;;  %v298_v59 = vmul.f32 %v3299_v1, %v262_v43  ;;  %v359_v61 = vmax.f32 %v327_v40, 0.0  ;;  %v335_v62 = vadd.f32 %v3316_v2, %v299_v42 }
  0x25   : > { %v491_v50 = vld [vmem:[#allocation2 + $0x81] sm:$0xff]  ;;  %428 = vst.msk [vmem:[#allocation2 + $0xa9] sm:$0xff] %vm373_vm0, %v353_v29  ;;  %v301_v63 = vmul.f32 %v3299_v1, %v265_v49  ;;  %v360_v5 = vmax.f32 %v328_v47, 0.0  ;;  %v336_v6 = vadd.f32 %v3316_v2, %v300_v48  ;;  %v302_v7 = vmul.f32 %v3299_v1, %v266_v54 }
  0x26   : > { %2597 = vrot.lane.b32.xlu0 %v3416_v44, %s3242_s28  ;;  %v3428_v55 = vpack.i.bf16 %v491_v50, %v490_v45  ;;  %v486_v56 = vld [vmem:[#allocation2 + $0x49] sm:$0xff]  ;;  %429 = vst.msk [vmem:[#allocation2 + $0xb1] sm:$0xff] %vm373_vm0, %v354_v35  ;;  %v363_v9 = vmax.f32 %v331_v52, 0.0  ;;  %v333_v10 = vadd.f32 %v3316_v2, %v297_v53  ;;  %v364_v12 = vmax.f32 %v332_v58, 0.0  ;;  %v514_v52 = vld [vmem:[#allocation2 + $0x1a] sm:$0xff] }
  0x27   : > { %v487_v60 = vld [vmem:[#allocation2 + $0x51] sm:$0xff]  ;;  %432 = vst.msk [vmem:[#allocation2 + $0xd9] sm:$0xff] %vm373_vm0, %v357_v39  ;;  %v334_v13 = vadd.f32 %v3316_v2, %v298_v59  ;;  %v367_v16 = vmax.f32 %v335_v62, 0.0  ;;  %v337_v17 = vadd.f32 %v3316_v2, %v301_v63  ;;  %v368_v18 = vmax.f32 %v336_v6, 0.0  ;;  %v515_v53 = vld [vmem:[#allocation2 + $0x22] sm:$0xff] }
  0x28   : > { %v3436_v3 = vpack.i.bf16 %v487_v60, %v486_v56  ;;  %v492_v4 = vld [vmem:[#allocation2 + $0x91] sm:$0xff]  ;;  %433 = vst.msk [vmem:[#allocation2 + $0xe1] sm:$0xff] %vm373_vm0, %v358_v46  ;;  %v338_v19 = vadd.f32 %v3316_v2, %v302_v7  ;;  %v365_v23 = vmax.f32 %v333_v10, 0.0  ;;  %v512_v54 = vld [vmem:[#allocation2 + $0x2] sm:$0xff]  ;;  %vm2420_vm12 = vcmask 1040384  }
  0x29   : > { %v493_v8 = vld [vmem:[#allocation2 + $0x99] sm:$0xff]  ;;  %436 = vst.msk [vmem:[#allocation2 + $0x109] sm:$0xff] %vm373_vm0, %v361_v51  ;;  %v366_v25 = vmax.f32 %v334_v13, 0.0  ;;  %v369_v28 = vmax.f32 %v337_v17, 0.0  ;;  %v513_v56 = vld [vmem:[#allocation2 + $0xa] sm:$0xff]  ;;  %v520_v62 = vld [vmem:[#allocation2 + $0x62] sm:$0xff] }
  0x2a   : > { %2617 = vrot.lane.b32.xlu2 %v3428_v55, %s3242_s28  ;;  %v3445_v11 = vpack.i.bf16 %v493_v8, %v492_v4  ;;  %437 = vst.msk [vmem:[#allocation2 + $0x111] sm:$0xff] %vm373_vm0, %v362_v57  ;;  %v496_v14 = vld [vmem:[#allocation2 + $0xc1] sm:$0xff]  ;;  %v370_v30 = vmax.f32 %v338_v19, 0.0  ;;  %v3535_v57 = vpack.i.bf16 %v515_v53, %v514_v52  ;;  %v2671_v58 = vpack.i.bf16 %v513_v56, %v512_v54  ;;  %v516_v59 = vld [vmem:[#allocation2 + $0x32] sm:$0xff] }
  0x2b   : > { %v497_v15 = vld [vmem:[#allocation2 + $0xc9] sm:$0xff]  ;;  %434 = vst.msk [vmem:[#allocation2 + $0xf1] sm:$0xff] %vm373_vm0, %v359_v61  ;;  %v522_v8 = vld [vmem:[#allocation2 + $0x7a] sm:$0xff] }
  0x2c   : > { %2607 = vrot.lane.b32.xlu1 %v3436_v3, %s3242_s28  ;;  %435 = vst.msk [vmem:[#allocation2 + $0xf9] sm:$0xff] %vm373_vm0, %v360_v5  ;;  %v494_v20 = vld [vmem:[#allocation2 + $0xa9] sm:$0xff]  ;;  %v3458_v24 = vpack.i.bf16 %v497_v15, %v496_v14  ;;  %v524_v14 = vld [vmem:[#allocation2 + $0x92] sm:$0xff] }
  0x2d   : > { %v495_v22 = vld [vmem:[#allocation2 + $0xb1] sm:$0xff]  ;;  %438 = vst.msk [vmem:[#allocation2 + $0x121] sm:$0xff] %vm373_vm0, %v363_v9 }
  0x2e   : > { %2622 = vrot.lane.b32.xlu0 %v3445_v11, %s3242_s28  ;;  %439 = vst.msk [vmem:[#allocation2 + $0x129] sm:$0xff] %vm373_vm0, %v364_v12  ;;  %v498_v26 = vld [vmem:[#allocation2 + $0xd9] sm:$0xff]  ;;  %v3462_v29 = vpack.i.bf16 %v495_v22, %v494_v20  ;;  %v518_v61 = vld [vmem:[#allocation2 + $0x4a] sm:$0xff] }
  0x2f   : > { %v499_v27 = vld [vmem:[#allocation2 + $0xe1] sm:$0xff]  ;;  %442 = vst.msk [vmem:[#allocation2 + $0x151] sm:$0xff] %vm373_vm0, %v367_v16  ;;  %v526_v10 = vld [vmem:[#allocation2 + $0xaa] sm:$0xff] }
  0x30   : > { %443 = vst.msk [vmem:[#allocation2 + $0x159] sm:$0xff] %vm373_vm0, %v368_v18  ;;  %v3468_v31 = vpack.i.bf16 %v499_v27, %v498_v26  ;;  %v502_v32 = vld [vmem:[#allocation2 + $0x109] sm:$0xff] }
  0x31   : > { %440 = vst.msk [vmem:[#allocation2 + $0x139] sm:$0xff] %vm373_vm0, %v365_v23  ;;  %v503_v34 = vld [vmem:[#allocation2 + $0x111] sm:$0xff]  ;;  %v528_v18 = vld [vmem:[#allocation2 + $0xc2] sm:$0xff]  ;;  %v530_v23 = vld [vmem:[#allocation2 + $0xda] sm:$0xff] }
  0x32   : > { %2632 = vrot.lane.b32.xlu2 %v3458_v24, %s3242_s28  ;;  %441 = vst.msk [vmem:[#allocation2 + $0x141] sm:$0xff] %vm373_vm0, %v366_v25  ;;  %v500_v35 = vld [vmem:[#allocation2 + $0xf1] sm:$0xff]  ;;  %v3479_v37 = vpack.i.bf16 %v503_v34, %v502_v32 }
  0x33   : > { %444 = vst.msk [vmem:[#allocation2 + $0x169] sm:$0xff] %vm373_vm0, %v369_v28  ;;  %v501_v36 = vld [vmem:[#allocation2 + $0xf9] sm:$0xff]  ;;  %v534_v28 = vld [vmem:[#allocation2 + $0x10a] sm:$0xff] }
  0x34   : > { %2627 = vrot.lane.b32.xlu1 %v3462_v29, %s3242_s28  ;;  %445 = vst.msk [vmem:[#allocation2 + $0x171] sm:$0xff] %vm373_vm0, %v370_v30  ;;  %v504_v38 = vld [vmem:[#allocation2 + $0x121] sm:$0xff]  ;;  %v3485_v40 = vpack.i.bf16 %v501_v36, %v500_v35  ;;  %v267_v56 = vld [vmem:[%s3311_s25 + $0xf0] sm:$0xff] }
  0x35   : > { %v505_v39 = vld [vmem:[#allocation2 + $0x129] sm:$0xff]  ;;  %386 = vst.msk [vmem:[#allocation2 + $0x48] sm:$0x1] %vm383_vm2, %v3241_v0 }
  0x36   : > { %2637 = vrot.lane.b32.xlu0 %v3468_v31, %s3242_s28  ;;  %387 = vst.msk [vmem:[#allocation2 + $0x60] sm:$0x1] %vm383_vm2, %v3241_v0  ;;  %v3493_v41 = vpack.i.bf16 %v505_v39, %v504_v38  ;;  %v508_v42 = vld [vmem:[#allocation2 + $0x151] sm:$0xff]  ;;  %v536_v36 = vld [vmem:[#allocation2 + $0x122] sm:$0xff] }
  0x37   : > { %388 = vst.msk [vmem:[#allocation2 + $0x78] sm:$0x1] %vm383_vm2, %v3241_v0  ;;  %v509_v43 = vld [vmem:[#allocation2 + $0x159] sm:$0xff] }
  0x38   : > { %389 = vst.msk [vmem:[#allocation2 + $0x90] sm:$0x1] %vm383_vm2, %v3241_v0  ;;  %v506_v45 = vld [vmem:[#allocation2 + $0x139] sm:$0xff]  ;;  %v3507_v47 = vpack.i.bf16 %v509_v43, %v508_v42 }
  0x39   : > { %390 = vst.msk [vmem:[#allocation2 + $0xa8] sm:$0x1] %vm383_vm2, %v3241_v0  ;;  %v507_v46 = vld [vmem:[#allocation2 + $0x141] sm:$0xff]  ;;  %v540_v43 = vld [vmem:[#allocation2 + $0x152] sm:$0xff] }
  0x3a   : > { %2647 = vrot.lane.b32.xlu2 %v3479_v37, %s3242_s28  ;;  %391 = vst.msk [vmem:[#allocation2 + $0xc0] sm:$0x1] %vm383_vm2, %v3241_v0  ;;  %v510_v48 = vld [vmem:[#allocation2 + $0x169] sm:$0xff]  ;;  %v3513_v50 = vpack.i.bf16 %v507_v46, %v506_v45  ;;  %v538_v32 = vld [vmem:[#allocation2 + $0x13a] sm:$0xff] }
  0x3b   : > { %392 = vst.msk [vmem:[#allocation2 + $0xd8] sm:$0x1] %vm383_vm2, %v3241_v0  ;;  %v511_v49 = vld [vmem:[#allocation2 + $0x171] sm:$0xff] }
  0x3c   : > { %2642 = vrot.lane.b32.xlu1 %v3485_v40, %s3242_s28  ;;  %393 = vst.msk [vmem:[#allocation2 + $0xf0] sm:$0x1] %vm383_vm2, %v3241_v0  ;;  %v3521_v51 = vpack.i.bf16 %v511_v49, %v510_v48  ;;  %v3616_v46 = vld [vmem:[#allocation2 + $0x18] sm:$0xff]  ;;  %v3618_v48 = vld [vmem:[#allocation2 + $0x20] sm:$0xff]  ;;  %v542_v52 = vld [vmem:[#allocation2 + $0x16a] sm:$0xff] }
  0x3d   : > { %394 = vst.msk [vmem:[#allocation2 + $0x108] sm:$0x1] %vm383_vm2, %v3241_v0  ;;  %v2751_v54 = vpack.i.bf16 %v3618_v48, %v3616_v46 }
  0x3e   : > { %2652 = vrot.lane.b32.xlu0 %v3493_v41, %s3242_s28  ;;  %395 = vst.msk [vmem:[#allocation2 + $0x120] sm:$0x1] %vm383_vm2, %v3241_v0 }
  0x3f   : > { %396 = vst.msk [vmem:[#allocation2 + $0x138] sm:$0x1] %vm383_vm2, %v3241_v0 }
  0x40   : > { %397 = vst.msk [vmem:[#allocation2 + $0x150] sm:$0x1] %vm383_vm2, %v3241_v0 }
  0x41   : > { %398 = vst.msk [vmem:[#allocation2 + $0x168] sm:$0x1] %vm383_vm2, %v3241_v0 }
  0x42   : > { %2662 = vrot.lane.b32.xlu2 %v3507_v47, %s3242_s28  ;;  %399 = vst.msk [vmem:[#allocation2 + $0x180] sm:$0x1] %vm383_vm2, %v3241_v0 }
  0x43   : > { %401 = vst.msk [vmem:[#allocation2 + $0x41] sm:$0x1] %vm383_vm2, %v3241_v0 }
  0x44   : > { %2657 = vrot.lane.b32.xlu1 %v3513_v50, %s3242_s28  ;;  %402 = vst.msk [vmem:[#allocation2 + $0x59] sm:$0x1] %vm383_vm2, %v3241_v0 }
  0x45   : > { %403 = vst.msk [vmem:[#allocation2 + $0x71] sm:$0x1] %vm383_vm2, %v3241_v0 }
  0x46   : > { %2667 = vrot.lane.b32.xlu0 %v3521_v51, %s3242_s28  ;;  %404 = vst.msk [vmem:[#allocation2 + $0x89] sm:$0x1] %vm383_vm2, %v3241_v0 }
  0x47   : > { %405 = vst.msk [vmem:[#allocation2 + $0xa1] sm:$0x1] %vm383_vm2, %v3241_v0 }
  0x48   : > { %406 = vst.msk [vmem:[#allocation2 + $0xb9] sm:$0x1] %vm383_vm2, %v3241_v0 }
  0x49   : > { %407 = vst.msk [vmem:[#allocation2 + $0xd1] sm:$0x1] %vm383_vm2, %v3241_v0 }
  0x4a   : > { %2677 = vrot.lane.b32.xlu2 %v3535_v57, %s3243_s29  ;;  %408 = vst.msk [vmem:[#allocation2 + $0xe9] sm:$0x1] %vm383_vm2, %v3241_v0  ;;  %v517_v60 = vld [vmem:[#allocation2 + $0x3a] sm:$0xff] }
  0x4b   : > { %409 = vst.msk [vmem:[#allocation2 + $0x101] sm:$0x1] %vm383_vm2, %v3241_v0  ;;  %v3558_v63 = vpack.i.bf16 %v517_v60, %v516_v59  ;;  %v519_v4 = vld [vmem:[#allocation2 + $0x52] sm:$0xff]  ;;  %v303_v60 = vmul.f32 %v3299_v1, %v267_v56  ;;  %v559_v56 = vld [vmem:[#allocation2 + $0xc8] sm:$0xff] }
  0x4c   : > { %2672 = vrot.lane.b32.xlu1 %v2671_v58, %s3243_s29  ;;  %410 = vst.msk [vmem:[#allocation2 + $0x119] sm:$0x1] %vm383_vm2, %v3241_v0  ;;  %v521_v5 = vld [vmem:[#allocation2 + $0x6a] sm:$0xff]  ;;  %v3566_v6 = vpack.i.bf16 %v519_v4, %v518_v61  ;;  %v268_v58 = vld [vmem:[%s3311_s25 + $0xf8] sm:$0xff] }
  0x4d   : > { %411 = vst.msk [vmem:[#allocation2 + $0x131] sm:$0x1] %vm383_vm2, %v3241_v0  ;;  %v3568_v7 = vpack.i.bf16 %v521_v5, %v520_v62  ;;  %v523_v9 = vld [vmem:[#allocation2 + $0x82] sm:$0xff]  ;;  %v304_v61 = vmul.f32 %v3299_v1, %v268_v58  ;;  %v3634_v62 = vld [vmem:[#allocation2 + $0x30] sm:$0xff]  ;;  %v3636_v4 = vld [vmem:[#allocation2 + $0x38] sm:$0xff]  ;;  %v339_v5 = vadd.f32 %v3316_v2, %v303_v60 }
  0x4e   : > { %2682 = vrot.lane.b32.xlu0 %v3558_v63, %s3243_s29  ;;  %412 = vst.msk [vmem:[#allocation2 + $0x149] sm:$0x1] %vm383_vm2, %v3241_v0  ;;  %v3582_v13 = vpack.i.bf16 %v523_v9, %v522_v8  ;;  %v525_v15 = vld [vmem:[#allocation2 + $0x9a] sm:$0xff]  ;;  %v3684_v58 = vld [vmem:[#allocation2 + $0xf0] sm:$0xff] }
  0x4f   : > { %413 = vst.msk [vmem:[#allocation2 + $0x161] sm:$0x1] %vm383_vm2, %v3241_v0  ;;  %v527_v12 = vld [vmem:[#allocation2 + $0xb2] sm:$0xff]  ;;  %v3588_v17 = vpack.i.bf16 %v525_v15, %v524_v14  ;;  %v340_v8 = vadd.f32 %v3316_v2, %v304_v61  ;;  %v550_v9 = vld [vmem:[#allocation2 + $0x60] sm:$0xff]  ;;  %v371_v1 = vmax.f32 %v339_v5, 0.0  ;;  %v3647_v15 = vld [vmem:[#allocation2 + $0x48] sm:$0xff] }
  0x50   : > { %414 = vst.msk [vmem:[#allocation2 + $0x179] sm:$0x1] %vm383_vm2, %v3241_v0  ;;  %v3584_v16 = vpack.i.bf16 %v527_v12, %v526_v10  ;;  %v529_v19 = vld [vmem:[#allocation2 + $0xca] sm:$0xff]  ;;  %v3645_v12 = vpack.i.bf16 %v3636_v4, %v3634_v62  ;;  %v3686_v60 = vld [vmem:[#allocation2 + $0xf8] sm:$0xff] }
  0x51   : > { %415 = vst.msk [vmem:[#allocation2 + $0x191] sm:$0x1] %vm383_vm2, %v3241_v0  ;;  %v532_v0 = vld [vmem:[#allocation2 + $0xf2] sm:$0xff]  ;;  %v3594_v22 = vpack.i.bf16 %v529_v19, %v528_v18  ;;  %v531_v25 = vld [vmem:[#allocation2 + $0xe2] sm:$0xff]  ;;  %v372_v14 = vmax.f32 %v340_v8, 0.0 }
  0x52   : > { %2692 = vrot.lane.b32.xlu2 %v3568_v7, %s3243_s29  ;;  %4735 = vst [vmem:[#allocation3_spill] sm:$0xff] %v3584_v16  ;;  %v533_v20 = vld [vmem:[#allocation2 + $0xfa] sm:$0xff]  ;;  %v3600_v27 = vpack.i.bf16 %v531_v25, %v530_v23  ;;  %v551_v10 = vld [vmem:[#allocation2 + $0x68] sm:$0xff]  ;;  %v3649_v18 = vld [vmem:[#allocation2 + $0x50] sm:$0xff] }
  0x53   : > { %4736 = vst [vmem:[#allocation4_spill] sm:$0xff] %v3594_v22  ;;  %v3596_v26 = vpack.i.bf16 %v533_v20, %v532_v0  ;;  %v535_v30 = vld [vmem:[#allocation2 + $0x112] sm:$0xff]  ;;  %v2766_v19 = vpack.i.bf16 %v551_v10, %v550_v9  ;;  %v3657_v2 = vpack.i.bf16 %v3649_v18, %v3647_v15  ;;  %v553_v20 = vld [vmem:[#allocation2 + $0x80] sm:$0xff]  ;;  %v3660_v23 = vld [vmem:[#allocation2 + $0xa8] sm:$0xff] }
  0x54   : > { %2687 = vrot.lane.b32.xlu1 %v3566_v6, %s3243_s29  ;;  %4738 = vst [vmem:[#allocation6_spill] sm:$0xff] %v3600_v27  ;;  %v3606_v35 = vpack.i.bf16 %v535_v30, %v534_v28  ;;  %v537_v38 = vld [vmem:[#allocation2 + $0x12a] sm:$0xff]  ;;  %v552_v0 = vld [vmem:[#allocation2 + $0x78] sm:$0xff] }
  0x55   : > { %4737 = vst [vmem:[#allocation5_spill] sm:$0xff] %v3596_v26  ;;  %v539_v34 = vld [vmem:[#allocation2 + $0x142] sm:$0xff]  ;;  %v3612_v42 = vpack.i.bf16 %v537_v38, %v536_v36  ;;  %v3662_v25 = vld [vmem:[#allocation2 + $0xb0] sm:$0xff]  ;;  %v2771_v28 = vpack.i.bf16 %v553_v20, %v552_v0  ;;  %v3668_v38 = vld [vmem:[#allocation2 + $0x98] sm:$0xff] }
  0x56   : > { %2697 = vrot.lane.b32.xlu0 %v3582_v13, %s3243_s29  ;;  %4739 = vst [vmem:[#allocation7_spill] sm:$0xff] %v3606_v35  ;;  %v3608_v39 = vpack.i.bf16 %v539_v34, %v538_v32  ;;  %v541_v45 = vld [vmem:[#allocation2 + $0x15a] sm:$0xff]  ;;  %v3666_v36 = vld [vmem:[#allocation2 + $0x90] sm:$0xff] }
  0x57   : > { %4741 = vst [vmem:[#allocation9_spill] sm:$0xff] %v3612_v42  ;;  %v3622_v49 = vpack.i.bf16 %v541_v45, %v540_v43  ;;  %v543_v53 = vld [vmem:[#allocation2 + $0x172] sm:$0xff]  ;;  %v2781_v43 = vpack.i.bf16 %v3662_v25, %v3660_v23 }
  0x58   : > { %4740 = vst [vmem:[#allocation8_spill] sm:$0xff] %v3608_v39  ;;  %v3630_v59 = vpack.i.bf16 %v543_v53, %v542_v52  ;;  %v3681_v53 = vpack.i.bf16 %v3668_v38, %v3666_v36 }
  0x59   : > { %4742 = vst [vmem:[#allocation10_spill] sm:$0xff] %v3622_v49 }
  0x5a   : > { %2707 = vrot.lane.b32.xlu2 %v3584_v16, %s3243_s29  ;;  %4743 = vst [vmem:[#allocation11_spill] sm:$0xff] %v3630_v59 }
  0x5b   : > { %4744 = vst [vmem:[#allocation12_spill] sm:$0xff] %v3645_v12 }
  0x5c   : > { %2702 = vrot.lane.b32.xlu1 %v3588_v17, %s3243_s29  ;;  %446 = vst.msk [vmem:[#allocation2 + $0x181] sm:$0xff] %vm373_vm0, %v371_v1  ;;  %v3692_v1 = vld [vmem:[#allocation2 + $0xe0] sm:$0xff] }
  0x5d   : > { %447 = vst.msk [vmem:[#allocation2 + $0x189] sm:$0xff] %vm373_vm0, %v372_v14  ;;  %v3696_v14 = vpack.i.bf16 %v3686_v60, %v3684_v58 }
  0x5e   : > { %2712 = vrot.lane.b32.xlu0 %v3594_v22, %s3243_s29  ;;  %4745 = vst [vmem:[#allocation13_spill] sm:$0xff] %v3657_v2 }
  0x5f   : > { %4746 = vst [vmem:[#allocation14_spill] sm:$0xff] %v3681_v53 }
  0x60   : > { %4747 = vst [vmem:[#allocation15_spill] sm:$0xff] %v3696_v14 }
  0x62   : > { %2722 = vrot.lane.b32.xlu2 %v3596_v26, %s3243_s29 }
  0x64   : > { %2717 = vrot.lane.b32.xlu1 %v3600_v27, %s3243_s29  ;;  %v3733_v27 = vld [vmem:[#allocation2 + $0x168] sm:$0xff] }
  0x66   : > { %2727 = vrot.lane.b32.xlu0 %v3606_v35, %s3243_s29 }
  0x6a   : > { %2737 = vrot.lane.b32.xlu2 %v3608_v39, %s3243_s29  ;;  %v571_v39 = vld [vmem:[#allocation2 + $0x158] sm:$0xff] }
  0x6c   : > { %2732 = vrot.lane.b32.xlu1 %v3612_v42, %s3243_s29  ;;  %v575_v42 = vld [vmem:[#allocation2 + $0x188] sm:$0xff] }
  0x6e   : > { %2742 = vrot.lane.b32.xlu0 %v3622_v49, %s3243_s29  ;;  %v574_v49 = vld [vmem:[#allocation2 + $0x180] sm:$0xff] }
  0x72   : > { %2752 = vrot.lane.b32.xlu2 %v2751_v54, %s3244_s30  ;;  %v558_v54 = vld [vmem:[#allocation2 + $0xc0] sm:$0xff] }
  0x73   : > { %v2786_v61 = vpack.i.bf16 %v559_v56, %v558_v54 }
  0x74   : > { %2747 = vrot.lane.b32.xlu1 %v3630_v59, %s3243_s29  ;;  %s235_s29 = scalar_lea.vmem %s4719_s5, %s2518_s22 }
  0x76   : > { %2757 = vrot.lane.b32.xlu0 %v3645_v12, %s3244_s30 }
  0x7a   : > { %2767 = vrot.lane.b32.xlu2 %v2766_v19, %s3244_s30 }
  0x7c   : > { %2762 = vrot.lane.b32.xlu1 %v3657_v2, %s3244_s30  ;;  %v2613_v30 = vpop.permute.xlu2 %2612 }
  0x7d   : > { %v2615_v32 = vunpack.i.h.bf16 %v2613_v30  ;;  %v2614_v34 = vunpack.i.l.bf16 %v2613_v30 }
  0x7e   : > { %2772 = vrot.lane.b32.xlu0 %v2771_v28, %s3244_s30 }
  0x7f   : > { %v3673_v45 = vsel %vm373_vm0, %v550_v9, %v2614_v34  ;;  %v3676_v52 = vsel %vm373_vm0, %v551_v10, %v2615_v32  ;;  %v3690_v10 = vld [vmem:[#allocation2 + $0xd8] sm:$0xff]  ;;  %v564_v32 = vld [vmem:[#allocation2 + $0x108] sm:$0xff]  ;;  %v565_v34 = vld [vmem:[#allocation2 + $0x110] sm:$0xff] }
  0x80   : > { %v2791_v30 = vpack.i.bf16 %v3692_v1, %v3690_v10 }
  0x82   : > { %2782 = vrot.lane.b32.xlu2 %v2781_v43, %s3244_s30  ;;  %v3709_v43 = vld [vmem:[#allocation2 + $0x138] sm:$0xff] }
  0x84   : > { %2777 = vrot.lane.b32.xlu1 %v3681_v53, %s3244_s30  ;;  %v2618_v5 = vpop.permute.xlu2 %2617  ;;  %v3714_v53 = vld [vmem:[#allocation2 + $0x120] sm:$0xff] }
  0x85   : > { %v2620_v8 = vunpack.i.h.bf16 %v2618_v5  ;;  %v2619_v9 = vunpack.i.l.bf16 %v2618_v5  ;;  %v3711_v5 = vld [vmem:[#allocation2 + $0x140] sm:$0xff]  ;;  %4748 = vst [vmem:[#allocation16_spill] sm:$0xff] %v3714_v53 }
  0x86   : > { %2787 = vrot.lane.b32.xlu0 %v2786_v61, %s3244_s30  ;;  %v3716_v61 = vld [vmem:[#allocation2 + $0x128] sm:$0xff]  ;;  %v2811_v12 = vpack.i.bf16 %v3711_v5, %v3709_v43 }
  0x87   : > { %v3699_v19 = vsel %vm373_vm0, %v553_v20, %v2620_v8  ;;  %v3702_v28 = vsel %vm373_vm0, %v552_v0, %v2619_v9  ;;  %v2801_v20 = vpack.i.bf16 %v565_v34, %v564_v32  ;;  %4749 = vst [vmem:[#allocation17_spill] sm:$0xff] %v3716_v61 }
  0x8a   : > { %2797 = vrot.lane.b32.xlu2 %v3696_v14, %s3244_s30  ;;  %v3718_v2 = vpop.permute.xlu0 %2592 }
  0x8c   : > { %2792 = vrot.lane.b32.xlu1 %v2791_v30, %s3244_s30  ;;  %v2633_v8 = vpop.permute.xlu2 %2632  ;;  %v2806_v30 = vpack.i.bf16 %v3716_v61, %v3714_v53 }
  0x8d   : > { %v2635_v0 = vunpack.i.h.bf16 %v2633_v8  ;;  %v2634_v9 = vunpack.i.l.bf16 %v2633_v8  ;;  %v570_v8 = vld [vmem:[#allocation2 + $0x150] sm:$0xff] }
  0x8e   : > { %2802 = vrot.lane.b32.xlu0 %v2801_v20, %s3244_s30  ;;  %v2816_v26 = vpack.i.bf16 %v571_v39, %v570_v8 }
  0x8f   : > { %v3723_v14 = vsel %vm373_vm0, %v559_v56, %v2635_v0  ;;  %v3726_v59 = vsel %vm373_vm0, %v558_v54, %v2634_v9  ;;  %v3735_v54 = vld [vmem:[#allocation2 + $0x170] sm:$0xff]  ;;  %v2826_v9 = vpack.i.bf16 %v575_v42, %v574_v49 }
  0x90   : > { %v2821_v61 = vpack.i.bf16 %v3735_v54, %v3733_v27 }
  0x92   : > { %2812 = vrot.lane.b32.xlu2 %v2811_v12, %s3244_s30 }
  0x94   : > { %2807 = vrot.lane.b32.xlu1 %v2806_v30, %s3244_s30  ;;  %v2648_v35 = vpop.permute.xlu2 %2647 }
  0x95   : > { %v2650_v56 = vunpack.i.h.bf16 %v2648_v35  ;;  %v2649_v0 = vunpack.i.l.bf16 %v2648_v35 }
  0x96   : > { %v3737_v20 = vpop.permute.xlu1 %2602  ;;  %2817 = vrot.lane.b32.xlu0 %v2816_v26, %s3244_s30 }
  0x97   : > { %v3740_v53 = vsel %vm373_vm0, %v565_v34, %v2650_v56  ;;  %v3743_v12 = vsel %vm373_vm0, %v564_v32, %v2649_v0 }
  0x98   : > { %v2598_v30 = vpop.permute.xlu0 %2597 }
  0x99   : > { %v2600_v34 = vunpack.i.h.bf16 %v2598_v30  ;;  %v2599_v56 = vunpack.i.l.bf16 %v2598_v30 }
  0x9a   : > { %2827 = vrot.lane.b32.xlu2 %v2826_v9, %s3244_s30 }
  0x9c   : > { %2822 = vrot.lane.b32.xlu1 %v2821_v61, %s3244_s30  ;;  %v2663_v35 = vpop.permute.xlu2 %2662 }
  0x9d   : > { %v2665_v16 = vunpack.i.h.bf16 %v2663_v35  ;;  %v2664_v22 = vunpack.i.l.bf16 %v2663_v35 }
  0x9e   : > { %v3750_v42 = vpop.permute.xlu1 %2607  ;;  %2832 = vrot.lane.b32.xlu0 %v3416_v44, %s3245_s6  ;;  %v1764_v44 = vsel %vm373_vm0, %v3618_v48, %v2600_v34 }
  0x9f   : > { %v3753_v49 = vsel %vm373_vm0, %v571_v39, %v2665_v16  ;;  %v3756_v32 = vsel %vm373_vm0, %v570_v8, %v2664_v22  ;;  %v1763_v22 = vsel %vm373_vm0, %v3616_v46, %v2599_v56 }
  0xa0   : > { %v3760_v26 = vpop.permute.xlu0 %2622 }
  0xa2   : > { %2842 = vrot.lane.b32.xlu2 %v3436_v3, %s3245_s6 }
  0xa4   : > { %2837 = vrot.lane.b32.xlu1 %v3404_v33, %s3245_s6  ;;  %v2678_v16 = vpop.permute.xlu2 %2677 }
  0xa5   : > { %v2680_v39 = vunpack.i.h.bf16 %v2678_v16  ;;  %v2679_v61 = vunpack.i.l.bf16 %v2678_v16 }
  0xa6   : > { %v2628_v8 = vpop.permute.xlu1 %2627  ;;  %2847 = vrot.lane.b32.xlu0 %v3391_v21, %s3245_s6 }
  0xa7   : > { %v3771_v0 = vsel %vm1793_vm3, %v1763_v22, %v2679_v61  ;;  %v3774_v9 = vsel %vm1793_vm3, %v1764_v44, %v2680_v39  ;;  %v2629_v56 = vunpack.i.l.bf16 %v2628_v8 }
  0xa8   : > { %v3778_v33 = vpop.permute.xlu0 %2637 }
  0xa9   : > { %v1775_v39 = vsel %vm373_vm0, %v3660_v23, %v2629_v56 }
  0xaa   : > { %2857 = vrot.lane.b32.xlu2 %v3445_v11, %s3245_s6  ;;  %v2630_v11 = vunpack.i.h.bf16 %v2628_v8 }
  0xac   : > { %2852 = vrot.lane.b32.xlu1 %v3428_v55, %s3245_s6  ;;  %v2693_v3 = vpop.permute.xlu2 %2692 }
  0xad   : > { %v2695_v46 = vunpack.i.h.bf16 %v2693_v3  ;;  %v2694_v48 = vunpack.i.l.bf16 %v2693_v3 }
  0xae   : > { %v2643_v30 = vpop.permute.xlu1 %2642  ;;  %2862 = vrot.lane.b32.xlu0 %v3462_v29, %s3245_s6 }
  0xaf   : > { %v3786_v35 = vsel %vm1793_vm3, %v3676_v52, %v2695_v46  ;;  %v3790_v34 = vsel %vm1793_vm3, %v3673_v45, %v2694_v48  ;;  %v1776_v45 = vsel %vm373_vm0, %v3662_v25, %v2630_v11  ;;  %v2645_v8 = vunpack.i.h.bf16 %v2643_v30  ;;  %v448_v11 = vld [vmem:[#allocation2] sm:$0xff] }
  0xb0   : > { %v3794_v21 = vpop.permute.xlu0 %2652  ;;  %v2644_v3 = vunpack.i.l.bf16 %v2643_v30  ;;  %v2595_v46 = vunpack.i.h.bf16 %v3718_v2  ;;  %v449_v30 = vld [vmem:[#allocation2 + $0x8] sm:$0xff] }
  0xb2   : > { %2872 = vrot.lane.b32.xlu2 %v3468_v31, %s3245_s6 }
  0xb4   : > { %2867 = vrot.lane.b32.xlu1 %v3458_v24, %s3245_s6  ;;  %v2708_v55 = vpop.permute.xlu2 %2707 }
  0xb5   : > { %v2710_v52 = vunpack.i.h.bf16 %v2708_v55  ;;  %v2709_v16 = vunpack.i.l.bf16 %v2708_v55  ;;  %v2604_v55 = vunpack.i.l.bf16 %v3737_v20 }
  0xb6   : > { %v2658_v29 = vpop.permute.xlu1 %2657  ;;  %2877 = vrot.lane.b32.xlu0 %v3485_v40, %s3245_s6  ;;  %v2594_v40 = vunpack.i.l.bf16 %v3718_v2 }
  0xb7   : > { %v3805_v61 = vsel %vm1793_vm3, %v1776_v45, %v2710_v52  ;;  %v3808_v22 = vsel %vm1793_vm3, %v1775_v39, %v2709_v16  ;;  %v1762_v39 = vsel %vm373_vm0, %v449_v30, %v2595_v46  ;;  %v1765_v46 = vsel %vm373_vm0, %v3634_v62, %v2604_v55 }
  0xb8   : > { %v2668_v24 = vpop.permute.xlu0 %2667  ;;  %v2610_v30 = vunpack.i.h.bf16 %v3750_v42 }
  0xb9   : > { %v2670_v31 = vunpack.i.h.bf16 %v2668_v24  ;;  %v2669_v44 = vunpack.i.l.bf16 %v2668_v24  ;;  %v1761_v24 = vsel %vm373_vm0, %v448_v11, %v2594_v40  ;;  %v2609_v11 = vunpack.i.l.bf16 %v3750_v42 }
  0xba   : > { %2887 = vrot.lane.b32.xlu2 %v3493_v41, %s3245_s6 }
  0xbb   : > { %v3816_v23 = vsel %vm373_vm0, %v3735_v54, %v2670_v31  ;;  %v3820_v25 = vsel %vm373_vm0, %v3733_v27, %v2669_v44  ;;  %v1782_v54 = vsel %vm373_vm0, %v3686_v60, %v2645_v8  ;;  %v1781_v27 = vsel %vm373_vm0, %v3684_v58, %v2644_v3  ;;  %v606_v44 = vld [vmem:[#allocation2 + $0x181] sm:$0xff]  ;;  %v607_v8 = vld [vmem:[#allocation2 + $0x189] sm:$0xff] }
  0xbc   : > { %2882 = vrot.lane.b32.xlu1 %v3479_v37, %s3245_s6  ;;  %v2723_v48 = vpop.permute.xlu2 %2722  ;;  %v2605_v31 = vunpack.i.h.bf16 %v3737_v20  ;;  %v2660_v3 = vunpack.i.h.bf16 %v2658_v29 }
  0xbd   : > { %v2725_v56 = vunpack.i.h.bf16 %v2723_v48  ;;  %v2724_v41 = vunpack.i.l.bf16 %v2723_v48  ;;  %v2659_v48 = vunpack.i.l.bf16 %v2658_v29  ;;  %v2906_v29 = vpack.i.bf16 %v607_v8, %v606_v44 }
  0xbe   : > { %v2673_v52 = vpop.permute.xlu1 %2672  ;;  %2892 = vrot.lane.b32.xlu0 %v3513_v50, %s3245_s6  ;;  %v1766_v50 = vsel %vm373_vm0, %v3636_v4, %v2605_v31  ;;  %v1788_v4 = vsel %vm373_vm0, %v3711_v5, %v2660_v3  ;;  %v2625_v3 = vunpack.i.h.bf16 %v3760_v26 }
  0xbf   : > { %v2675_v16 = vunpack.i.h.bf16 %v2673_v52  ;;  %v2674_v45 = vunpack.i.l.bf16 %v2673_v52  ;;  %v3832_v2 = vsel %vm1793_vm3, %v1782_v54, %v2725_v56  ;;  %v3835_v37 = vsel %vm1793_vm3, %v1781_v27, %v2724_v41 }
  0xc0   : > { %v2683_v56 = vpop.permute.xlu0 %2682  ;;  %v1787_v27 = vsel %vm373_vm0, %v3709_v43, %v2659_v48 }
  0xc1   : > { %v1795_v58 = vsel %vm1793_vm3, %v1762_v39, %v2675_v16  ;;  %v1794_v60 = vsel %vm1793_vm3, %v1761_v24, %v2674_v45  ;;  %v2685_v40 = vunpack.i.h.bf16 %v2683_v56  ;;  %v2684_v20 = vunpack.i.l.bf16 %v2683_v56 }
  0xc2   : > { %2902 = vrot.lane.b32.xlu2 %v3521_v51, %s3245_s6  ;;  %v1768_v39 = vsel %vm373_vm0, %v3649_v18, %v2610_v30  ;;  %v1767_v24 = vsel %vm373_vm0, %v3647_v15, %v2609_v11  ;;  %v2624_v18 = vunpack.i.l.bf16 %v3760_v26  ;;  %v1774_v30 = vsel %vm373_vm0, %v3668_v38, %v2625_v3 }
  0xc3   : > { %v3855_v54 = vsel %vm1793_vm3, %v1766_v50, %v2685_v40  ;;  %v3858_v51 = vsel %vm1793_vm3, %v1765_v46, %v2684_v20  ;;  %v2639_v38 = vunpack.i.l.bf16 %v3778_v33 }
  0xc4   : > { %2897 = vrot.lane.b32.xlu1 %v3507_v47, %s3245_s6  ;;  %v2738_v41 = vpop.permute.xlu2 %2737 }
  0xc5   : > { %v2740_v62 = vunpack.i.h.bf16 %v2738_v41  ;;  %v2739_v55 = vunpack.i.l.bf16 %v2738_v41  ;;  %v2640_v41 = vunpack.i.h.bf16 %v3778_v33 }
  0xc6   : > { %v2688_v42 = vpop.permute.xlu1 %2687  ;;  %2907 = vrot.lane.b32.xlu0 %v2906_v29, %s3245_s6 }
  0xc7   : > { %v2690_v52 = vunpack.i.h.bf16 %v2688_v42  ;;  %v2689_v16 = vunpack.i.l.bf16 %v2688_v42  ;;  %v3865_v47 = vsel %vm1793_vm3, %v1788_v4, %v2740_v62  ;;  %v3868_v45 = vsel %vm1793_vm3, %v1787_v27, %v2739_v55 }
  0xc8   : > { %v2698_v31 = vpop.permute.xlu0 %2697 }
  0xc9   : > { %v1800_v5 = vsel %vm1793_vm3, %v1767_v24, %v2689_v16  ;;  %v1801_v43 = vsel %vm1793_vm3, %v1768_v39, %v2690_v52  ;;  %v2700_v44 = vunpack.i.h.bf16 %v2698_v31  ;;  %v2699_v8 = vunpack.i.l.bf16 %v2698_v31  ;;  %v4750_v24 = vld [vmem:[#allocation4_spill] sm:$0xff] }
  0xca   : > { %2917 = vrot.lane.b32.xlu2 %v3558_v63, %s3246_s7  ;;  %v2655_v31 = vunpack.i.h.bf16 %v3794_v21 }
  0xcb   : > { %v3885_v48 = vsel %vm1793_vm3, %v3699_v19, %v2700_v44  ;;  %v3889_v56 = vsel %vm1793_vm3, %v3702_v28, %v2699_v8  ;;  %v1773_v19 = vsel %vm373_vm0, %v3666_v36, %v2624_v18  ;;  %v4751_v44 = vld [vmem:[#allocation3_spill] sm:$0xff] }
  0xcc   : > { %2912 = vrot.lane.b32.xlu1 %v3535_v57, %s3246_s7  ;;  %v2753_v15 = vpop.permute.xlu2 %2752 }
  0xcd   : > { %v2755_v63 = vunpack.i.h.bf16 %v2753_v15  ;;  %v2754_v46 = vunpack.i.l.bf16 %v2753_v15 }
  0xce   : > { %v2703_v40 = vpop.permute.xlu1 %2702  ;;  %2922 = vrot.lane.b32.xlu0 %v3566_v6, %s3246_s7 }
  0xcf   : > { %v2705_v20 = vunpack.i.h.bf16 %v2703_v40  ;;  %v2704_v50 = vunpack.i.l.bf16 %v2703_v40  ;;  %v3892_v26 = vsel %vm1826_vm4, %v1795_v58, %v2755_v63  ;;  %v3895_v57 = vsel %vm1826_vm4, %v1794_v60, %v2754_v46 }
  0xd0   : > { %v2713_v29 = vpop.permute.xlu0 %2712 }
  0xd1   : > { %v1806_v28 = vsel %vm1793_vm3, %v1773_v19, %v2704_v50  ;;  %v1807_v11 = vsel %vm1793_vm3, %v1774_v30, %v2705_v20  ;;  %v2715_v58 = vunpack.i.h.bf16 %v2713_v29  ;;  %v2714_v60 = vunpack.i.l.bf16 %v2713_v29  ;;  %v4752_v20 = vld [vmem:[#allocation17_spill] sm:$0xff] }
  0xd2   : > { %2932 = vrot.lane.b32.xlu2 %v3582_v13, %s3246_s7  ;;  %v1786_v50 = vsel %vm373_vm0, %v4752_v20, %v2655_v31 }
  0xd3   : > { %v3913_v6 = vsel %vm1793_vm3, %v3723_v14, %v2715_v58  ;;  %v3917_v62 = vsel %vm1793_vm3, %v3726_v59, %v2714_v60  ;;  %v1779_v14 = vsel %vm373_vm0, %v3690_v10, %v2639_v38 }
  0xd4   : > { %2927 = vrot.lane.b32.xlu1 %v3568_v7, %s3246_s7  ;;  %v2768_v36 = vpop.permute.xlu2 %2767  ;;  %v1780_v7 = vsel %vm373_vm0, %v3692_v1, %v2640_v41  ;;  %v2654_v1 = vunpack.i.l.bf16 %v3794_v21  ;;  %v4756_v41 = vld [vmem:[#allocation5_spill] sm:$0xff] }
  0xd5   : > { %v2770_v55 = vunpack.i.h.bf16 %v2768_v36  ;;  %v2769_v13 = vunpack.i.l.bf16 %v2768_v36 }
  0xd6   : > { %v2718_v4 = vpop.permute.xlu1 %2717  ;;  %2937 = vrot.lane.b32.xlu0 %v3588_v17, %s3246_s7 }
  0xd7   : > { %v2720_v27 = vunpack.i.h.bf16 %v2718_v4  ;;  %v2719_v42 = vunpack.i.l.bf16 %v2718_v4  ;;  %v3920_v52 = vsel %vm1826_vm4, %v1801_v43, %v2770_v55  ;;  %v3923_v33 = vsel %vm1826_vm4, %v1800_v5, %v2769_v13 }
  0xd8   : > { %v2728_v39 = vpop.permute.xlu0 %2727 }
  0xd9   : > { %v1812_v59 = vsel %vm1793_vm3, %v1779_v14, %v2719_v42  ;;  %v1813_v16 = vsel %vm1793_vm3, %v1780_v7, %v2720_v27  ;;  %v2730_v43 = vunpack.i.h.bf16 %v2728_v39  ;;  %v2729_v5 = vunpack.i.l.bf16 %v2728_v39 }
  0xda   : > { %2947 = vrot.lane.b32.xlu2 %v4750_v24, %s3246_s7  ;;  %v4757_v24 = vld [vmem:[#allocation9_spill] sm:$0xff] }
  0xdb   : > { %v3941_v17 = vsel %vm1793_vm3, %v3740_v53, %v2730_v43  ;;  %v3945_v8 = vsel %vm1793_vm3, %v3743_v12, %v2729_v5  ;;  %v4753_v53 = vld [vmem:[#allocation16_spill] sm:$0xff]  ;;  %v4754_v12 = vld [vmem:[#allocation6_spill] sm:$0xff] }
  0xdc   : > { %2942 = vrot.lane.b32.xlu1 %v4751_v44, %s3246_s7  ;;  %v2783_v10 = vpop.permute.xlu2 %2782  ;;  %v1785_v30 = vsel %vm373_vm0, %v4753_v53, %v2654_v1  ;;  %v4758_v5 = vld [vmem:[#allocation10_spill] sm:$0xff] }
  0xdd   : > { %v2785_v3 = vunpack.i.h.bf16 %v2783_v10  ;;  %v2784_v18 = vunpack.i.l.bf16 %v2783_v10 }
  0xde   : > { %v2733_v15 = vpop.permute.xlu1 %2732  ;;  %2952 = vrot.lane.b32.xlu0 %v4754_v12, %s3246_s7  ;;  %v673_v12 = vld [vmem:[#allocation2 + $0x31] sm:$0xff] }
  0xdf   : > { %v2735_v63 = vunpack.i.h.bf16 %v2733_v15  ;;  %v2734_v46 = vunpack.i.l.bf16 %v2733_v15  ;;  %v3948_v40 = vsel %vm1826_vm4, %v1806_v28, %v2784_v18  ;;  %v3951_v21 = vsel %vm1826_vm4, %v1807_v11, %v2785_v3  ;;  %v4755_v28 = vld [vmem:[#allocation7_spill] sm:$0xff]  ;;  %v638_v3 = vld [vmem:[#allocation2 + $0x182] sm:$0xff] }
  0xe0   : > { %v2743_v58 = vpop.permute.xlu0 %2742  ;;  %v639_v18 = vld [vmem:[#allocation2 + $0x18a] sm:$0xff] }
  0xe1   : > { %v1818_v19 = vsel %vm1793_vm3, %v1785_v30, %v2734_v46  ;;  %v1819_v29 = vsel %vm1793_vm3, %v1786_v50, %v2735_v63  ;;  %v2745_v60 = vunpack.i.h.bf16 %v2743_v58  ;;  %v2744_v11 = vunpack.i.l.bf16 %v2743_v58  ;;  %v674_v58 = vld [vmem:[#allocation2 + $0x39] sm:$0xff] }
  0xe2   : > { %2962 = vrot.lane.b32.xlu2 %v4755_v28, %s3246_s7  ;;  %v4005_v53 = vpack.i.bf16 %v639_v18, %v638_v3 }
  0xe3   : > { %v3967_v36 = vsel %vm1793_vm3, %v3753_v49, %v2745_v60  ;;  %v3971_v55 = vsel %vm1793_vm3, %v3756_v32, %v2744_v11  ;;  %v2996_v11 = vpack.i.bf16 %v674_v58, %v673_v12 }
  0xe4   : > { %2957 = vrot.lane.b32.xlu1 %v4756_v41, %s3246_s7  ;;  %v2798_v38 = vpop.permute.xlu2 %2797 }
  0xe5   : > { %v2800_v13 = vunpack.i.h.bf16 %v2798_v38  ;;  %v2799_v4 = vunpack.i.l.bf16 %v2798_v38 }
  0xe6   : > { %v2748_v27 = vpop.permute.xlu1 %2747  ;;  %2967 = vrot.lane.b32.xlu0 %v4757_v24, %s3246_s7 }
  0xe7   : > { %v2750_v42 = vunpack.i.h.bf16 %v2748_v27  ;;  %v2749_v7 = vunpack.i.l.bf16 %v2748_v27  ;;  %v3974_v14 = vsel %vm1826_vm4, %v1812_v59, %v2799_v4  ;;  %v3977_v39 = vsel %vm1826_vm4, %v1813_v16, %v2800_v13  ;;  %v4759_v59 = vld [vmem:[#allocation8_spill] sm:$0xff] }
  0xe8   : > { %v2758_v43 = vpop.permute.xlu0 %2757  ;;  %v705_v4 = vld [vmem:[#allocation2 + $0x32] sm:$0xff]  ;;  %v706_v27 = vld [vmem:[#allocation2 + $0x3a] sm:$0xff] }
  0xe9   : > { %v1824_v49 = vsel %vm1793_vm3, %v3820_v25, %v2749_v7  ;;  %v1825_v32 = vsel %vm1793_vm3, %v3816_v23, %v2750_v42  ;;  %v2760_v31 = vunpack.i.h.bf16 %v2758_v43  ;;  %v2759_v1 = vunpack.i.l.bf16 %v2758_v43 }
  0xea   : > { %2977 = vrot.lane.b32.xlu2 %v4758_v5, %s3246_s7 }
  0xeb   : > { %v3991_v44 = vsel %vm1826_vm4, %v3771_v0, %v2759_v1  ;;  %v3995_v25 = vsel %vm1826_vm4, %v3774_v9, %v2760_v31  ;;  %v4760_v0 = vld [vmem:[#allocation11_spill] sm:$0xff] }
  0xec   : > { %2972 = vrot.lane.b32.xlu1 %v4759_v59, %s3246_s7  ;;  %v2813_v16 = vpop.permute.xlu2 %2812  ;;  %v4762_v59 = vld [vmem:[#allocation13_spill] sm:$0xff] }
  0xed   : > { %v2815_v10 = vunpack.i.h.bf16 %v2813_v16  ;;  %v2814_v23 = vunpack.i.l.bf16 %v2813_v16 }
  0xee   : > { %v2763_v15 = vpop.permute.xlu1 %2762  ;;  %2982 = vrot.lane.b32.xlu0 %v4760_v0, %s3246_s7 }
  0xef   : > { %v2765_v63 = vunpack.i.h.bf16 %v2763_v15  ;;  %v2764_v46 = vunpack.i.l.bf16 %v2763_v15  ;;  %v3998_v20 = vsel %vm1826_vm4, %v1818_v19, %v2814_v23  ;;  %v4001_v50 = vsel %vm1826_vm4, %v1819_v29, %v2815_v10  ;;  %v4761_v19 = vld [vmem:[#allocation12_spill] sm:$0xff]  ;;  %v675_v15 = vld [vmem:[#allocation2 + $0x49] sm:$0xff] }
  0xf0   : > { %v2773_v28 = vpop.permute.xlu0 %2772  ;;  %v681_v10 = vld [vmem:[#allocation2 + $0x91] sm:$0xff]  ;;  %v682_v23 = vld [vmem:[#allocation2 + $0x99] sm:$0xff] }
  0xf1   : > { %v1831_v9 = vsel %vm1826_vm4, %v3858_v51, %v2764_v46  ;;  %v1832_v30 = vsel %vm1826_vm4, %v3855_v54, %v2765_v63  ;;  %v2775_v29 = vunpack.i.h.bf16 %v2773_v28  ;;  %v2774_v60 = vunpack.i.l.bf16 %v2773_v28  ;;  %v676_v63 = vld [vmem:[#allocation2 + $0x51] sm:$0xff] }
  0xf2   : > { %2992 = vrot.lane.b32.xlu2 %v4761_v19, %s3247_s8  ;;  %v3021_v0 = vpack.i.bf16 %v682_v23, %v681_v10  ;;  %v689_v23 = vld [vmem:[#allocation2 + $0xf1] sm:$0xff] }
  0xf3   : > { %v4017_v51 = vsel %vm1826_vm4, %v3786_v35, %v2775_v29  ;;  %v4021_v54 = vsel %vm1826_vm4, %v3790_v34, %v2774_v60  ;;  %v3001_v35 = vpack.i.bf16 %v706_v27, %v705_v4  ;;  %v3016_v29 = vpack.i.bf16 %v676_v63, %v675_v15  ;;  %v645_v63 = vld [vmem:[#allocation2 + $0x60] sm:$0xff] }
  0xf4   : > { %2987 = vrot.lane.b32.xlu1 %v4005_v53, %s3246_s7  ;;  %v2828_v41 = vpop.permute.xlu2 %2827 }
  0xf5   : > { %v2830_v38 = vunpack.i.h.bf16 %v2828_v41  ;;  %v2829_v13 = vunpack.i.l.bf16 %v2828_v41  ;;  %v708_v41 = vld [vmem:[#allocation2 + $0x52] sm:$0xff] }
  0xf6   : > { %v2778_v42 = vpop.permute.xlu1 %2777  ;;  %2997 = vrot.lane.b32.xlu0 %v2996_v11, %s3248_s9  ;;  %v707_v11 = vld [vmem:[#allocation2 + $0x4a] sm:$0xff] }
  0xf7   : > { %v2780_v7 = vunpack.i.h.bf16 %v2778_v42  ;;  %v2779_v24 = vunpack.i.l.bf16 %v2778_v42  ;;  %v4024_v43 = vsel %vm1826_vm4, %v1824_v49, %v2829_v13  ;;  %v4027_v5 = vsel %vm1826_vm4, %v1825_v32, %v2830_v38 }
  0xf8   : > { %v2788_v1 = vpop.permute.xlu0 %2787 }
  0xf9   : > { %v1837_v34 = vsel %vm1826_vm4, %v3889_v56, %v2779_v24  ;;  %v1838_v31 = vsel %vm1826_vm4, %v3885_v48, %v2780_v7  ;;  %v2790_v16 = vunpack.i.h.bf16 %v2788_v1  ;;  %v2789_v49 = vunpack.i.l.bf16 %v2788_v1  ;;  %v713_v7 = vld [vmem:[#allocation2 + $0x92] sm:$0xff]  ;;  %v714_v24 = vld [vmem:[#allocation2 + $0x9a] sm:$0xff] }
  0xfa   : > { %3007 = vrot.lane.b32.xlu2 %v4762_v59, %s3247_s8 }
  0xfb   : > { %v4039_v3 = vsel %vm1826_vm4, %v3805_v61, %v2790_v16  ;;  %v4043_v48 = vsel %vm1826_vm4, %v3808_v22, %v2789_v49  ;;  %v4763_v61 = vld [vmem:[#allocation14_spill] sm:$0xff] }
  0xfc   : > { %3002 = vrot.lane.b32.xlu1 %v3001_v35, %s3249_s10  ;;  %v2843_v32 = vpop.permute.xlu2 %2842 }
  0xfd   : > { %v2845_v56 = vunpack.i.h.bf16 %v2843_v32  ;;  %v2844_v18 = vunpack.i.l.bf16 %v2843_v32  ;;  %v690_v32 = vld [vmem:[#allocation2 + $0xf9] sm:$0xff] }
  0xfe   : > { %v2793_v46 = vpop.permute.xlu1 %2792  ;;  %3012 = vrot.lane.b32.xlu0 %v4763_v61, %s3247_s8  ;;  %v721_v61 = vld [vmem:[#allocation2 + $0xf2] sm:$0xff] }
  0xff   : > { %v2795_v12 = vunpack.i.h.bf16 %v2793_v46  ;;  %v2794_v58 = vunpack.i.l.bf16 %v2793_v46  ;;  %v4046_v28 = vsel %vm1859_vm5, %v1831_v9, %v2844_v18  ;;  %v4049_v19 = vsel %vm1859_vm5, %v1832_v30, %v2845_v56  ;;  %v4764_v18 = vld [vmem:[#allocation15_spill] sm:$0xff] }
 0x100   : > { %v2803_v38 = vpop.permute.xlu0 %2802  ;;  %v3026_v30 = vpack.i.bf16 %v708_v41, %v707_v11  ;;  %v3041_v46 = vpack.i.bf16 %v690_v32, %v689_v23  ;;  %v677_v32 = vld [vmem:[#allocation2 + $0x61] sm:$0xff] }
 0x101   : > { %v1843_v22 = vsel %vm1826_vm4, %v3917_v62, %v2794_v58  ;;  %v1844_v60 = vsel %vm1826_vm4, %v3913_v6, %v2795_v12  ;;  %v2805_v9 = vunpack.i.h.bf16 %v2803_v38  ;;  %v2804_v13 = vunpack.i.l.bf16 %v2803_v38 }
 0x102   : > { %3022 = vrot.lane.b32.xlu2 %v3021_v0, %s3248_s9 }
 0x103   : > { %v4061_v27 = vsel %vm1826_vm4, %v3832_v2, %v2805_v9  ;;  %v4065_v62 = vsel %vm1826_vm4, %v3835_v37, %v2804_v13  ;;  %v3031_v2 = vpack.i.bf16 %v714_v24, %v713_v7 }
 0x104   : > { %3017 = vrot.lane.b32.xlu1 %v3016_v29, %s3248_s9  ;;  %v2858_v4 = vpop.permute.xlu2 %2857  ;;  %v722_v29 = vld [vmem:[#allocation2 + $0xfa] sm:$0xff] }
 0x105   : > { %v2860_v6 = vunpack.i.h.bf16 %v2858_v4  ;;  %v2859_v42 = vunpack.i.l.bf16 %v2858_v4 }
 0x106   : > { %v2808_v35 = vpop.permute.xlu1 %2807  ;;  %3027 = vrot.lane.b32.xlu0 %v3026_v30, %s3249_s10 }
 0x107   : > { %v2810_v1 = vunpack.i.h.bf16 %v2808_v35  ;;  %v2809_v59 = vunpack.i.l.bf16 %v2808_v35  ;;  %v4068_v16 = vsel %vm1859_vm5, %v1837_v34, %v2859_v42  ;;  %v4071_v49 = vsel %vm1859_vm5, %v1838_v31, %v2860_v6  ;;  %v646_v31 = vld [vmem:[#allocation2 + $0x68] sm:$0xff]  ;;  %v652_v42 = vld [vmem:[#allocation2 + $0xb0] sm:$0xff] }
 0x108   : > { %v2818_v56 = vpop.permute.xlu0 %2817  ;;  %v3051_v41 = vpack.i.bf16 %v646_v31, %v645_v63  ;;  %v651_v6 = vld [vmem:[#allocation2 + $0xa8] sm:$0xff] }
 0x109   : > { %v1849_v37 = vsel %vm1826_vm4, %v3945_v8, %v2809_v59  ;;  %v1850_v10 = vsel %vm1826_vm4, %v3941_v17, %v2810_v1  ;;  %v2820_v34 = vunpack.i.h.bf16 %v2818_v56  ;;  %v2819_v15 = vunpack.i.l.bf16 %v2818_v56  ;;  %v683_v35 = vld [vmem:[#allocation2 + $0xa9] sm:$0xff]  ;;  %v684_v1 = vld [vmem:[#allocation2 + $0xb1] sm:$0xff] }
 0x10a   : > { %3037 = vrot.lane.b32.xlu2 %v4764_v18, %s3247_s8  ;;  %v678_v56 = vld [vmem:[#allocation2 + $0x69] sm:$0xff] }
 0x10b   : > { %v4083_v8 = vsel %vm1826_vm4, %v3865_v47, %v2820_v34  ;;  %v4087_v17 = vsel %vm1826_vm4, %v3868_v45, %v2819_v15  ;;  %v3046_v47 = vpack.i.bf16 %v722_v29, %v721_v61  ;;  %v3066_v34 = vpack.i.bf16 %v684_v1, %v683_v35 }
 0x10c   : > { %3032 = vrot.lane.b32.xlu1 %v3031_v2, %s3249_s10  ;;  %v2873_v0 = vpop.permute.xlu2 %2872 }
 0x10d   : > { %v2875_v12 = vunpack.i.h.bf16 %v2873_v0  ;;  %v2874_v58 = vunpack.i.l.bf16 %v2873_v0 }
 0x10e   : > { %v2823_v11 = vpop.permute.xlu1 %2822  ;;  %3042 = vrot.lane.b32.xlu0 %v3041_v46, %s3248_s9 }
 0x10f   : > { %v2825_v38 = vunpack.i.h.bf16 %v2823_v11  ;;  %v2824_v9 = vunpack.i.l.bf16 %v2823_v11  ;;  %v4090_v13 = vsel %vm1859_vm5, %v1843_v22, %v2874_v58  ;;  %v4093_v30 = vsel %vm1859_vm5, %v1844_v60, %v2875_v12  ;;  %v709_v12 = vld [vmem:[#allocation2 + $0x62] sm:$0xff]  ;;  %v710_v58 = vld [vmem:[#allocation2 + $0x6a] sm:$0xff] }
 0x110   : > { %v2833_v7 = vpop.permute.xlu0 %2832  ;;  %v3056_v60 = vpack.i.bf16 %v652_v42, %v651_v6  ;;  %v660_v11 = vld [vmem:[#allocation2 + $0x110] sm:$0xff] }
 0x111   : > { %v1855_v45 = vsel %vm1826_vm4, %v3971_v55, %v2824_v9  ;;  %v1856_v4 = vsel %vm1826_vm4, %v3967_v36, %v2825_v38  ;;  %v2835_v24 = vunpack.i.h.bf16 %v2833_v7  ;;  %v2834_v22 = vunpack.i.l.bf16 %v2833_v7  ;;  %v715_v6 = vld [vmem:[#allocation2 + $0xaa] sm:$0xff]  ;;  %v716_v42 = vld [vmem:[#allocation2 + $0xb2] sm:$0xff] }
 0x112   : > { %3052 = vrot.lane.b32.xlu2 %v3051_v41, %s3247_s8  ;;  %v3071_v41 = vpack.i.bf16 %v710_v58, %v709_v12 }
 0x113   : > { %v4104_v2 = vsel %vm1859_vm5, %v3892_v26, %v2835_v24  ;;  %v4108_v36 = vsel %vm1859_vm5, %v3895_v57, %v2834_v22  ;;  %v3061_v26 = vpack.i.bf16 %v678_v56, %v677_v32 }
 0x114   : > { %3047 = vrot.lane.b32.xlu1 %v3046_v47, %s3249_s10  ;;  %v2888_v59 = vpop.permute.xlu2 %2887 }
 0x115   : > { %v2890_v55 = vunpack.i.h.bf16 %v2888_v59  ;;  %v2889_v23 = vunpack.i.l.bf16 %v2888_v59 }
 0x116   : > { %v2838_v18 = vpop.permute.xlu1 %2837  ;;  %3057 = vrot.lane.b32.xlu0 %v3056_v60, %s3247_s8 }
 0x117   : > { %v2840_v15 = vunpack.i.h.bf16 %v2838_v18  ;;  %v2839_v63 = vunpack.i.l.bf16 %v2838_v18  ;;  %v4111_v31 = vsel %vm1859_vm5, %v1849_v37, %v2889_v23  ;;  %v4114_v46 = vsel %vm1859_vm5, %v1850_v10, %v2890_v55  ;;  %v659_v10 = vld [vmem:[#allocation2 + $0x108] sm:$0xff]  ;;  %v665_v55 = vld [vmem:[#allocation2 + $0x150] sm:$0xff]  ;;  %v666_v23 = vld [vmem:[#allocation2 + $0x158] sm:$0xff] }
 0x118   : > { %v2848_v61 = vpop.permute.xlu0 %2847  ;;  %v3081_v24 = vpack.i.bf16 %v660_v11, %v659_v10  ;;  %v698_v18 = vld [vmem:[#allocation2 + $0x159] sm:$0xff]  ;;  %v723_v11 = vld [vmem:[#allocation2 + $0x10a] sm:$0xff] }
 0x119   : > { %v4119_v57 = vsel %vm1859_vm5, %v3991_v44, %v2839_v63  ;;  %v4123_v0 = vsel %vm1859_vm5, %v3995_v25, %v2840_v15  ;;  %v2850_v37 = vunpack.i.h.bf16 %v2848_v61  ;;  %v2849_v29 = vunpack.i.l.bf16 %v2848_v61  ;;  %v691_v63 = vld [vmem:[#allocation2 + $0x109] sm:$0xff] }
 0x11a   : > { %3067 = vrot.lane.b32.xlu2 %v3066_v34, %s3248_s9  ;;  %v3086_v34 = vpack.i.bf16 %v666_v23, %v665_v55 }
 0x11b   : > { %v4129_v44 = vsel %vm1859_vm5, %v3920_v52, %v2850_v37  ;;  %v4133_v25 = vsel %vm1859_vm5, %v3923_v33, %v2849_v29  ;;  %v3076_v52 = vpack.i.bf16 %v716_v42, %v715_v6  ;;  %v648_v6 = vld [vmem:[#allocation2 + $0x80] sm:$0xff] }
 0x11c   : > { %3062 = vrot.lane.b32.xlu1 %v3061_v26, %s3248_s9  ;;  %v2903_v38 = vpop.permute.xlu2 %2902  ;;  %v692_v26 = vld [vmem:[#allocation2 + $0x111] sm:$0xff] }
 0x11d   : > { %v2905_v9 = vunpack.i.h.bf16 %v2903_v38  ;;  %v2904_v47 = vunpack.i.l.bf16 %v2903_v38  ;;  %v3091_v29 = vpack.i.bf16 %v692_v26, %v691_v63  ;;  %v685_v63 = vld [vmem:[#allocation2 + $0xc1] sm:$0xff]  ;;  %v686_v26 = vld [vmem:[#allocation2 + $0xc9] sm:$0xff] }
 0x11e   : > { %v2853_v7 = vpop.permute.xlu1 %2852  ;;  %3072 = vrot.lane.b32.xlu0 %v3071_v41, %s3249_s10  ;;  %v724_v41 = vld [vmem:[#allocation2 + $0x112] sm:$0xff] }
 0x11f   : > { %v2855_v22 = vunpack.i.h.bf16 %v2853_v7  ;;  %v2854_v35 = vunpack.i.l.bf16 %v2853_v7  ;;  %v4136_v1 = vsel %vm1859_vm5, %v1855_v45, %v2904_v47  ;;  %v4139_v60 = vsel %vm1859_vm5, %v1856_v4, %v2905_v9  ;;  %v697_v4 = vld [vmem:[#allocation2 + $0x151] sm:$0xff] }
 0x120   : > { %v2863_v32 = vpop.permute.xlu0 %2862  ;;  %v3096_v58 = vpack.i.bf16 %v698_v18, %v697_v4  ;;  %v647_v47 = vld [vmem:[#allocation2 + $0x78] sm:$0xff]  ;;  %v3101_v42 = vpack.i.bf16 %v724_v41, %v723_v11  ;;  %v654_v4 = vld [vmem:[#allocation2 + $0xc8] sm:$0xff] }
 0x121   : > { %v4144_v33 = vsel %vm1859_vm5, %v4021_v54, %v2854_v35  ;;  %v4148_v59 = vsel %vm1859_vm5, %v4017_v51, %v2855_v22  ;;  %v2865_v45 = vunpack.i.h.bf16 %v2863_v32  ;;  %v2864_v56 = vunpack.i.l.bf16 %v2863_v32  ;;  %v730_v22 = vld [vmem:[#allocation2 + $0x15a] sm:$0xff] }
 0x122   : > { %3082 = vrot.lane.b32.xlu2 %v3081_v24, %s3247_s8  ;;  %v729_v24 = vld [vmem:[#allocation2 + $0x152] sm:$0xff]  ;;  %v680_v11 = vld [vmem:[#allocation2 + $0x81] sm:$0xff] }
 0x123   : > { %v4156_v54 = vsel %vm1859_vm5, %v3948_v40, %v2864_v56  ;;  %v4160_v51 = vsel %vm1859_vm5, %v3951_v21, %v2865_v45  ;;  %v3106_v32 = vpack.i.bf16 %v730_v22, %v729_v24  ;;  %v653_v56 = vld [vmem:[#allocation2 + $0xc0] sm:$0xff] }
 0x124   : > { %3077 = vrot.lane.b32.xlu1 %v3076_v52, %s3249_s10  ;;  %v4152_v15 = vpop.permute.xlu2 %2917  ;;  %v3111_v52 = vpack.i.bf16 %v648_v6, %v647_v47  ;;  %v711_v24 = vld [vmem:[#allocation2 + $0x7a] sm:$0xff]  ;;  %v712_v22 = vld [vmem:[#allocation2 + $0x82] sm:$0xff] }
 0x126   : > { %v2868_v12 = vpop.permute.xlu1 %2867  ;;  %3087 = vrot.lane.b32.xlu0 %v3086_v34, %s3247_s8 }
 0x127   : > { %v2870_v61 = vunpack.i.h.bf16 %v2868_v12  ;;  %v2869_v37 = vunpack.i.l.bf16 %v2868_v12  ;;  %v3116_v12 = vpack.i.bf16 %v654_v4, %v653_v56 }
 0x128   : > { %v2878_v38 = vpop.permute.xlu0 %2877 }
 0x129   : > { %v1874_v10 = vsel %vm1859_vm5, %v4043_v48, %v2869_v37  ;;  %v1875_v40 = vsel %vm1859_vm5, %v4039_v3, %v2870_v61  ;;  %v2880_v21 = vunpack.i.h.bf16 %v2878_v38  ;;  %v2879_v9 = vunpack.i.l.bf16 %v2878_v38 }
 0x12a   : > { %3097 = vrot.lane.b32.xlu2 %v3096_v58, %s3248_s9  ;;  %v3126_v38 = vpack.i.bf16 %v686_v26, %v685_v63 }
 0x12b   : > { %v4173_v48 = vsel %vm1859_vm5, %v3974_v14, %v2879_v9  ;;  %v4177_v3 = vsel %vm1859_vm5, %v3977_v39, %v2880_v21 }
 0x12c   : > { %3092 = vrot.lane.b32.xlu1 %v3091_v29, %s3248_s9  ;;  %v4169_v7 = vpop.permute.xlu2 %2932  ;;  %v679_v29 = vld [vmem:[#allocation2 + $0x79] sm:$0xff] }
 0x12e   : > { %v2883_v35 = vpop.permute.xlu1 %2882  ;;  %3102 = vrot.lane.b32.xlu0 %v3101_v42, %s3249_s10 }
 0x12f   : > { %v2885_v55 = vunpack.i.h.bf16 %v2883_v35  ;;  %v2884_v23 = vunpack.i.l.bf16 %v2883_v35 }
 0x130   : > { %v2893_v18 = vpop.permute.xlu0 %2892 }
 0x131   : > { %v1880_v45 = vsel %vm1859_vm5, %v4065_v62, %v2884_v23  ;;  %v1881_v14 = vsel %vm1859_vm5, %v4061_v27, %v2885_v55  ;;  %v2895_v39 = vunpack.i.h.bf16 %v2893_v18  ;;  %v2894_v34 = vunpack.i.l.bf16 %v2893_v18  ;;  %v661_v55 = vld [vmem:[#allocation2 + $0x120] sm:$0xff]  ;;  %v662_v23 = vld [vmem:[#allocation2 + $0x128] sm:$0xff] }
 0x132   : > { %3112 = vrot.lane.b32.xlu2 %v3111_v52, %s3247_s8  ;;  %v717_v18 = vld [vmem:[#allocation2 + $0xc2] sm:$0xff]  ;;  %v3141_v63 = vpack.i.bf16 %v662_v23, %v661_v55 }
 0x133   : > { %v4188_v61 = vsel %vm1859_vm5, %v3998_v20, %v2894_v34  ;;  %v4192_v27 = vsel %vm1859_vm5, %v4001_v50, %v2895_v39  ;;  %v3121_v20 = vpack.i.bf16 %v680_v11, %v679_v29  ;;  %v718_v39 = vld [vmem:[#allocation2 + $0xca] sm:$0xff] }
 0x134   : > { %3107 = vrot.lane.b32.xlu1 %v3106_v32, %s3249_s10  ;;  %v2948_v58 = vpop.permute.xlu2 %2947  ;;  %v694_v55 = vld [vmem:[#allocation2 + $0x129] sm:$0xff] }
 0x135   : > { %v2950_v62 = vunpack.i.h.bf16 %v2948_v58  ;;  %v2949_v37 = vunpack.i.l.bf16 %v2948_v58 }
 0x136   : > { %v2898_v41 = vpop.permute.xlu1 %2897  ;;  %3117 = vrot.lane.b32.xlu0 %v3116_v12, %s3247_s8 }
 0x137   : > { %v2900_v21 = vunpack.i.h.bf16 %v2898_v41  ;;  %v2899_v9 = vunpack.i.l.bf16 %v2898_v41  ;;  %v4195_v47 = vsel %vm1892_vm6, %v1874_v10, %v2949_v37  ;;  %v4198_v6 = vsel %vm1892_vm6, %v1875_v40, %v2950_v62  ;;  %v667_v62 = vld [vmem:[#allocation2 + $0x168] sm:$0xff]  ;;  %v668_v37 = vld [vmem:[#allocation2 + $0x170] sm:$0xff] }
 0x138   : > { %v2908_v35 = vpop.permute.xlu0 %2907  ;;  %v3131_v40 = vpack.i.bf16 %v712_v22, %v711_v24 }
 0x139   : > { %v1886_v50 = vsel %vm1859_vm5, %v4087_v17, %v2899_v9  ;;  %v1887_v42 = vsel %vm1859_vm5, %v4083_v8, %v2900_v21  ;;  %v2910_v52 = vunpack.i.h.bf16 %v2908_v35  ;;  %v2909_v10 = vunpack.i.l.bf16 %v2908_v35  ;;  %v700_v21 = vld [vmem:[#allocation2 + $0x171] sm:$0xff] }
 0x13a   : > { %3127 = vrot.lane.b32.xlu2 %v3126_v38, %s3248_s9  ;;  %v699_v38 = vld [vmem:[#allocation2 + $0x169] sm:$0xff] }
 0x13b   : > { %v4209_v56 = vsel %vm1859_vm5, %v4024_v43, %v2909_v10  ;;  %v4213_v8 = vsel %vm1859_vm5, %v4027_v5, %v2910_v52  ;;  %v2048_v43 = vld [vmem:[%s4717_s3 + $0x20] sm:$0xf]  ;;  %v3136_v5 = vpack.i.bf16 %v718_v39, %v717_v18 }
 0x13c   : > { %3122 = vrot.lane.b32.xlu1 %v3121_v20, %s3248_s9  ;;  %v2963_v32 = vpop.permute.xlu2 %2962  ;;  %v2066_v58 = vunpack.c.l.b16 %v2048_v43  ;;  %v693_v10 = vld [vmem:[#allocation2 + $0x121] sm:$0xff]  ;;  %v726_v43 = vld [vmem:[#allocation2 + $0x12a] sm:$0xff] }
 0x13d   : > { %v2965_v17 = vunpack.i.h.bf16 %v2963_v32  ;;  %v2964_v4 = vunpack.i.l.bf16 %v2963_v32  ;;  %v3151_v18 = vpack.i.bf16 %v694_v55, %v693_v10  ;;  %v687_v10 = vld [vmem:[#allocation2 + $0xd9] sm:$0xff]  ;;  %v688_v55 = vld [vmem:[#allocation2 + $0xe1] sm:$0xff] }
 0x13e   : > { %v4215_v34 = vpop.permute.xlu1 %2912  ;;  %3132 = vrot.lane.b32.xlu0 %v3131_v40, %s3249_s10  ;;  %v2071_v11 = vpack.c.b16 %v2066_v58, %v2066_v58  ;;  %v3156_v40 = vpack.i.bf16 %v700_v21, %v699_v38  ;;  %v732_v38 = vld [vmem:[#allocation2 + $0x172] sm:$0xff] }
 0x13f   : > { %v4218_v26 = vsel %vm1892_vm6, %v1880_v45, %v2964_v4  ;;  %v4221_v12 = vsel %vm1892_vm6, %v1881_v14, %v2965_v17  ;;  %v3146_v14 = vpack.i.bf16 %v668_v37, %v667_v62  ;;  %v655_v62 = vld [vmem:[#allocation2 + $0xd8] sm:$0xff]  ;;  %v656_v37 = vld [vmem:[#allocation2 + $0xe0] sm:$0xff] }
 0x140   : > { %v2923_v29 = vpop.permute.xlu0 %2922  ;;  %v2127_v20 = vsel %vm2125_vm7, %v2071_v11, 0 }
 0x141   : > { %v2925_v41 = vunpack.i.h.bf16 %v2923_v29  ;;  %v2924_v45 = vunpack.i.l.bf16 %v2923_v29  ;;  %2132 = vmatpush.bf16.msra.mxu0 %v2127_v20  ;;  %2559 = vmatpush.bf16.msra.mxu1 %v2127_v20 }
 0x142   : > { %3142 = vrot.lane.b32.xlu2 %v3141_v63, %s3247_s8  ;;  %2560 = vmatpush.bf16.msra.mxu2 %v2127_v20 }
 0x143   : > { %v4231_v24 = vsel %vm1892_vm6, %v4046_v28, %v2924_v45  ;;  %v4235_v22 = vsel %vm1892_vm6, %v4049_v19, %v2925_v41  ;;  %2561 = vmatpush.bf16.msra.mxu3 %v2127_v20  ;;  %v2558_v19 = vld [vmem:[%s4717_s3 + $0x18] sm:$0xff]  ;;  %v731_v45 = vld [vmem:[#allocation2 + $0x16a] sm:$0xff] }
 0x144   : > { %3137 = vrot.lane.b32.xlu1 %v3136_v5, %s3249_s10  ;;  %v2978_v9 = vpop.permute.xlu2 %2977 }
 0x145   : > { %v2980_v35 = vunpack.i.h.bf16 %v2978_v9  ;;  %v2979_v52 = vunpack.i.l.bf16 %v2978_v9  ;;  %2133 = vmatpush.bf16.msra.mxu0 %v2558_v19  ;;  %2562 = vmatpush.bf16.msra.mxu1 %v2558_v19 }
 0x146   : > { %v2928_v23 = vpop.permute.xlu1 %2927  ;;  %3147 = vrot.lane.b32.xlu0 %v3146_v14, %s3247_s8  ;;  %2563 = vmatpush.bf16.msra.mxu2 %v2558_v19  ;;  %v3171_v14 = vpack.i.bf16 %v656_v37, %v655_v62 }
 0x147   : > { %v2930_v32 = vunpack.i.h.bf16 %v2928_v23  ;;  %v2929_v17 = vunpack.i.l.bf16 %v2928_v23  ;;  %v4238_v4 = vsel %vm1892_vm6, %v1886_v50, %v2979_v52  ;;  %v4241_v28 = vsel %vm1892_vm6, %v1887_v42, %v2980_v35  ;;  %v725_v50 = vld [vmem:[#allocation2 + $0x122] sm:$0xff]  ;;  %2564 = vmatpush.bf16.msra.mxu3 %v2558_v19  ;;  %v719_v19 = vld [vmem:[#allocation2 + $0xda] sm:$0xff] }
 0x148   : > { %v2938_v42 = vpop.permute.xlu0 %2937  ;;  %v2556_v35 = vld [vmem:[%s4717_s3 + $0x8] sm:$0xff] }
 0x149   : > { %v4249_v39 = vsel %vm1892_vm6, %v4133_v25, %v2929_v17  ;;  %v4253_v63 = vsel %vm1892_vm6, %v4129_v44, %v2930_v32  ;;  %v2940_v5 = vunpack.i.h.bf16 %v2938_v42  ;;  %v2939_v58 = vunpack.i.l.bf16 %v2938_v42  ;;  %v2557_v25 = vld [vmem:[%s4717_s3 + $0x10] sm:$0xff]  ;;  %v664_v32 = vld [vmem:[#allocation2 + $0x140] sm:$0xff] }
 0x14a   : > { %3157 = vrot.lane.b32.xlu2 %v3156_v40, %s3248_s9  ;;  %v3161_v44 = vpack.i.bf16 %v726_v43, %v725_v50  ;;  %2134 = vmatpush.bf16.msra.mxu0 %v2557_v25  ;;  %v663_v40 = vld [vmem:[#allocation2 + $0x138] sm:$0xff] }
 0x14b   : > { %v4264_v11 = vsel %vm1892_vm6, %v4068_v16, %v2939_v58  ;;  %v4268_v41 = vsel %vm1892_vm6, %v4071_v49, %v2940_v5  ;;  %2565 = vmatpush.bf16.msra.mxu1 %v2557_v25  ;;  %2566 = vmatpush.bf16.msra.mxu2 %v2557_v25  ;;  %v3166_v16 = vpack.i.bf16 %v732_v38, %v731_v45 }
 0x14c   : > { %3152 = vrot.lane.b32.xlu1 %v3151_v18, %s3248_s9  ;;  %v4260_v29 = vpop.permute.xlu2 %2992  ;;  %2567 = vmatpush.bf16.msra.mxu3 %v2557_v25  ;;  %v720_v18 = vld [vmem:[#allocation2 + $0xe2] sm:$0xff]  ;;  %v3186_v43 = vpack.i.bf16 %v664_v32, %v663_v40 }
 0x14d   : > { %v3181_v58 = vpack.i.bf16 %v720_v18, %v719_v19  ;;  %v669_v25 = vld [vmem:[#allocation2 + $0x180] sm:$0xff] }
 0x14e   : > { %v2943_v21 = vpop.permute.xlu1 %2942  ;;  %3162 = vrot.lane.b32.xlu0 %v3161_v44, %s3249_s10  ;;  %2135 = vmatpush.bf16.msra.mxu0 %v2556_v35  ;;  %v670_v44 = vld [vmem:[#allocation2 + $0x188] sm:$0xff] }
 0x14f   : > { %v2945_v9 = vunpack.i.h.bf16 %v2943_v21  ;;  %v2944_v20 = vunpack.i.l.bf16 %v2943_v21  ;;  %2568 = vmatpush.bf16.msra.mxu1 %v2556_v35  ;;  %2569 = vmatpush.bf16.msra.mxu2 %v2556_v35  ;;  %v728_v18 = vld [vmem:[#allocation2 + $0x142] sm:$0xff] }
 0x150   : > { %v4282_v23 = vpop.permute.xlu0 %2952  ;;  %2570 = vmatpush.bf16.msra.mxu3 %v2556_v35  ;;  %v695_v35 = vld [vmem:[#allocation2 + $0x139] sm:$0xff] }
 0x151   : > { %v4276_v49 = vsel %vm1892_vm6, %v4156_v54, %v2944_v20  ;;  %v4280_v52 = vsel %vm1892_vm6, %v4160_v51, %v2945_v9  ;;  %v2555_v54 = vld [vmem:[%s4717_s3] sm:$0xff]  ;;  %v3176_v51 = vpack.i.bf16 %v688_v55, %v687_v10  ;;  %v702_v9 = vld [vmem:[#allocation2 + $0x189] sm:$0xff]  ;;  %v3191_v20 = vpack.i.bf16 %v670_v44, %v669_v25 }
 0x152   : > { %3172 = vrot.lane.b32.xlu2 %v3171_v14, %s3247_s8  ;;  %2136 = vmatpush.bf16.msra.mxu0 %v2555_v54  ;;  %v701_v14 = vld [vmem:[#allocation2 + $0x181] sm:$0xff] }
 0x153   : > { %2571 = vmatpush.bf16.msra.mxu1 %v2555_v54  ;;  %2572 = vmatpush.bf16.msra.mxu2 %v2555_v54  ;;  %v3201_v40 = vpack.i.bf16 %v702_v9, %v701_v14 }
 0x154   : > { %3167 = vrot.lane.b32.xlu1 %v3166_v16, %s3249_s10  ;;  %v4289_v17 = vpop.permute.xlu2 %3007  ;;  %2573 = vmatpush.bf16.msra.mxu3 %v2555_v54  ;;  %v696_v16 = vld [vmem:[#allocation2 + $0x141] sm:$0xff] }
 0x156   : > { %v2958_v50 = vpop.permute.xlu1 %2957  ;;  %3177 = vrot.lane.b32.xlu0 %v3176_v51, %s3248_s9  ;;  %v3196_v51 = vpack.i.bf16 %v696_v16, %v695_v35  ;;  %v704_v35 = vld [vmem:[#allocation2 + $0x1a1] sm:$0xff]  ;;  %v2914_v16 = vunpack.i.l.bf16 %v4215_v34 }
 0x157   : > { %v2960_v42 = vunpack.i.h.bf16 %v2958_v50  ;;  %v2959_v5 = vunpack.i.l.bf16 %v2958_v50 }
 0x158   : > { %v2968_v45 = vpop.permute.xlu0 %2967 }
 0x159   : > { %v4294_v62 = vsel %vm1892_vm6, %v4173_v48, %v2959_v5  ;;  %v4298_v37 = vsel %vm1892_vm6, %v4177_v3, %v2960_v42  ;;  %v2970_v38 = vunpack.i.h.bf16 %v2968_v45  ;;  %v2969_v21 = vunpack.i.l.bf16 %v2968_v45  ;;  %v671_v5 = vld [vmem:[#allocation2 + $0x198] sm:$0xff] }
 0x15a   : > { %3187 = vrot.lane.b32.xlu2 %v3186_v43, %s3247_s8 }
 0x15b   : > { %v4304_v48 = vsel %vm1892_vm6, %v4111_v31, %v2969_v21  ;;  %v4308_v3 = vsel %vm1892_vm6, %v4114_v46, %v2970_v38  ;;  %v727_v46 = vld [vmem:[#allocation2 + $0x13a] sm:$0xff] }
 0x15c   : > { %3182 = vrot.lane.b32.xlu1 %v3181_v58, %s3249_s10  ;;  %v4310_v55 = vpop.permute.xlu2 %3022  ;;  %v672_v58 = vld [vmem:[#allocation2 + $0x1a0] sm:$0xff]  ;;  %v3206_v25 = vpack.i.bf16 %v728_v18, %v727_v46 }
 0x15d   : > { %v3216_v45 = vpack.i.bf16 %v672_v58, %v671_v5  ;;  %v736_v46 = vld [vmem:[#allocation2 + $0x1a2] sm:$0xff] }
 0x15e   : > { %v2973_v10 = vpop.permute.xlu1 %2972  ;;  %3192 = vrot.lane.b32.xlu0 %v3191_v20, %s3247_s8  ;;  %v703_v20 = vld [vmem:[#allocation2 + $0x199] sm:$0xff] }
 0x15f   : > { %v2975_v32 = vunpack.i.h.bf16 %v2973_v10  ;;  %v2974_v54 = vunpack.i.l.bf16 %v2973_v10 }
 0x160   : > { %v2983_v50 = vpop.permute.xlu0 %2982 }
 0x161   : > { %v4315_v19 = vsel %vm1892_vm6, %v4188_v61, %v2974_v54  ;;  %v4319_v31 = vsel %vm1892_vm6, %v4192_v27, %v2975_v32  ;;  %v2985_v43 = vunpack.i.h.bf16 %v2983_v50  ;;  %v2984_v42 = vunpack.i.l.bf16 %v2983_v50 }
 0x162   : > { %3202 = vrot.lane.b32.xlu2 %v3201_v40, %s3248_s9  ;;  %v2995_v40 = vunpack.i.h.bf16 %v4260_v29  ;;  %v2994_v32 = vunpack.i.l.bf16 %v4260_v29 }
 0x163   : > { %v4325_v61 = vsel %vm1892_vm6, %v4136_v1, %v2984_v42  ;;  %v4329_v27 = vsel %vm1892_vm6, %v4139_v60, %v2985_v43  ;;  %v2915_v60 = vunpack.i.h.bf16 %v4215_v34  ;;  %v1893_v34 = vsel %vm1892_vm6, %v4108_v36, %v2914_v16 }
 0x164   : > { %3197 = vrot.lane.b32.xlu1 %v3196_v51, %s3248_s9  ;;  %v4332_v14 = vpop.permute.xlu2 %3037  ;;  %v735_v51 = vld [vmem:[#allocation2 + $0x19a] sm:$0xff]  ;;  %v1926_v29 = vsel %vm1925_vm8, %v1893_v34, %v2994_v32 }
 0x165   : > { %v1894_v18 = vsel %vm1892_vm6, %v4104_v2, %v2915_v60  ;;  %v3009_v60 = vunpack.i.l.bf16 %v4289_v17 }
 0x166   : > { %v2988_v44 = vpop.permute.xlu1 %2987  ;;  %3207 = vrot.lane.b32.xlu0 %v3206_v25, %s3249_s10  ;;  %v1927_v43 = vsel %vm1925_vm8, %v1894_v18, %v2995_v40  ;;  %v3226_v25 = vpack.i.bf16 %v736_v46, %v735_v51 }
 0x167   : > { %v2990_v38 = vunpack.i.h.bf16 %v2988_v44  ;;  %v2989_v21 = vunpack.i.l.bf16 %v2988_v44 }
 0x168   : > { %v2998_v10 = vpop.permute.xlu0 %2997 }
 0x169   : > { %v4336_v9 = vsel %vm1892_vm6, %v4209_v56, %v2989_v21  ;;  %v4340_v1 = vsel %vm1892_vm6, %v4213_v8, %v2990_v38  ;;  %v3000_v56 = vunpack.i.h.bf16 %v2998_v10  ;;  %v2999_v54 = vunpack.i.l.bf16 %v2998_v10 }
 0x16a   : > { %3217 = vrot.lane.b32.xlu2 %v3216_v45, %s3247_s8  ;;  %v3221_v8 = vpack.i.bf16 %v704_v35, %v703_v20  ;;  %v2920_v21 = vunpack.i.h.bf16 %v4152_v15  ;;  %v2919_v20 = vunpack.i.l.bf16 %v4152_v15  ;;  %v3010_v35 = vunpack.i.h.bf16 %v4289_v17 }
 0x16b   : > { %v1960_v58 = vsel %vm1958_vm9, %v1927_v43, %v3000_v56  ;;  %v2934_v15 = vunpack.i.l.bf16 %v4169_v7 }
 0x16c   : > { %3212 = vrot.lane.b32.xlu1 %v4005_v53, %s3249_s10  ;;  %v1959_v53 = vsel %vm1958_vm9, %v1926_v29, %v2999_v54  ;;  %v4360_v2 = vpop.permute.xlu2 %3052  ;;  %v1895_v32 = vsel %vm1892_vm6, %v4119_v57, %v2919_v20  ;;  %v1896_v56 = vsel %vm1892_vm6, %v4123_v0, %v2920_v21  ;;  %v2935_v54 = vunpack.i.h.bf16 %v4169_v7 }
 0x16d   : > { %v1929_v51 = vsel %vm1925_vm8, %v1896_v56, %v3010_v35  ;;  %v1901_v0 = vsel %vm1892_vm6, %v4144_v33, %v2934_v15  ;;  %v3025_v7 = vunpack.i.h.bf16 %v4310_v55  ;;  %v2955_v35 = vunpack.i.h.bf16 %v4282_v23 }
 0x16e   : > { %v3003_v50 = vpop.permute.xlu1 %3002  ;;  %3222 = vrot.lane.b32.xlu0 %v3221_v8, %s3248_s9  ;;  %v1928_v8 = vsel %vm1925_vm8, %v1895_v32, %v3009_v60  ;;  %v1902_v43 = vsel %vm1892_vm6, %v4148_v59, %v2935_v54  ;;  %v2954_v60 = vunpack.i.l.bf16 %v4282_v23  ;;  %v3039_v32 = vunpack.i.l.bf16 %v4332_v14 }
 0x16f   : > { %v3005_v42 = vunpack.i.h.bf16 %v3003_v50  ;;  %v3004_v5 = vunpack.i.l.bf16 %v3003_v50 }
 0x170   : > { %v3013_v45 = vpop.permute.xlu0 %3012  ;;  %v1909_v15 = vsel %vm1892_vm6, %v4090_v13, %v2954_v60 }
 0x171   : > { %v1992_v36 = vsel %vm1991_vm10, %v1959_v53, %v3004_v5  ;;  %v1993_v44 = vsel %vm1991_vm10, %v1960_v58, %v3005_v42  ;;  %v3015_v46 = vunpack.i.h.bf16 %v3013_v45  ;;  %v3014_v34 = vunpack.i.l.bf16 %v3013_v45 }
 0x172   : > { %v2024_v38 = vpack.c.bf16 %v1993_v44, %v1992_v36  ;;  %v3024_v42 = vunpack.i.l.bf16 %v4310_v55 }
 0x173   : > { %v1934_v53 = vsel %vm1925_vm8, %v1901_v0, %v3014_v34  ;;  %v1935_v58 = vsel %vm1925_vm8, %v1902_v43, %v3015_v46  ;;  %v1942_v46 = vsel %vm1925_vm8, %v1909_v15, %v3039_v32  ;;  %v3054_v43 = vunpack.i.l.bf16 %v4360_v2 }
 0x174   : > { %3227 = vrot.lane.b32.xlu1 %v3226_v25, %s3249_s10  ;;  %2535 = vmatmul.msk.bf16.vlgmr.msra.gmra.mxu0 %vm2076_vm11, %v2024_v38  ;;  %v4384_v5 = vpop.permute.xlu2 %3067  ;;  %v1967_v59 = vsel %vm1958_vm9, %v1934_v53, %v3024_v42  ;;  %v1968_v21 = vsel %vm1958_vm9, %v1935_v58, %v3025_v7 }
 0x176   : > { %v3018_v16 = vpop.permute.xlu1 %3017 }
 0x177   : > { %v3020_v10 = vunpack.i.h.bf16 %v3018_v16  ;;  %v3019_v40 = vunpack.i.l.bf16 %v3018_v16 }
 0x178   : > { %v3028_v50 = vpop.permute.xlu0 %3027 }
 0x179   : > { %v1961_v17 = vsel %vm1958_vm9, %v1928_v8, %v3019_v40  ;;  %v1962_v18 = vsel %vm1958_vm9, %v1929_v51, %v3020_v10  ;;  %v3030_v29 = vunpack.i.h.bf16 %v3028_v50  ;;  %v3029_v57 = vunpack.i.l.bf16 %v3028_v50 }
 0x17a   : > { %v3040_v40 = vunpack.i.h.bf16 %v4332_v14  ;;  %v1910_v8 = vsel %vm1892_vm6, %v4093_v30, %v2955_v35  ;;  %v3055_v30 = vunpack.i.h.bf16 %v4360_v2  ;;  %v3070_v2 = vunpack.i.h.bf16 %v4384_v5 }
 0x17b   : > { %v1994_v25 = vsel %vm1991_vm10, %v1961_v17, %v3029_v57  ;;  %v1995_v36 = vsel %vm1991_vm10, %v1962_v18, %v3030_v29 }
 0x17c   : > { %v2025_v45 = vpack.c.bf16 %v1995_v36, %v1994_v25  ;;  %v3083_v51 = vpop.permute.xlu2 %3082  ;;  %v1943_v34 = vsel %vm1925_vm8, %v1910_v8, %v3040_v40  ;;  %v1930_v25 = vsel %vm1925_vm8, %v4231_v24, %v3054_v43  ;;  %v1931_v36 = vsel %vm1925_vm8, %v4235_v22, %v3055_v30 }
 0x17e   : > { %v3033_v44 = vpop.permute.xlu1 %3032 }
 0x17f   : > { %v3035_v33 = vunpack.i.h.bf16 %v3033_v44  ;;  %v3034_v38 = vunpack.i.l.bf16 %v3033_v44 }
 0x180   : > { %v3043_v16 = vpop.permute.xlu0 %3042 }
 0x181   : > { %v2000_v55 = vsel %vm1991_vm10, %v1967_v59, %v3034_v38  ;;  %v2001_v20 = vsel %vm1991_vm10, %v1968_v21, %v3035_v33  ;;  %v3045_v56 = vunpack.i.h.bf16 %v3043_v16  ;;  %v3044_v54 = vunpack.i.l.bf16 %v3043_v16 }
 0x182   : > { %v2028_v10 = vpack.c.bf16 %v2001_v20, %v2000_v55  ;;  %v3069_v20 = vunpack.i.l.bf16 %v4384_v5 }
 0x183   : > { %v1975_v18 = vsel %vm1958_vm9, %v1942_v46, %v3044_v54  ;;  %v1976_v50 = vsel %vm1958_vm9, %v1943_v34, %v3045_v56  ;;  %v3084_v46 = vunpack.i.l.bf16 %v3083_v51 }
 0x184   : > { %2536 = vmatmul.msk.bf16.gmra.mxu0 %vm2076_vm11, %v2025_v45  ;;  %2539 = vmatmul.msk.bf16.vlgmr.msra.gmra.mxu1 %vm2076_vm11, %v2028_v10  ;;  %v3098_v58 = vpop.permute.xlu2 %3097 }
 0x186   : > { %v3048_v23 = vpop.permute.xlu1 %3047 }
 0x187   : > { %v3050_v17 = vunpack.i.h.bf16 %v3048_v23  ;;  %v3049_v14 = vunpack.i.l.bf16 %v3048_v23  ;;  %v3085_v23 = vunpack.i.h.bf16 %v3083_v51  ;;  %v3099_v51 = vunpack.i.l.bf16 %v3098_v58 }
 0x188   : > { %v3058_v13 = vpop.permute.xlu0 %3057 }
 0x189   : > { %v2008_v29 = vsel %vm1991_vm10, %v1975_v18, %v3049_v14  ;;  %v2009_v57 = vsel %vm1991_vm10, %v1976_v50, %v3050_v17  ;;  %v3060_v44 = vunpack.i.h.bf16 %v3058_v13  ;;  %v3059_v45 = vunpack.i.l.bf16 %v3058_v13 }
 0x18a   : > { %v2032_v0 = vpack.c.bf16 %v2009_v57, %v2008_v29  ;;  %v1944_v18 = vsel %vm1925_vm8, %v4294_v62, %v3084_v46  ;;  %v1945_v50 = vsel %vm1925_vm8, %v4298_v37, %v3085_v23 }
 0x18b   : > { %v1936_v35 = vsel %vm1925_vm8, %v4264_v11, %v3059_v45  ;;  %v1937_v24 = vsel %vm1925_vm8, %v4268_v41, %v3060_v44 }
 0x18c   : > { %2543 = vmatmul.msk.bf16.vlgmr.msra.gmra.mxu2 %vm2076_vm11, %v2032_v0  ;;  %v1969_v56 = vsel %vm1958_vm9, %v1936_v35, %v3069_v20  ;;  %v1970_v5 = vsel %vm1958_vm9, %v1937_v24, %v3070_v2  ;;  %v3113_v15 = vpop.permute.xlu2 %3112 }
 0x18d   : > { %v3115_v2 = vunpack.i.h.bf16 %v3113_v15  ;;  %v3114_v20 = vunpack.i.l.bf16 %v3113_v15 }
 0x18e   : > { %v3063_v7 = vpop.permute.xlu1 %3062 }
 0x18f   : > { %v3065_v42 = vunpack.i.h.bf16 %v3063_v7  ;;  %v3064_v53 = vunpack.i.l.bf16 %v3063_v7 }
 0x190   : > { %v3073_v59 = vpop.permute.xlu0 %3072 }
 0x191   : > { %v1963_v33 = vsel %vm1958_vm9, %v1930_v25, %v3064_v53  ;;  %v1964_v38 = vsel %vm1958_vm9, %v1931_v36, %v3065_v42  ;;  %v3075_v21 = vunpack.i.h.bf16 %v3073_v59  ;;  %v3074_v55 = vunpack.i.l.bf16 %v3073_v59 }
 0x192   : > { %v3100_v42 = vunpack.i.h.bf16 %v3098_v58 }
 0x193   : > { %v1996_v22 = vsel %vm1991_vm10, %v1963_v33, %v3074_v55  ;;  %v1997_v60 = vsel %vm1991_vm10, %v1964_v38, %v3075_v21 }
 0x194   : > { %v2026_v16 = vpack.c.bf16 %v1997_v60, %v1996_v22  ;;  %v3128_v53 = vpop.permute.xlu2 %3127 }
 0x195   : > { %v3130_v15 = vunpack.i.h.bf16 %v3128_v53 }
 0x196   : > { %v3078_v10 = vpop.permute.xlu1 %3077  ;;  %2537 = vmatmul.msk.bf16.gmra.mxu0 %vm2076_vm11, %v2026_v16  ;;  %v1932_v16 = vsel %vm1925_vm8, %v4249_v39, %v3114_v20 }
 0x197   : > { %v3080_v40 = vunpack.i.h.bf16 %v3078_v10  ;;  %v3079_v32 = vunpack.i.l.bf16 %v3078_v10  ;;  %v1933_v10 = vsel %vm1925_vm8, %v4253_v63, %v3115_v2 }
 0x198   : > { %v3088_v41 = vpop.permute.xlu0 %3087 }
 0x199   : > { %v2002_v54 = vsel %vm1991_vm10, %v1969_v56, %v3079_v32  ;;  %v2003_v11 = vsel %vm1991_vm10, %v1970_v5, %v3080_v40  ;;  %v3090_v29 = vunpack.i.h.bf16 %v3088_v41  ;;  %v3089_v57 = vunpack.i.l.bf16 %v3088_v41 }
 0x19a   : > { %v2029_v8 = vpack.c.bf16 %v2003_v11, %v2002_v54 }
 0x19b   : > { %v1950_v25 = vsel %vm1925_vm8, %v4315_v19, %v3089_v57  ;;  %v1951_v62 = vsel %vm1925_vm8, %v4319_v31, %v3090_v29 }
 0x19c   : > { %2540 = vmatmul.msk.bf16.gmra.mxu1 %vm2076_vm11, %v2029_v8  ;;  %v1983_v59 = vsel %vm1958_vm9, %v1950_v25, %v3099_v51  ;;  %v1984_v58 = vsel %vm1958_vm9, %v1951_v62, %v3100_v42  ;;  %v3143_v35 = vpop.permute.xlu2 %3142  ;;  %v3129_v8 = vunpack.i.l.bf16 %v3128_v53 }
 0x19e   : > { %v3093_v34 = vpop.permute.xlu1 %3092 }
 0x19f   : > { %v3095_v17 = vunpack.i.h.bf16 %v3093_v34  ;;  %v3094_v14 = vunpack.i.l.bf16 %v3093_v34 }
 0x1a0   : > { %v3103_v30 = vpop.permute.xlu0 %3102 }
 0x1a1   : > { %v1977_v13 = vsel %vm1958_vm9, %v1944_v18, %v3094_v14  ;;  %v1978_v0 = vsel %vm1958_vm9, %v1945_v50, %v3095_v17  ;;  %v3105_v43 = vunpack.i.h.bf16 %v3103_v30  ;;  %v3104_v7 = vunpack.i.l.bf16 %v3103_v30 }
 0x1a2   : > { %v3145_v30 = vunpack.i.h.bf16 %v3143_v35 }
 0x1a3   : > { %v2010_v37 = vsel %vm1991_vm10, %v1977_v13, %v3104_v7  ;;  %v2011_v36 = vsel %vm1991_vm10, %v1978_v0, %v3105_v43  ;;  %v3144_v43 = vunpack.i.l.bf16 %v3143_v35 }
 0x1a4   : > { %v2033_v44 = vpack.c.bf16 %v2011_v36, %v2010_v37  ;;  %v3158_v50 = vpop.permute.xlu2 %3157  ;;  %v1947_v25 = vsel %vm1925_vm8, %v4221_v12, %v3145_v30 }
 0x1a5   : > { %v1946_v53 = vsel %vm1925_vm8, %v4218_v26, %v3144_v43 }
 0x1a6   : > { %v3108_v45 = vpop.permute.xlu1 %3107  ;;  %2544 = vmatmul.msk.bf16.gmra.mxu2 %vm2076_vm11, %v2033_v44 }
 0x1a7   : > { %v3110_v33 = vunpack.i.h.bf16 %v3108_v45  ;;  %v3109_v38 = vunpack.i.l.bf16 %v3108_v45 }
 0x1a8   : > { %v3118_v55 = vpop.permute.xlu0 %3117 }
 0x1a9   : > { %v2016_v21 = vsel %vm1991_vm10, %v1983_v59, %v3109_v38  ;;  %v2017_v19 = vsel %vm1991_vm10, %v1984_v58, %v3110_v33  ;;  %v3120_v40 = vunpack.i.h.bf16 %v3118_v55  ;;  %v3119_v32 = vunpack.i.l.bf16 %v3118_v55 }
 0x1aa   : > { %v2036_v31 = vpack.c.bf16 %v2017_v19, %v2016_v21  ;;  %v3160_v58 = vunpack.i.h.bf16 %v3158_v50  ;;  %v3159_v21 = vunpack.i.l.bf16 %v3158_v50 }
 0x1ab   : > { %v1938_v23 = vsel %vm1925_vm8, %v4276_v49, %v3119_v32  ;;  %v1939_v39 = vsel %vm1925_vm8, %v4280_v52, %v3120_v40 }
 0x1ac   : > { %2547 = vmatmul.msk.bf16.vlgmr.msra.gmra.mxu3 %vm2076_vm11, %v2036_v31  ;;  %v1971_v29 = vsel %vm1958_vm9, %v1938_v23, %v3129_v8  ;;  %v1972_v57 = vsel %vm1958_vm9, %v1939_v39, %v3130_v15  ;;  %v3173_v36 = vpop.permute.xlu2 %3172 }
 0x1ad   : > { %v3174_v40 = vunpack.i.l.bf16 %v3173_v36 }
 0x1ae   : > { %v3123_v24 = vpop.permute.xlu1 %3122 }
 0x1af   : > { %v3125_v22 = vunpack.i.h.bf16 %v3123_v24  ;;  %v3124_v60 = vunpack.i.l.bf16 %v3123_v24 }
 0x1b0   : > { %v3133_v54 = vpop.permute.xlu0 %3132 }
 0x1b1   : > { %v1965_v56 = vsel %vm1958_vm9, %v1932_v16, %v3124_v60  ;;  %v1966_v5 = vsel %vm1958_vm9, %v1933_v10, %v3125_v22  ;;  %v3135_v11 = vunpack.i.h.bf16 %v3133_v54  ;;  %v3134_v41 = vunpack.i.l.bf16 %v3133_v54 }
 0x1b2   : > { %v3175_v10 = vunpack.i.h.bf16 %v3173_v36 }
 0x1b3   : > { %v1998_v46 = vsel %vm1991_vm10, %v1965_v56, %v3134_v41  ;;  %v1999_v63 = vsel %vm1991_vm10, %v1966_v5, %v3135_v11  ;;  %v1940_v11 = vsel %vm1925_vm8, %v4195_v47, %v3174_v40 }
 0x1b4   : > { %v2027_v34 = vpack.c.bf16 %v1999_v63, %v1998_v46  ;;  %v3188_v32 = vpop.permute.xlu2 %3187  ;;  %v1941_v41 = vsel %vm1925_vm8, %v4198_v6, %v3175_v10 }
 0x1b6   : > { %v3138_v17 = vpop.permute.xlu1 %3137  ;;  %2538 = vmatmul.msk.bf16.gmra.mxu0 %vm2076_vm11, %v2027_v34 }
 0x1b7   : > { %v3140_v14 = vunpack.i.h.bf16 %v3138_v17  ;;  %v3139_v18 = vunpack.i.l.bf16 %v3138_v17 }
 0x1b8   : > { %v3148_v52 = vpop.permute.xlu0 %3147 }
 0x1b9   : > { %v2004_v49 = vsel %vm1991_vm10, %v1971_v29, %v3139_v18  ;;  %v2005_v13 = vsel %vm1991_vm10, %v1972_v57, %v3140_v14  ;;  %v3150_v62 = vunpack.i.h.bf16 %v3148_v52  ;;  %v3149_v37 = vunpack.i.l.bf16 %v3148_v52 }
 0x1ba   : > { %v2030_v0 = vpack.c.bf16 %v2005_v13, %v2004_v49  ;;  %v3190_v14 = vunpack.i.h.bf16 %v3188_v32  ;;  %v3189_v18 = vunpack.i.l.bf16 %v3188_v32 }
 0x1bb   : > { %v1952_v19 = vsel %vm1925_vm8, %v4238_v4, %v3149_v37  ;;  %v1953_v26 = vsel %vm1925_vm8, %v4241_v28, %v3150_v62 }
 0x1bc   : > { %2541 = vmatmul.msk.bf16.gmra.mxu1 %vm2076_vm11, %v2030_v0  ;;  %v1985_v24 = vsel %vm1958_vm9, %v1952_v19, %v3159_v21  ;;  %v1986_v22 = vsel %vm1958_vm9, %v1953_v26, %v3160_v58  ;;  %v3203_v47 = vpop.permute.xlu2 %3202  ;;  %v1948_v57 = vsel %vm1925_vm8, %v4304_v48, %v3189_v18  ;;  %v1949_v49 = vsel %vm1925_vm8, %v4308_v3, %v3190_v14 }
 0x1be   : > { %v3153_v7 = vpop.permute.xlu1 %3152 }
 0x1bf   : > { %v3155_v42 = vunpack.i.h.bf16 %v3153_v7  ;;  %v3154_v51 = vunpack.i.l.bf16 %v3153_v7 }
 0x1c0   : > { %v3163_v33 = vpop.permute.xlu0 %3162 }
 0x1c1   : > { %v1979_v44 = vsel %vm1958_vm9, %v1946_v53, %v3154_v51  ;;  %v1980_v45 = vsel %vm1958_vm9, %v1947_v25, %v3155_v42  ;;  %v3165_v38 = vunpack.i.h.bf16 %v3163_v33  ;;  %v3164_v59 = vunpack.i.l.bf16 %v3163_v33 }
 0x1c2   : > { %v3205_v51 = vunpack.i.h.bf16 %v3203_v47  ;;  %v3204_v53 = vunpack.i.l.bf16 %v3203_v47 }
 0x1c3   : > { %v2012_v12 = vsel %vm1991_vm10, %v1979_v44, %v3164_v59  ;;  %v2013_v55 = vsel %vm1991_vm10, %v1980_v45, %v3165_v38 }
 0x1c4   : > { %v2034_v31 = vpack.c.bf16 %v2013_v55, %v2012_v12  ;;  %v3218_v33 = vpop.permute.xlu2 %3217 }
 0x1c5   : > { %v3220_v19 = vunpack.i.h.bf16 %v3218_v33  ;;  %v3219_v26 = vunpack.i.l.bf16 %v3218_v33 }
 0x1c6   : > { %v3168_v2 = vpop.permute.xlu1 %3167  ;;  %2545 = vmatmul.msk.bf16.gmra.mxu2 %vm2076_vm11, %v2034_v31 }
 0x1c7   : > { %v3170_v20 = vunpack.i.h.bf16 %v3168_v2  ;;  %v3169_v35 = vunpack.i.l.bf16 %v3168_v2  ;;  %v1956_v2 = vsel %vm1925_vm8, %v4336_v9, %v3219_v26 }
 0x1c8   : > { %v3178_v16 = vpop.permute.xlu0 %3177 }
 0x1c9   : > { %v2018_v60 = vsel %vm1991_vm10, %v1985_v24, %v3169_v35  ;;  %v2019_v4 = vsel %vm1991_vm10, %v1986_v22, %v3170_v20  ;;  %v3180_v56 = vunpack.i.h.bf16 %v3178_v16  ;;  %v3179_v5 = vunpack.i.l.bf16 %v3178_v16 }
 0x1ca   : > { %v2037_v28 = vpack.c.bf16 %v2019_v4, %v2018_v60  ;;  %v1957_v20 = vsel %vm1925_vm8, %v4340_v1, %v3220_v19 }
 0x1cb   : > { %v1973_v23 = vsel %vm1958_vm9, %v1940_v11, %v3179_v5  ;;  %v1974_v39 = vsel %vm1958_vm9, %v1941_v41, %v3180_v56 }
 0x1cc   : > { %2548 = vmatmul.msk.bf16.gmra.mxu3 %vm2076_vm11, %v2037_v28 }
 0x1ce   : > { %v3183_v54 = vpop.permute.xlu1 %3182 }
 0x1cf   : > { %v3185_v15 = vunpack.i.h.bf16 %v3183_v54  ;;  %v3184_v8 = vunpack.i.l.bf16 %v3183_v54 }
 0x1d0   : > { %v3193_v34 = vpop.permute.xlu0 %3192 }
 0x1d1   : > { %v2006_v46 = vsel %vm1991_vm10, %v1973_v23, %v3184_v8  ;;  %v2007_v63 = vsel %vm1991_vm10, %v1974_v39, %v3185_v15  ;;  %v3195_v13 = vunpack.i.h.bf16 %v3193_v34  ;;  %v3194_v52 = vunpack.i.l.bf16 %v3193_v34 }
 0x1d2   : > { %v2031_v17 = vpack.c.bf16 %v2007_v63, %v2006_v46 }
 0x1d3   : > { %v1954_v25 = vsel %vm1925_vm8, %v4325_v61, %v3194_v52  ;;  %v1955_v48 = vsel %vm1925_vm8, %v4329_v27, %v3195_v13 }
 0x1d4   : > { %2542 = vmatmul.msk.bf16.gmra.mxu1 %vm2076_vm11, %v2031_v17  ;;  %v1987_v38 = vsel %vm1958_vm9, %v1954_v25, %v3204_v53  ;;  %v1988_v59 = vsel %vm1958_vm9, %v1955_v48, %v3205_v51 }
 0x1d6   : > { %v3198_v50 = vpop.permute.xlu1 %3197 }
 0x1d7   : > { %v3200_v29 = vunpack.i.h.bf16 %v3198_v50  ;;  %v3199_v6 = vunpack.i.l.bf16 %v3198_v50 }
 0x1d8   : > { %v3208_v43 = vpop.permute.xlu0 %3207 }
 0x1d9   : > { %v1981_v0 = vsel %vm1958_vm9, %v1948_v57, %v3199_v6  ;;  %v1982_v30 = vsel %vm1958_vm9, %v1949_v49, %v3200_v29  ;;  %v3210_v7 = vunpack.i.h.bf16 %v3208_v43  ;;  %v3209_v42 = vunpack.i.l.bf16 %v3208_v43 }
 0x1db   : > { %v2014_v62 = vsel %vm1991_vm10, %v1981_v0, %v3209_v42  ;;  %v2015_v3 = vsel %vm1991_vm10, %v1982_v30, %v3210_v7 }
 0x1dc   : > { %v2035_v37 = vpack.c.bf16 %v2015_v3, %v2014_v62 }
 0x1de   : > { %v3213_v36 = vpop.permute.xlu1 %3212  ;;  %2546 = vmatmul.msk.bf16.gmra.mxu2 %vm2076_vm11, %v2035_v37 }
 0x1df   : > { %v3215_v44 = vunpack.i.h.bf16 %v3213_v36  ;;  %v3214_v45 = vunpack.i.l.bf16 %v3213_v36 }
 0x1e0   : > { %v3223_v27 = vpop.permute.xlu0 %3222 }
 0x1e1   : > { %v2020_v61 = vsel %vm1991_vm10, %v1987_v38, %v3214_v45  ;;  %v2021_v58 = vsel %vm1991_vm10, %v1988_v59, %v3215_v44  ;;  %v3225_v12 = vunpack.i.h.bf16 %v3223_v27  ;;  %v3224_v55 = vunpack.i.l.bf16 %v3223_v27 }
 0x1e2   : > { %v2038_v21 = vpack.c.bf16 %v2021_v58, %v2020_v61 }
 0x1e3   : > { %v1989_v22 = vsel %vm1958_vm9, %v1956_v2, %v3224_v55  ;;  %v1990_v60 = vsel %vm1958_vm9, %v1957_v20, %v3225_v12 }
 0x1e4   : > { %2549 = vmatmul.msk.bf16.gmra.mxu3 %vm2076_vm11, %v2038_v21 }
 0x1e6   : > { %v3228_v31 = vpop.permute.xlu1 %3227 }
 0x1e7   : > { %v3230_v35 = vunpack.i.h.bf16 %v3228_v31  ;;  %v3229_v24 = vunpack.i.l.bf16 %v3228_v31 }
 0x1e9   : > { %v2022_v4 = vsel %vm1991_vm10, %v1989_v22, %v3229_v24  ;;  %v2023_v16 = vsel %vm1991_vm10, %v1990_v60, %v3230_v35 }
 0x1ea   : > { %v2039_v28 = vpack.c.bf16 %v2023_v16, %v2022_v4 }
 0x1f1   : > { %v2138_v9 = vpop.f32.mrf.mxu0 }
 0x1f2   : > { %2218 = vst.msk [vmem:[%s4527_s26] sm:$0xff] %vm373_vm0, %v2138_v9  ;;  %v2319_v1 = vmul.f32 %v2138_v9, %v2138_v9  ;;  %v2250_v40 = vsel %vm373_vm0, %v2138_v9, 0.0 }
 0x1f4   : > { %2550 = vmatmul.msk.bf16.gmra.mxu3 %vm2076_vm11, %v2039_v28  ;;  %v2351_v54 = vsel %vm373_vm0, %v2319_v1, 0.0 }
 0x1f9   : > { %v2140_v10 = vpop.f32.mrf.mxu0 }
 0x1fa   : > { %2219 = vst.msk [vmem:[%s4527_s26 + $0x8] sm:$0xff] %vm373_vm0, %v2140_v10  ;;  %v2251_v32 = vsel %vm373_vm0, %v2140_v10, 0.0  ;;  %v2320_v56 = vmul.f32 %v2140_v10, %v2140_v10 }
 0x1fb   : > { %v2252_v5 = vadd.f32 %v2251_v32, %v2250_v40 }
 0x1fc   : > { %v2352_v11 = vsel %vm373_vm0, %v2320_v56, 0.0 }
 0x1fd   : > { %v2353_v41 = vadd.f32 %v2352_v11, %v2351_v54 }
 0x201   : > { %v2143_v15 = vpop.f32.mrf.mxu0  ;;  %v2158_v8 = vpop.f32.mrf.mxu1 }
 0x202   : > { %2220 = vst.msk [vmem:[%s4527_s26 + $0x10] sm:$0xff] %vm373_vm0, %v2143_v15  ;;  %v2253_v23 = vsel %vm373_vm0, %v2143_v15, 0.0  ;;  %v2321_v39 = vmul.f32 %v2143_v15, %v2143_v15  ;;  %v2327_v26 = vmul.f32 %v2158_v8, %v2158_v8  ;;  %v2265_v20 = vsel %vm373_vm0, %v2158_v8, 0.0 }
 0x203   : > { %v2254_v46 = vadd.f32 %v2253_v23, %v2252_v5  ;;  %2226 = vst.msk [vmem:[%s4527_s26 + $0x40] sm:$0xff] %vm373_vm0, %v2158_v8 }
 0x204   : > { %v2354_v63 = vsel %vm373_vm0, %v2321_v39, 0.0  ;;  %v2366_v16 = vsel %vm373_vm0, %v2327_v26, 0.0 }
 0x205   : > { %v2355_v34 = vadd.f32 %v2354_v63, %v2353_v41 }
 0x209   : > { %v2145_v17 = vpop.f32.mrf.mxu0  ;;  %v2160_v14 = vpop.f32.mrf.mxu1 }
 0x20a   : > { %2221 = vst.msk [vmem:[%s4527_s26 + $0x18] sm:$0xff] %vm373_vm0, %v2145_v17  ;;  %v2255_v18 = vsel %vm373_vm0, %v2145_v17, 0.0  ;;  %v2322_v30 = vmul.f32 %v2145_v17, %v2145_v17  ;;  %v2328_v35 = vmul.f32 %v2160_v14, %v2160_v14  ;;  %v2267_v28 = vsel %vm373_vm0, %v2160_v14, 0.0 }
 0x20b   : > { %v2256_v47 = vadd.f32 %v2255_v18, %v2254_v46  ;;  %2227 = vst.msk [vmem:[%s4527_s26 + $0x48] sm:$0xff] %vm373_vm0, %v2160_v14 }
 0x20c   : > { %v2356_v51 = vsel %vm373_vm0, %v2322_v30, 0.0  ;;  %v2368_v10 = vsel %vm373_vm0, %v2328_v35, 0.0 }
 0x20d   : > { %v2357_v36 = vadd.f32 %v2356_v51, %v2355_v34 }
 0x20f   : > { %v4549_v50 = vpop.f32.mrf.mxu2 }
 0x210   : > { %2234 = vst.msk [vmem:[%s4527_s26 + $0x80] sm:$0xff] %vm373_vm0, %v4549_v50 }
 0x213   : > { %v2148_v29 = vpop.f32.mrf.mxu0 }
 0x214   : > { %2222 = vst.msk [vmem:[%s4527_s26 + $0x20] sm:$0xff] %vm373_vm0, %v2148_v29  ;;  %v2323_v7 = vmul.f32 %v2148_v29, %v2148_v29  ;;  %v2257_v53 = vsel %vm373_vm0, %v2148_v29, 0.0 }
 0x215   : > { %v2258_v44 = vadd.f32 %v2257_v53, %v2256_v47 }
 0x216   : > { %v2358_v62 = vsel %vm373_vm0, %v2323_v7, 0.0 }
 0x217   : > { %v4556_v6 = vpop.f32.mrf.mxu2  ;;  %v2359_v59 = vadd.f32 %v2358_v62, %v2357_v36  ;;  %v2335_v36 = vmul.f32 %v4549_v50, %v4549_v50 }
 0x218   : > { %2235 = vst.msk [vmem:[%s4527_s26 + $0x88] sm:$0xff] %vm373_vm0, %v4556_v6  ;;  %v2283_v26 = vsel %vm373_vm0, %v4556_v6, 0.0 }
 0x219   : > { %v2163_v57 = vpop.f32.mrf.mxu1 }
 0x21a   : > { %2228 = vst.msk [vmem:[%s4527_s26 + $0x50] sm:$0xff] %vm373_vm0, %v2163_v57  ;;  %v2329_v32 = vmul.f32 %v2163_v57, %v2163_v57  ;;  %v2269_v56 = vsel %vm373_vm0, %v2163_v57, 0.0 }
 0x21b   : > { %v2150_v49 = vpop.f32.mrf.mxu0 }
 0x21c   : > { %2223 = vst.msk [vmem:[%s4527_s26 + $0x28] sm:$0xff] %vm373_vm0, %v2150_v49  ;;  %v2324_v25 = vmul.f32 %v2150_v49, %v2150_v49  ;;  %v2259_v3 = vsel %vm373_vm0, %v2150_v49, 0.0  ;;  %v2370_v11 = vsel %vm373_vm0, %v2329_v32, 0.0 }
 0x21d   : > { %v2260_v61 = vadd.f32 %v2259_v3, %v2258_v44 }
 0x21e   : > { %v2360_v33 = vsel %vm373_vm0, %v2324_v25, 0.0 }
 0x21f   : > { %v2361_v27 = vadd.f32 %v2360_v33, %v2359_v59  ;;  %v2281_v59 = vsel %vm373_vm0, %v4549_v50, 0.0 }
 0x221   : > { %v2165_v13 = vpop.f32.mrf.mxu1 }
 0x222   : > { %2229 = vst.msk [vmem:[%s4527_s26 + $0x58] sm:$0xff] %vm373_vm0, %v2165_v13  ;;  %v2330_v41 = vmul.f32 %v2165_v13, %v2165_v13  ;;  %v2271_v8 = vsel %vm373_vm0, %v2165_v13, 0.0 }
 0x224   : > { %v2372_v46 = vsel %vm373_vm0, %v2330_v41, 0.0 }
 0x229   : > { %v4567_v52 = vpop.f32.mrf.mxu2 }
 0x22a   : > { %2236 = vst.msk [vmem:[%s4527_s26 + $0x90] sm:$0xff] %vm373_vm0, %v4567_v52 }
 0x22f   : > { %v4572_v0 = vpop.f32.mrf.mxu3 }
 0x230   : > { %2242 = vst.msk [vmem:[%s4527_s26 + $0xc0] sm:$0xff] %vm373_vm0, %v4572_v0 }
 0x231   : > { %v4577_v43 = vpop.f32.mrf.mxu2 }
 0x232   : > { %2237 = vst.msk [vmem:[%s4527_s26 + $0x98] sm:$0xff] %vm373_vm0, %v4577_v43 }
 0x233   : > { %v2153_v42 = vpop.f32.mrf.mxu0 }
 0x234   : > { %2224 = vst.msk [vmem:[%s4527_s26 + $0x30] sm:$0xff] %vm373_vm0, %v2153_v42  ;;  %v2325_v37 = vmul.f32 %v2153_v42, %v2153_v42  ;;  %v2261_v38 = vsel %vm373_vm0, %v2153_v42, 0.0 }
 0x235   : > { %v2262_v21 = vadd.f32 %v2261_v38, %v2260_v61  ;;  %v2336_v61 = vmul.f32 %v4556_v6, %v4556_v6  ;;  %v2287_v6 = vsel %vm373_vm0, %v4577_v43, 0.0 }
 0x236   : > { %v2362_v58 = vsel %vm373_vm0, %v2325_v37, 0.0 }
 0x237   : > { %v4586_v48 = vpop.f32.mrf.mxu3  ;;  %v2363_v31 = vadd.f32 %v2362_v58, %v2361_v27  ;;  %v2384_v50 = vsel %vm373_vm0, %v2336_v61, 0.0 }
 0x238   : > { %2243 = vst.msk [vmem:[%s4527_s26 + $0xc8] sm:$0xff] %vm373_vm0, %v4586_v48 }
 0x239   : > { %v2168_v45 = vpop.f32.mrf.mxu1 }
 0x23a   : > { %2230 = vst.msk [vmem:[%s4527_s26 + $0x60] sm:$0xff] %vm373_vm0, %v2168_v45  ;;  %v2331_v63 = vmul.f32 %v2168_v45, %v2168_v45  ;;  %v2273_v14 = vsel %vm373_vm0, %v2168_v45, 0.0 }
 0x23b   : > { %v2155_v19 = vpop.f32.mrf.mxu0 }
 0x23c   : > { %2225 = vst.msk [vmem:[%s4527_s26 + $0x38] sm:$0xff] %vm373_vm0, %v2155_v19  ;;  %v2263_v12 = vsel %vm373_vm0, %v2155_v19, 0.0  ;;  %v2326_v55 = vmul.f32 %v2155_v19, %v2155_v19  ;;  %v2374_v29 = vsel %vm373_vm0, %v2331_v63, 0.0  ;;  %v2382_v19 = vsel %vm373_vm0, %v2335_v36, 0.0 }
 0x23d   : > { %v2264_v2 = vadd.f32 %v2263_v12, %v2262_v21  ;;  %v2337_v12 = vmul.f32 %v4567_v52, %v4567_v52 }
 0x23e   : > { %v2364_v24 = vsel %vm373_vm0, %v2326_v55, 0.0 }
 0x23f   : > { %v2266_v22 = vadd.f32 %v2265_v20, %v2264_v2  ;;  %v2365_v60 = vadd.f32 %v2364_v24, %v2363_v31  ;;  %v2285_v2 = vsel %vm373_vm0, %v4567_v52, 0.0  ;;  %v2338_v20 = vmul.f32 %v4577_v43, %v4577_v43 }
 0x241   : > { %v2170_v4 = vpop.f32.mrf.mxu1  ;;  %v2268_v9 = vadd.f32 %v2267_v28, %v2266_v22  ;;  %v2367_v1 = vadd.f32 %v2366_v16, %v2365_v60  ;;  %v2386_v22 = vsel %vm373_vm0, %v2337_v12, 0.0 }
 0x242   : > { %2231 = vst.msk [vmem:[%s4527_s26 + $0x68] sm:$0xff] %vm373_vm0, %v2170_v4  ;;  %v2332_v57 = vmul.f32 %v2170_v4, %v2170_v4  ;;  %v2275_v30 = vsel %vm373_vm0, %v2170_v4, 0.0 }
 0x243   : > { %v2369_v40 = vadd.f32 %v2368_v10, %v2367_v1  ;;  %v2270_v5 = vadd.f32 %v2269_v56, %v2268_v9  ;;  %v2388_v9 = vsel %vm373_vm0, %v2338_v20, 0.0 }
 0x244   : > { %v2376_v53 = vsel %vm373_vm0, %v2332_v57, 0.0  ;;  %v2344_v57 = vmul.f32 %v4586_v48, %v4586_v48 }
 0x245   : > { %v2371_v15 = vadd.f32 %v2370_v11, %v2369_v40  ;;  %v2272_v23 = vadd.f32 %v2271_v8, %v2270_v5 }
 0x247   : > { %v2373_v34 = vadd.f32 %v2372_v46, %v2371_v15  ;;  %v2274_v18 = vadd.f32 %v2273_v14, %v2272_v23 }
 0x249   : > { %v2188_v54 = vpop.f32.mrf.mxu2  ;;  %v2375_v13 = vadd.f32 %v2374_v29, %v2373_v34  ;;  %v2276_v42 = vadd.f32 %v2275_v30, %v2274_v18  ;;  %v2297_v29 = vsel %vm373_vm0, %v4572_v0, 0.0 }
 0x24a   : > { %2238 = vst.msk [vmem:[%s4527_s26 + $0xa0] sm:$0xff] %vm373_vm0, %v2188_v54  ;;  %v2339_v60 = vmul.f32 %v2188_v54, %v2188_v54  ;;  %v2289_v1 = vsel %vm373_vm0, %v2188_v54, 0.0 }
 0x24b   : > { %v2377_v62 = vadd.f32 %v2376_v53, %v2375_v13  ;;  %v2299_v53 = vsel %vm373_vm0, %v4586_v48, 0.0 }
 0x24c   : > { %v2390_v32 = vsel %vm373_vm0, %v2339_v60, 0.0 }
 0x24f   : > { %v4613_v39 = vpop.f32.mrf.mxu3 }
 0x250   : > { %2244 = vst.msk [vmem:[%s4527_s26 + $0xd0] sm:$0xff] %vm373_vm0, %v4613_v39 }
 0x251   : > { %v2173_v17 = vpop.f32.mrf.mxu1  ;;  %v2190_v47 = vpop.f32.mrf.mxu2 }
 0x252   : > { %2232 = vst.msk [vmem:[%s4527_s26 + $0x70] sm:$0xff] %vm373_vm0, %v2173_v17  ;;  %v2333_v49 = vmul.f32 %v2173_v17, %v2173_v17  ;;  %v2277_v7 = vsel %vm373_vm0, %v2173_v17, 0.0  ;;  %v2340_v52 = vmul.f32 %v2190_v47, %v2190_v47  ;;  %v2291_v56 = vsel %vm373_vm0, %v2190_v47, 0.0 }
 0x253   : > { %2239 = vst.msk [vmem:[%s4527_s26 + $0xa8] sm:$0xff] %vm373_vm0, %v2190_v47  ;;  %v2278_v3 = vadd.f32 %v2277_v7, %v2276_v42  ;;  %v2343_v17 = vmul.f32 %v4572_v0, %v4572_v0 }
 0x254   : > { %v2378_v25 = vsel %vm373_vm0, %v2333_v49, 0.0  ;;  %v2392_v15 = vsel %vm373_vm0, %v2340_v52, 0.0 }
 0x255   : > { %v2379_v33 = vadd.f32 %v2378_v25, %v2377_v62  ;;  %v2398_v42 = vsel %vm373_vm0, %v2343_v17, 0.0  ;;  %v2345_v25 = vmul.f32 %v4613_v39, %v4613_v39 }
 0x257   : > { %v4627_v51 = vpop.f32.mrf.mxu3  ;;  %v2402_v48 = vsel %vm373_vm0, %v2345_v25, 0.0 }
 0x258   : > { %2245 = vst.msk [vmem:[%s4527_s26 + $0xd8] sm:$0xff] %vm373_vm0, %v4627_v51  ;;  %v2346_v36 = vmul.f32 %v4627_v51, %v4627_v51 }
 0x259   : > { %v2175_v37 = vpop.f32.mrf.mxu1 }
 0x25a   : > { %2233 = vst.msk [vmem:[%s4527_s26 + $0x78] sm:$0xff] %vm373_vm0, %v2175_v37  ;;  %v2279_v44 = vsel %vm373_vm0, %v2175_v37, 0.0  ;;  %v2334_v45 = vmul.f32 %v2175_v37, %v2175_v37  ;;  %v2301_v37 = vsel %vm373_vm0, %v4613_v39, 0.0 }
 0x25b   : > { %v2280_v38 = vadd.f32 %v2279_v44, %v2278_v3  ;;  %v2400_v3 = vsel %vm373_vm0, %v2344_v57, 0.0 }
 0x25c   : > { %v2380_v58 = vsel %vm373_vm0, %v2334_v45, 0.0 }
 0x25d   : > { %v2282_v27 = vadd.f32 %v2281_v59, %v2280_v38  ;;  %v2381_v21 = vadd.f32 %v2380_v58, %v2379_v33  ;;  %v2303_v33 = vsel %vm373_vm0, %v4627_v51, 0.0  ;;  %v2404_v58 = vsel %vm373_vm0, %v2346_v36, 0.0 }
 0x25f   : > { %v2284_v55 = vadd.f32 %v2283_v26, %v2282_v27  ;;  %v2383_v31 = vadd.f32 %v2382_v19, %v2381_v21 }
 0x261   : > { %v2286_v35 = vadd.f32 %v2285_v2, %v2284_v55  ;;  %v2385_v24 = vadd.f32 %v2384_v50, %v2383_v31  ;;  %v2193_v16 = vpop.f32.mrf.mxu2 }
 0x262   : > { %2240 = vst.msk [vmem:[%s4527_s26 + $0xb0] sm:$0xff] %vm373_vm0, %v2193_v16  ;;  %v2341_v43 = vmul.f32 %v2193_v16, %v2193_v16  ;;  %v2293_v8 = vsel %vm373_vm0, %v2193_v16, 0.0 }
 0x263   : > { %v2387_v4 = vadd.f32 %v2386_v22, %v2385_v24  ;;  %v2288_v28 = vadd.f32 %v2287_v6, %v2286_v35 }
 0x264   : > { %v2394_v46 = vsel %vm373_vm0, %v2341_v43, 0.0 }
 0x265   : > { %v2290_v10 = vadd.f32 %v2289_v1, %v2288_v28  ;;  %v2389_v40 = vadd.f32 %v2388_v9, %v2387_v4 }
 0x267   : > { %v2292_v5 = vadd.f32 %v2291_v56, %v2290_v10  ;;  %v2391_v11 = vadd.f32 %v2390_v32, %v2389_v40  ;;  %v2208_v41 = vpop.f32.mrf.mxu3 }
 0x268   : > { %2246 = vst.msk [vmem:[%s4527_s26 + $0xe0] sm:$0xff] %vm373_vm0, %v2208_v41  ;;  %v2347_v38 = vmul.f32 %v2208_v41, %v2208_v41  ;;  %v2305_v27 = vsel %vm373_vm0, %v2208_v41, 0.0 }
 0x269   : > { %v2294_v54 = vadd.f32 %v2293_v8, %v2292_v5  ;;  %v2393_v23 = vadd.f32 %v2392_v15, %v2391_v11  ;;  %v2195_v34 = vpop.f32.mrf.mxu2 }
 0x26a   : > { %2241 = vst.msk [vmem:[%s4527_s26 + $0xb8] sm:$0xff] %vm373_vm0, %v2195_v34  ;;  %v2295_v14 = vsel %vm373_vm0, %v2195_v34, 0.0  ;;  %v2342_v18 = vmul.f32 %v2195_v34, %v2195_v34  ;;  %v2406_v26 = vsel %vm373_vm0, %v2347_v38, 0.0 }
 0x26b   : > { %v2395_v63 = vadd.f32 %v2394_v46, %v2393_v23  ;;  %v2296_v47 = vadd.f32 %v2295_v14, %v2294_v54 }
 0x26c   : > { %v2396_v49 = vsel %vm373_vm0, %v2342_v18, 0.0 }
 0x26d   : > { %v2298_v13 = vadd.f32 %v2297_v29, %v2296_v47  ;;  %v2397_v30 = vadd.f32 %v2396_v49, %v2395_v63 }
 0x26f   : > { %v2210_v7 = vpop.f32.mrf.mxu3  ;;  %v2300_v62 = vadd.f32 %v2299_v53, %v2298_v13  ;;  %v2399_v0 = vadd.f32 %v2398_v42, %v2397_v30 }
 0x270   : > { %2247 = vst.msk [vmem:[%s4527_s26 + $0xe8] sm:$0xff] %vm373_vm0, %v2210_v7  ;;  %v2348_v12 = vmul.f32 %v2210_v7, %v2210_v7  ;;  %v2307_v31 = vsel %vm373_vm0, %v2210_v7, 0.0 }
 0x271   : > { %v2302_v44 = vadd.f32 %v2301_v37, %v2300_v62  ;;  %v2401_v45 = vadd.f32 %v2400_v3, %v2399_v0 }
 0x272   : > { %v2408_v2 = vsel %vm373_vm0, %v2348_v12, 0.0 }
 0x273   : > { %v2403_v59 = vadd.f32 %v2402_v48, %v2401_v45  ;;  %v2304_v61 = vadd.f32 %v2303_v33, %v2302_v44 }
 0x275   : > { %v2306_v21 = vadd.f32 %v2305_v27, %v2304_v61  ;;  %v2405_v39 = vadd.f32 %v2404_v58, %v2403_v59 }
 0x277   : > { %v2213_v19 = vpop.f32.mrf.mxu3  ;;  %v2407_v55 = vadd.f32 %v2406_v26, %v2405_v39  ;;  %v2308_v50 = vadd.f32 %v2307_v31, %v2306_v21 }
 0x278   : > { %2248 = vst.msk [vmem:[%s4527_s26 + $0xf0] sm:$0xff] %vm373_vm0, %v2213_v19  ;;  %v2349_v51 = vmul.f32 %v2213_v19, %v2213_v19  ;;  %v2309_v20 = vsel %vm373_vm0, %v2213_v19, 0.0 }
 0x279   : > { %v2409_v35 = vadd.f32 %v2408_v2, %v2407_v55  ;;  %v2310_v22 = vadd.f32 %v2309_v20, %v2308_v50 }
 0x27a   : > { %v2410_v24 = vsel %vm373_vm0, %v2349_v51, 0.0 }
 0x27b   : > { %v2411_v16 = vadd.f32 %v2410_v24, %v2409_v35 }
 0x27f   : > { %v2215_v6 = vpop.f32.mrf.mxu3 }
 0x280   : > { %2249 = vst.msk [vmem:[%s4527_s26 + $0xf8] sm:$0xff] %vm373_vm0, %v2215_v6  ;;  %v2311_v60 = vsel %vm373_vm0, %v2215_v6, 0.0  ;;  %v2350_v4 = vmul.f32 %v2215_v6, %v2215_v6 }
 0x281   : > { %v2312_v28 = vadd.f32 %v2311_v60, %v2310_v22 }
 0x282   : > { %v2412_v9 = vsel %vm373_vm0, %v2350_v4, 0.0 }
 0x283   : > { %v2313_v1 = vrot.slane %v2312_v28, 4  ;;  %v2413_v52 = vadd.f32 %v2412_v9, %v2411_v16 }
 0x285   : > { %v2314_v10 = vadd.f32 %v2313_v1, %v2312_v28  ;;  %v2414_v40 = vrot.slane %v2413_v52, 4 }
 0x287   : > { %v2315_v32 = vrot.slane %v2314_v10, 2  ;;  %v2415_v56 = vadd.f32 %v2414_v40, %v2413_v52 }
 0x289   : > { %v2316_v43 = vadd.f32 %v2315_v32, %v2314_v10  ;;  %v2416_v5 = vrot.slane %v2415_v56, 2 }
 0x28b   : > { %v2317_v11 = vrot.slane %v2316_v43, 1  ;;  %v2417_v41 = vadd.f32 %v2416_v5, %v2415_v56 }
 0x28d   : > { %v2418_v15 = vrot.slane %v2417_v41, 1  ;;  %v2318_v8 = vadd.f32 %v2317_v11, %v2316_v43 }
 0x28f   : > { %v2419_v54 = vadd.f32 %v2418_v15, %v2417_v41 }
 0x291   : > { %v2421_v23 = vsel %vm2420_vm12, %v2318_v8, %v2419_v54 }
 0x292   : > { %2422 = vst.msk [vmem:[%s235_s29] sm:$0x3] %vm376_vm1, %v2421_v23 }
 0x293 PF: > { %s16_s18 = sadd.s32 1, %s3239_s18  }
 0x294   : > { %p13_p4 = scmp.ge.s32.totalorder %s16_s18, 4  }
 0x296   :  { %15 = sbr.rel (!%p13_p4) target bundleno = 1 (0x1), region = 81 }

</bundles_post_ra>
